<compile_context>
chip_gen: v7x
topology: tpu7x:2x2x1
jax: 0.10.0
libtpu: 0.0.40
codegen_flags: <defaults>
</compile_context>

<pallas_src>
import functools

import numpy as np
import jax
import jax.numpy as jnp
from jax import lax
from jax.experimental import pallas as pl
from jax.experimental.pallas import tpu as pltpu


SCALES = (1, 2, 4)
LN_EPS = 1e-5


# ---------------------------------------------------------------------------
# host-side helper matrices (DFT-as-matmul, conv "same" padding bookkeeping)
# ---------------------------------------------------------------------------
def rfft_matrices(n):
    f = n // 2 + 1
    k = np.arange(f)[:, None].astype(np.float64)
    t = np.arange(n)[None, :].astype(np.float64)
    ang = 2.0 * np.pi * k * t / n
    cc = np.cos(ang)          # Xr = cc @ x
    cs = -np.sin(ang)         # Xi = cs @ x
    return cc.astype(np.float32), cs.astype(np.float32)


def irfft_matrices(n):
    f = n // 2 + 1
    k = np.arange(f)[:, None].astype(np.float64)
    t = np.arange(n)[None, :].astype(np.float64)
    ang = 2.0 * np.pi * k * t / n
    w = np.full((f, 1), 2.0)
    w[0, 0] = 1.0
    if n % 2 == 0:
        w[-1, 0] = 1.0
    irc = (w * np.cos(ang) / n).T     # x = irc @ Xr + irs @ Xi   (shape (n, f))
    irs = (-w * np.sin(ang) / n).T
    return irc.astype(np.float32), irs.astype(np.float32)


def tap_offsets(k):
    left = (k - 1) // 2               # PyTorch padding='same' convention
    return [j - left for j in range(k)]


def patch_dft_matrices(t, patch_size):
    """ccj[j, f, patch_size*r + j] = cc[f, r] so that
       rfft(patch_fold(h) @ Wpatch).real == sum_j ccj[j] @ (h @ W_j) + rowsum(cc)*b.
       This folds the (T, H) -> (Tp, p*H) patch reshape into the DFT constants
       (no in-kernel reshape, no dense gather matmul)."""
    tp = t // patch_size
    cc, _ = rfft_matrices(tp)                                  # (F, Tp)
    f = cc.shape[0]
    ccj = np.zeros((patch_size, f, t), np.float32)
    for j in range(patch_size):
        ccj[j, :, j::patch_size] = cc
    return ccj, cc.sum(axis=1, keepdims=True)                  # (p, F, T), (F, 1)


# ---------------------------------------------------------------------------
# in-kernel helpers
# ---------------------------------------------------------------------------
def _bf16(x):
    return x.astype(jnp.bfloat16)


def _dot(a, b):
    return jnp.dot(a, b, preferred_element_type=jnp.float32)


def _layernorm(x, w, b, eps=LN_EPS):
    mu = jnp.mean(x, axis=-1, keepdims=True)
    xc = x - mu
    var = jnp.mean(xc * xc, axis=-1, keepdims=True)
    return xc * lax.rsqrt(var + eps) * w + b


def _gelu(x):
    # TODO(synk): tanh-approximate GELU (runs on the EUP) instead of the exact
    # erf nn.GELU default; |err| ~1e-3, acceptable for inference.
    c = 0.7978845608028654  # sqrt(2/pi)
    return 0.5 * x * (1.0 + jnp.tanh(c * (x + 0.044715 * x * x * x)))


def _shift_rows(a, off):
    """shifted[t] = a[t + off], zeros outside [0, n)  (zero 'same' padding)."""
    if off == 0:
        return a
    if abs(off) >= a.shape[0]:
        return jnp.zeros_like(a)
    pad = jnp.zeros((abs(off),) + a.shape[1:], a.dtype)
    if off > 0:
        return jnp.concatenate([a[off:], pad], axis=0)
    return jnp.concatenate([pad, a[:off]], axis=0)


# ---------------------------------------------------------------------------
# Pallas kernels
# ---------------------------------------------------------------------------
def _stem_kernel(x_ref, fcin_w_ref, fcin_b_ref, pe_ref, shape_w_ref, shape_b_ref,
                 wcat_ref, pbias_ref, ccj_ref, msf_w_ref, msf_b_ref, o_ref,
                 *, bt, t, patch_size, offsets):
    x = x_ref[...]                                               # (bt*T, D)
    # fc_in + positional embedding (pe pre-tiled to bt*T rows)
    h = _dot(_bf16(x), fcin_w_ref[...]) + fcin_b_ref[...] + pe_ref[...]
    # shape-aware embedding: h += Linear(diff(h, prepend=h[:1])) per batch elem
    shifted = jnp.concatenate([h[:1], h[:-1]], axis=0)
    in_batch = (lax.broadcasted_iota(jnp.int32, (bt * t, 1), 0) % t) != 0
    diff = jnp.where(in_batch, h - shifted, 0.0)
    h = h + _dot(_bf16(diff), shape_w_ref[...]) + shape_b_ref[...]
    # patch embedding + rfft(real), patch fold merged into the DFT constants:
    #   base_b = sum_j ccj[j] @ (h_b @ W_j) + rowsum(cc) * patch_b
    hid = wcat_ref.shape[0]
    y = _dot(_bf16(h), wcat_ref[...])                            # (bt*T, p*hid)
    pbias = pbias_ref[...]                                       # (F, hid)
    taps = []
    for b in range(bt):
        yb = y[b * t:(b + 1) * t, :]
        base = pbias
        for j in range(patch_size):
            base = base + _dot(ccj_ref[j], _bf16(yb[:, j * hid:(j + 1) * hid]))
        # multi-scale 'same' conv over the frequency axis: taps stacked on lanes
        taps.append(jnp.concatenate(
            [_shift_rows(base, off) for off in offsets], axis=-1))
    taps_all = jnp.concatenate(taps, axis=0)                     # (bt*F, ntap*hid)
    o_ref[...] = _dot(_bf16(taps_all), msf_w_ref[...]) + msf_b_ref[...]


def _encoder_kernel(x_ref, ln1w_ref, ln1b_ref, wqkv_ref, wo_ref, bo_ref,
                    ln2w_ref, ln2b_ref, w1_ref, b1_ref, w2_ref, b2_ref,
                    dft_ref, ircat_ref, hsum_ref, hexp_ref, o_ref,
                    *, scale, bt, t, f):
    layer = pl.program_id(1)

    @pl.when(layer == 0)
    def _():
        o_ref[...] = x_ref[...]          # activation lives in the output block

    x = o_ref[...]                                               # (bt*T, C) f32
    c = x.shape[-1]
    # --- Fourier self-attention ---
    h = _layernorm(x, ln1w_ref[0], ln1b_ref[0])
    qkv = _dot(_bf16(h), wqkv_ref[0])                            # (bt*T, 3C)
    dft = dft_ref[...]                                           # (2F, T) = [cos; -sin], bf16
    ircat = ircat_ref[...]                                       # (T, 2F) bf16
    outs = []
    for b in range(bt):
        qkvf = _dot(dft, _bf16(qkv[b * t:(b + 1) * t, :]))       # (2F, 3C) f32
        qf, kf, vf = qkvf[:, :c], qkvf[:, c:2 * c], qkvf[:, 2 * c:]
        prod = qf[:f] * kf[:f] + qf[f:] * kf[f:]                 # Re(conj(Q)K)  (F, C)
        logits = _dot(prod, hsum_ref[...]) * scale               # per-head sum  (F, heads)
        m = jnp.max(logits, axis=0, keepdims=True)               # softmax over frequency
        e = jnp.exp(logits - m)
        attn = e * pl.reciprocal(jnp.sum(e, axis=0, keepdims=True), approx=True)
        attn_c = _dot(attn, hexp_ref[...])                       # broadcast -> (F, C)
        weighted = jnp.concatenate([attn_c, attn_c], axis=0) * vf  # (2F, C)
        outs.append(_dot(ircat, _bf16(weighted)))                # merged irfft -> (T, C)
    out_t = jnp.concatenate(outs, axis=0)                        # (bt*T, C)
    x = x + _dot(_bf16(out_t), wo_ref[0]) + bo_ref[0]
    # --- feed-forward (fused GELU, no HBM round trip) ---
    h2 = _layernorm(x, ln2w_ref[0], ln2b_ref[0])
    ff = _dot(_bf16(h2), w1_ref[0]) + b1_ref[0]
    ff = _gelu(ff)
    ff = _dot(_bf16(ff), w2_ref[0]) + b2_ref[0]
    o_ref[...] = x + ff


def _head_kernel(x_ref, ssm_w_ref, ssm_b_ref, lnw_ref, lnb_ref,
                 fco_w_ref, fco_b_ref, o_ref, *, bt, t):
    x = x_ref[...]                                               # (bt*T, C)
    rows = []
    for b in range(bt):
        xb = x[b * t:(b + 1) * t, :]
        rows.append(jnp.concatenate(
            [_shift_rows(xb, -1), xb, _shift_rows(xb, 1)], axis=-1))
    stacked = jnp.concatenate(rows, axis=0)                      # (bt*T, 3C)
    conv = _dot(_bf16(stacked), ssm_w_ref[...]) + ssm_b_ref[...]
    y = _layernorm(x + conv, lnw_ref[...], lnb_ref[...])
    pooled = jnp.concatenate(
        [jnp.mean(y[b * t:(b + 1) * t, :], axis=0, keepdims=True)
         for b in range(bt)], axis=0)                            # (bt, C)
    # lane-dense (classes padded to 128) output block
    o_ref[...] = _dot(_bf16(pooled), fco_w_ref[...]) + fco_b_ref[...]


# ---------------------------------------------------------------------------
# pallas_call plumbing
# ---------------------------------------------------------------------------
def _const_spec(a):
    zeros = (0,) * a.ndim
    return pl.BlockSpec(a.shape, lambda *_, _z=zeros: _z)


@functools.lru_cache(maxsize=None)
def _vmem_limit_bytes():
    try:
        cap = int(pltpu.get_tpu_info().vmem_capacity_bytes)
    except Exception:           # older jax / abstract tracing fallback
        cap = 128 * 1024 * 1024
    return int(min(100 * 1024 * 1024, cap * 3 // 4))


def _cparams(n_parallel, n_arbitrary=0):
    return pltpu.CompilerParams(
        dimension_semantics=("parallel",) * n_parallel
        + ("arbitrary",) * n_arbitrary,
        vmem_limit_bytes=_vmem_limit_bytes())


def _pick_bt(b, rows_per_elem, target_rows=512, max_bt=16):
    """Largest batch block that keeps every per-element row count 8-aligned
    inside the flat (Bt*rows, C) block (or uses the full batch, always legal)
    while keeping the token tile and unroll depth modest."""
    cands = [c for c in range(1, b + 1) if b % c == 0 and
             (c == b or all((c * r) % 8 == 0 for r in rows_per_elem))]
    fitting = [c for c in cands
               if c <= max_bt and c * max(rows_per_elem) <= target_rows]
    return max(fitting) if fitting else min(cands)


def fused_stem(x_flat, kp, *, batch, t, patch_size):
    d = x_flat.shape[-1]
    hid = kp["fc_in_w"].shape[1]
    tp = t // patch_size
    f = tp // 2 + 1
    n_out = kp["msf_w"].shape[1]
    offsets = tuple(o for k in SCALES for o in tap_offsets(k))

    ccj_np, ccsum_np = patch_dft_matrices(t, patch_size)
    ccj = jnp.asarray(ccj_np, jnp.bfloat16)                      # (p, F, T)
    pbias = jnp.asarray(ccsum_np) * kp["patch_b"]                # (F, hid) f32
    bt = _pick_bt(batch, (t, f))
    pe = jnp.tile(kp["pe"][0, :t, :], (bt, 1))                   # (bt*T, hid)

    operands = (x_flat, kp["fc_in_w"], kp["fc_in_b"], pe,
                kp["shape_w"], kp["shape_b"], kp["patch_wcat"], pbias,
                ccj, kp["msf_w"], kp["msf_b"])
    in_specs = ([pl.BlockSpec((bt * t, d), lambda i: (i, 0))]
                + [_const_spec(a) for a in operands[1:]])
    return pl.pallas_call(
        functools.partial(_stem_kernel, bt=bt, t=t, patch_size=patch_size,
                          offsets=offsets),
        out_shape=jax.ShapeDtypeStruct((batch * f, n_out), jnp.float32),
        grid=(batch // bt,),
        in_specs=in_specs,
        out_specs=pl.BlockSpec((bt * f, n_out), lambda i: (i, 0)),
        compiler_params=_cparams(1),
    )(*operands)


def fused_encoder(h_flat, kp, *, batch, t, num_heads):
    c = h_flat.shape[-1]
    n_layers = kp["wqkv"].shape[0]
    f = t // 2 + 1
    scale = float(c // num_heads) ** -0.5

    cc, cs = rfft_matrices(t)
    dft = jnp.asarray(np.concatenate([cc, cs], axis=0), jnp.bfloat16)     # (2F, T)
    irc, irs = irfft_matrices(t)
    ircat = jnp.asarray(np.concatenate([irc, irs], axis=1), jnp.bfloat16)  # (T, 2F)

    bt = _pick_bt(batch, (t,))
    layer_ws = tuple(kp[n] for n in ("ln1_w", "ln1_b", "wqkv", "wo", "bo",
                                     "ln2_w", "ln2_b", "w1", "b1", "w2", "b2"))
    consts = (dft, ircat, kp["head_sum"], kp["head_exp"])
    operands = (h_flat,) + layer_ws + consts
    in_specs = ([pl.BlockSpec((bt * t, c), lambda i, l: (i, 0))]
                + [pl.BlockSpec((1,) + w.shape[1:], lambda i, l: (l, 0, 0))
                   for w in layer_ws]
                + [_const_spec(a) for a in consts])
    return pl.pallas_call(
        functools.partial(_encoder_kernel, scale=scale, bt=bt, t=t, f=f),
        out_shape=jax.ShapeDtypeStruct((batch * t, c), jnp.float32),
        grid=(batch // bt, n_layers),
        in_specs=in_specs,
        out_specs=pl.BlockSpec((bt * t, c), lambda i, l: (i, 0)),
        compiler_params=_cparams(1, 1),
    )(*operands)


def fused_head(h_flat, kp, *, batch, t):
    c = h_flat.shape[-1]
    ncpad = kp["fc_out_w"].shape[1]
    bt = _pick_bt(batch, (t, 1))
    operands = (h_flat, kp["ssm_w"], kp["ssm_b"], kp["ssm_ln_w"],
                kp["ssm_ln_b"], kp["fc_out_w"], kp["fc_out_b"])
    in_specs = ([pl.BlockSpec((bt * t, c), lambda i: (i, 0))]
                + [_const_spec(a) for a in operands[1:]])
    return pl.pallas_call(
        functools.partial(_head_kernel, bt=bt, t=t),
        out_shape=jax.ShapeDtypeStruct((batch, ncpad), jnp.float32),
        grid=(batch // bt,),
        in_specs=in_specs,
        out_specs=pl.BlockSpec((bt, ncpad), lambda i: (i, 0)),
        compiler_params=_cparams(1),
    )(*operands)


# ---------------------------------------------------------------------------
# model composition
# ---------------------------------------------------------------------------
@functools.partial(jax.jit,
                   static_argnames=("num_heads", "patch_size", "num_classes"))
def forward(x, kp, *, num_heads, patch_size, num_classes):
    b, t, d = x.shape
    assert t % patch_size == 0
    assert t <= kp["pe"].shape[1], "positional encoding max_len exceeded"
    t_enc = (t // patch_size) // 2 + 1

    h = fused_stem(x.reshape(b * t, d), kp, batch=b, t=t, patch_size=patch_size)
    if "wqkv" in kp:
        h = fused_encoder(h, kp, batch=b, t=t_enc, num_heads=num_heads)
    logits = fused_head(h, kp, batch=b, t=t_enc)
    return logits[:, :num_classes]


# ---------------------------------------------------------------------------
# parameter initialization (PyTorch layouts) + kernel-ready repacking
# ---------------------------------------------------------------------------
def init_params(key, input_dim, num_classes, hidden_dim, n_layers, patch_size):
    enc = hidden_dim * len(SCALES)
    keys = iter(jax.random.split(key, 64))

    def lin(fan_in, fan_out, bias=True):
        k1, k2 = jax.random.split(next(keys))
        bound = 1.0 / np.sqrt(fan_in)
        w = jax.random.uniform(k1, (fan_in, fan_out), jnp.float32, -bound, bound)
        b = (jax.random.uniform(k2, (fan_out,), jnp.float32, -bound, bound)
             if bias else jnp.zeros((fan_out,), jnp.float32))
        return w, b

    def conv(ch, ksz):
        k1, k2 = jax.random.split(next(keys))
        bound = 1.0 / np.sqrt(ch * ksz)
        w = jax.random.uniform(k1, (ch, ch, ksz), jnp.float32, -bound, bound)
        b = jax.random.uniform(k2, (ch,), jnp.float32, -bound, bound)
        return w, b

    p = {}
    p["fc_in_w"], p["fc_in_b"] = lin(input_dim, hidden_dim)
    p["pe"] = jnp.zeros((1, 100, hidden_dim), jnp.float32)
    p["shape_w"], p["shape_b"] = lin(hidden_dim, hidden_dim)
    p["patch_w"], p["patch_b"] = lin(hidden_dim * patch_size, hidden_dim)
    p["conv_ws"], p["conv_bs"] = [], []
    for s in SCALES:
        w, b = conv(hidden_dim, s)
        p["conv_ws"].append(w)
        p["conv_bs"].append(b)
    p["layers"] = []
    for _ in range(n_layers):
        lp = {}
        lp["ln1_w"] = jnp.ones((enc,), jnp.float32)
        lp["ln1_b"] = jnp.zeros((enc,), jnp.float32)
        lp["wqkv"], _ = lin(enc, 3 * enc, bias=False)
        lp["wo"], lp["bo"] = lin(enc, enc)
        lp["ln2_w"] = jnp.ones((enc,), jnp.float32)
        lp["ln2_b"] = jnp.zeros((enc,), jnp.float32)
        lp["w1"], lp["b1"] = lin(enc, 4 * enc)
        lp["w2"], lp["b2"] = lin(4 * enc, enc)
        p["layers"].append(lp)
    p["ssm_w"], p["ssm_b"] = conv(enc, 3)
    p["ssm_ln_w"] = jnp.ones((enc,), jnp.float32)
    p["ssm_ln_b"] = jnp.zeros((enc,), jnp.float32)
    p["fc_out_w"], p["fc_out_b"] = lin(enc, num_classes)   # see TODO(synk) above
    return p


def prepare_params(p, *, num_heads):
    """Repack PyTorch-layout params into kernel-ready form (bf16 weights,
    stacked (L, ...) layer weights, stacked conv matrices, f32 row biases,
    per-head 0/1 masks, lane-padded classifier)."""
    hid = p["fc_in_w"].shape[1]
    enc = p["ssm_ln_w"].shape[0]
    dh = enc // num_heads
    patch_size = p["patch_w"].shape[0] // hid

    def bf(a):
        return jnp.asarray(a, jnp.bfloat16)

    def row(a):
        return jnp.asarray(a, jnp.float32).reshape(1, -1)

    kp = {
        "fc_in_w": bf(p["fc_in_w"]), "fc_in_b": row(p["fc_in_b"]),
        "pe": jnp.asarray(p["pe"], jnp.float32),
        "shape_w": bf(p["shape_w"]), "shape_b": row(p["shape_b"]),
        "patch_b": row(p["patch_b"]),
    }

    # patch linear rearranged so the patch fold merges into the DFT constants:
    # Wcat[:, j*hid:(j+1)*hid] = patch_w[j*hid:(j+1)*hid, :]
    pw = np.asarray(p["patch_w"], np.float32)                    # (p*hid, hid)
    wcat = np.concatenate(
        [pw[j * hid:(j + 1) * hid, :] for j in range(patch_size)], axis=1)
    kp["patch_wcat"] = jnp.asarray(wcat, jnp.bfloat16)           # (hid, p*hid)

    # multi-scale conv -> single (ntap*H, n_scales*H) stacked weight
    n_taps = sum(SCALES)
    wbig = np.zeros((n_taps * hid, len(SCALES) * hid), np.float32)
    r = 0
    for s_idx, k in enumerate(SCALES):
        w = np.asarray(p["conv_ws"][s_idx])                      # (out, in, k)
        for j in range(k):
            wbig[r * hid:(r + 1) * hid, s_idx * hid:(s_idx + 1) * hid] = w[:, :, j].T
            r += 1
    kp["msf_w"] = jnp.asarray(wbig, jnp.bfloat16)
    kp["msf_b"] = row(jnp.concatenate(p["conv_bs"]))

    # encoder layers stacked along a leading L axis (single fused pallas_call)
    if p["layers"]:
        def stack(fn, name):
            return jnp.stack([fn(lp[name]) for lp in p["layers"]], axis=0)
        kp["ln1_w"] = stack(row, "ln1_w")
        kp["ln1_b"] = stack(row, "ln1_b")
        kp["wqkv"] = stack(bf, "wqkv")
        kp["wo"] = stack(bf, "wo")
        kp["bo"] = stack(row, "bo")
        kp["ln2_w"] = stack(row, "ln2_w")
        kp["ln2_b"] = stack(row, "ln2_b")
        kp["w1"] = stack(bf, "w1")
        kp["b1"] = stack(row, "b1")
        kp["w2"] = stack(bf, "w2")
        kp["b2"] = stack(row, "b2")

    # per-head reduce / broadcast 0/1 masks (channels grouped in dh blocks)
    hs = np.zeros((enc, num_heads), np.float32)
    for ci in range(enc):
        hs[ci, ci // dh] = 1.0
    kp["head_sum"] = jnp.asarray(hs)
    kp["head_exp"] = jnp.asarray(hs.T)

    # SSM conv (k=3, pad=1) -> single (3*enc, enc) stacked weight
    w = np.asarray(p["ssm_w"])
    kp["ssm_w"] = jnp.asarray(
        np.concatenate([w[:, :, j].T for j in range(3)], axis=0), jnp.bfloat16)
    kp["ssm_b"] = row(p["ssm_b"])
    kp["ssm_ln_w"] = row(p["ssm_ln_w"])
    kp["ssm_ln_b"] = row(p["ssm_ln_b"])

    # classifier padded to a lane-dense (enc, >=128) block; sliced to
    # num_classes outside the kernel.  See TODO(synk) above re in_features.
    nc = int(np.asarray(p["fc_out_w"]).shape[1])
    ncpad = max(128, ((nc + 127) // 128) * 128)
    wpad = np.zeros((enc, ncpad), np.float32)
    wpad[:, :nc] = np.asarray(p["fc_out_w"])
    bpad = np.zeros((1, ncpad), np.float32)
    bpad[0, :nc] = np.asarray(p["fc_out_b"])
    kp["fc_out_w"] = jnp.asarray(wpad, jnp.bfloat16)
    kp["fc_out_b"] = jnp.asarray(bpad)
    return kp


if __name__ == "__main__":
    B, T, input_dim = 2, 8, 16
    hidden_dim, num_heads, n_layers, patch_size, num_classes = 32, 8, 2, 2, 5

    key = jax.random.PRNGKey(0)
    pkey, xkey = jax.random.split(key)
    raw_params = init_params(pkey, input_dim, num_classes, hidden_dim,
                             n_layers, patch_size)
    params = prepare_params(raw_params, num_heads=num_heads)
    x = jax.random.normal(xkey, (B, T, input_dim), jnp.float32)

    out = forward(x, params, num_heads=num_heads, patch_size=patch_size,
                  num_classes=num_classes)
    out = jax.block_until_ready(out)
    assert out.shape == (B, num_classes)
    assert bool(jnp.all(jnp.isfinite(out)))
    print("KERNEL_OK")
</pallas_src>

<mosaic_0001>
module attributes {stable_mosaic.version = 11 : i64} {
  func.func @_stem_kernel(%arg0: i32, %arg1: memref<16x16xf32, #tpu.memory_space<vmem>>, %arg2: memref<16x32xbf16, #tpu.memory_space<vmem>>, %arg3: memref<1x32xf32, #tpu.memory_space<vmem>>, %arg4: memref<16x32xf32, #tpu.memory_space<vmem>>, %arg5: memref<32x32xbf16, #tpu.memory_space<vmem>>, %arg6: memref<1x32xf32, #tpu.memory_space<vmem>>, %arg7: memref<32x64xbf16, #tpu.memory_space<vmem>>, %arg8: memref<3x32xf32, #tpu.memory_space<vmem>>, %arg9: memref<2x3x8xbf16, #tpu.memory_space<vmem>>, %arg10: memref<224x96xbf16, #tpu.memory_space<vmem>>, %arg11: memref<1x96xf32, #tpu.memory_space<vmem>>, %arg12: memref<6x96xf32, #tpu.memory_space<vmem>>) attributes {dimension_semantics = [#tpu.dimension_semantics<parallel>], iteration_bounds = array<i64: 1>, scalar_prefetch = 0 : i64, scratch_operands = 0 : i64, tpu.core_type = #tpu.core_type<tc>, window_params = [{transform_indices = @transform_0, window_bounds = array<i64: 16, 16>}, {pipeline_mode = #tpu.pipeline_mode<synchronous>, transform_indices = @transform_1, window_bounds = array<i64: 16, 32>}, {pipeline_mode = #tpu.pipeline_mode<synchronous>, transform_indices = @transform_2, window_bounds = array<i64: 1, 32>}, {pipeline_mode = #tpu.pipeline_mode<synchronous>, transform_indices = @transform_3, window_bounds = array<i64: 16, 32>}, {pipeline_mode = #tpu.pipeline_mode<synchronous>, transform_indices = @transform_4, window_bounds = array<i64: 32, 32>}, {pipeline_mode = #tpu.pipeline_mode<synchronous>, transform_indices = @transform_5, window_bounds = array<i64: 1, 32>}, {pipeline_mode = #tpu.pipeline_mode<synchronous>, transform_indices = @transform_6, window_bounds = array<i64: 32, 64>}, {pipeline_mode = #tpu.pipeline_mode<synchronous>, transform_indices = @transform_7, window_bounds = array<i64: 3, 32>}, {pipeline_mode = #tpu.pipeline_mode<synchronous>, transform_indices = @transform_8, window_bounds = array<i64: 2, 3, 8>}, {pipeline_mode = #tpu.pipeline_mode<synchronous>, transform_indices = @transform_9, window_bounds = array<i64: 224, 96>}, {pipeline_mode = #tpu.pipeline_mode<synchronous>, transform_indices = @transform_10, window_bounds = array<i64: 1, 96>}, {transform_indices = @transform_11, window_bounds = array<i64: 6, 96>}]} {
    %c0 = arith.constant 0 : index
    %c0_0 = arith.constant 0 : index
    %0 = vector.load %arg1[%c0, %c0_0] : memref<16x16xf32, #tpu.memory_space<vmem>>, vector<16x16xf32>
    %1 = arith.truncf %0 : vector<16x16xf32> to vector<16x16xbf16>
    %c0_1 = arith.constant 0 : index
    %c0_2 = arith.constant 0 : index
    %2 = vector.load %arg2[%c0_1, %c0_2] : memref<16x32xbf16, #tpu.memory_space<vmem>>, vector<16x32xbf16>
    %cst = arith.constant dense<0.000000e+00> : vector<16x32xf32>
    %3 = tpu.matmul %1, %2, %cst {dimension_numbers = #tpu.dot_dimension_numbers<[1], [0], [0], [1], [0, 0, 1, 1], [], []>} : vector<16x16xbf16>, vector<16x32xbf16>, vector<16x32xf32> -> vector<16x32xf32>
    %c0_3 = arith.constant 0 : index
    %c0_4 = arith.constant 0 : index
    %4 = vector.load %arg3[%c0_3, %c0_4] : memref<1x32xf32, #tpu.memory_space<vmem>>, vector<1x32xf32>
    %5 = vector.broadcast %4 : vector<1x32xf32> to vector<16x32xf32>
    %6 = arith.addf %3, %5 : vector<16x32xf32>
    %c0_5 = arith.constant 0 : index
    %c0_6 = arith.constant 0 : index
    %7 = vector.load %arg4[%c0_5, %c0_6] : memref<16x32xf32, #tpu.memory_space<vmem>>, vector<16x32xf32>
    %8 = arith.addf %6, %7 : vector<16x32xf32>
    %9 = vector.extract_strided_slice %8 {offsets = [0, 0], sizes = [1, 32], strides = [1, 1]} : vector<16x32xf32> to vector<1x32xf32>
    %10 = vector.extract_strided_slice %8 {offsets = [0, 0], sizes = [15, 32], strides = [1, 1]} : vector<16x32xf32> to vector<15x32xf32>
    %11 = tpu.concatenate %9, %10 in 0 : vector<1x32xf32>, vector<15x32xf32> -> vector<16x32xf32>
    %12 = tpu.iota {dimensions = array<i32: 0>} : vector<16x1xi32>
    %c8_i32 = arith.constant 8 : i32
    %c0_i32 = arith.constant 0 : i32
    %13 = arith.cmpi eq, %c8_i32, %c0_i32 : i32
    %c1_i32 = arith.constant 1 : i32
    %14 = arith.select %13, %c1_i32, %c8_i32 : i32
    %15 = vector.broadcast %14 : i32 to vector<16x1xi32>
    %16 = arith.remsi %12, %15 : vector<16x1xi32>
    %c0_i32_7 = arith.constant 0 : i32
    %17 = vector.broadcast %c0_i32_7 : i32 to vector<16x1xi32>
    %18 = arith.cmpi ne, %16, %17 : vector<16x1xi32>
    %c0_i32_8 = arith.constant 0 : i32
    %19 = vector.broadcast %c0_i32_8 : i32 to vector<16x1xi32>
    %20 = arith.cmpi slt, %16, %19 : vector<16x1xi32>
    %c0_i32_9 = arith.constant 0 : i32
    %21 = arith.cmpi slt, %14, %c0_i32_9 : i32
    %22 = vector.broadcast %21 : i1 to vector<16x1xi1>
    %23 = vector.broadcast %22 : vector<16x1xi1> to vector<16x1xi1>
    %24 = arith.xori %20, %23 : vector<16x1xi1>
    %25 = arith.andi %24, %18 : vector<16x1xi1>
    %26 = vector.broadcast %14 : i32 to vector<16x1xi32>
    %27 = arith.addi %16, %26 : vector<16x1xi32>
    %28 = arith.select %25, %27, %16 : vector<16x1xi1>, vector<16x1xi32>
    %c0_i32_10 = arith.constant 0 : i32
    %29 = vector.broadcast %c0_i32_10 : i32 to vector<16x1xi32>
    %30 = arith.cmpi ne, %28, %29 : vector<16x1xi32>
    %31 = arith.subf %8, %11 : vector<16x32xf32>
    %cst_11 = arith.constant 0.000000e+00 : f32
    %32 = vector.shape_cast %30 : vector<16x1xi1> to vector<16x1xi1>
    %33 = vector.broadcast %32 : vector<16x1xi1> to vector<16x32xi1>
    %34 = vector.broadcast %cst_11 : f32 to vector<16x32xf32>
    %35 = arith.select %33, %31, %34 : vector<16x32xi1>, vector<16x32xf32>
    %36 = arith.truncf %35 : vector<16x32xf32> to vector<16x32xbf16>
    %c0_12 = arith.constant 0 : index
    %c0_13 = arith.constant 0 : index
    %37 = vector.load %arg5[%c0_12, %c0_13] : memref<32x32xbf16, #tpu.memory_space<vmem>>, vector<32x32xbf16>
    %cst_14 = arith.constant dense<0.000000e+00> : vector<16x32xf32>
    %38 = tpu.matmul %36, %37, %cst_14 {dimension_numbers = #tpu.dot_dimension_numbers<[1], [0], [0], [1], [0, 0, 1, 1], [], []>} : vector<16x32xbf16>, vector<32x32xbf16>, vector<16x32xf32> -> vector<16x32xf32>
    %39 = arith.addf %8, %38 : vector<16x32xf32>
    %c0_15 = arith.constant 0 : index
    %c0_16 = arith.constant 0 : index
    %40 = vector.load %arg6[%c0_15, %c0_16] : memref<1x32xf32, #tpu.memory_space<vmem>>, vector<1x32xf32>
    %41 = vector.broadcast %40 : vector<1x32xf32> to vector<16x32xf32>
    %42 = arith.addf %39, %41 : vector<16x32xf32>
    %43 = arith.truncf %42 : vector<16x32xf32> to vector<16x32xbf16>
    %c0_17 = arith.constant 0 : index
    %c0_18 = arith.constant 0 : index
    %44 = vector.load %arg7[%c0_17, %c0_18] : memref<32x64xbf16, #tpu.memory_space<vmem>>, vector<32x64xbf16>
    %cst_19 = arith.constant dense<0.000000e+00> : vector<16x64xf32>
    %45 = tpu.matmul %43, %44, %cst_19 {dimension_numbers = #tpu.dot_dimension_numbers<[1], [0], [0], [1], [0, 0, 1, 1], [], []>} : vector<16x32xbf16>, vector<32x64xbf16>, vector<16x64xf32> -> vector<16x64xf32>
    %c0_20 = arith.constant 0 : index
    %c0_21 = arith.constant 0 : index
    %46 = vector.load %arg8[%c0_20, %c0_21] : memref<3x32xf32, #tpu.memory_space<vmem>>, vector<3x32xf32>
    %47 = vector.extract_strided_slice %45 {offsets = [0, 0], sizes = [8, 64], strides = [1, 1]} : vector<16x64xf32> to vector<8x64xf32>
    %c0_22 = arith.constant 0 : index
    %c0_23 = arith.constant 0 : index
    %c0_24 = arith.constant 0 : index
    %48 = vector.load %arg9[%c0_22, %c0_23, %c0_24] : memref<2x3x8xbf16, #tpu.memory_space<vmem>>, vector<1x3x8xbf16>
    %49 = vector.shape_cast %48 : vector<1x3x8xbf16> to vector<3x8xbf16>
    %50 = vector.extract_strided_slice %47 {offsets = [0, 0], sizes = [8, 32], strides = [1, 1]} : vector<8x64xf32> to vector<8x32xf32>
    %51 = arith.truncf %50 : vector<8x32xf32> to vector<8x32xbf16>
    %cst_25 = arith.constant dense<0.000000e+00> : vector<3x32xf32>
    %52 = tpu.matmul %49, %51, %cst_25 {dimension_numbers = #tpu.dot_dimension_numbers<[1], [0], [0], [1], [0, 0, 1, 1], [], []>} : vector<3x8xbf16>, vector<8x32xbf16>, vector<3x32xf32> -> vector<3x32xf32>
    %53 = arith.addf %46, %52 : vector<3x32xf32>
    %c1 = arith.constant 1 : index
    %c0_26 = arith.constant 0 : index
    %c0_27 = arith.constant 0 : index
    %54 = vector.load %arg9[%c1, %c0_26, %c0_27] : memref<2x3x8xbf16, #tpu.memory_space<vmem>>, vector<1x3x8xbf16>
    %55 = vector.shape_cast %54 : vector<1x3x8xbf16> to vector<3x8xbf16>
    %56 = vector.extract_strided_slice %47 {offsets = [0, 32], sizes = [8, 32], strides = [1, 1]} : vector<8x64xf32> to vector<8x32xf32>
    %57 = arith.truncf %56 : vector<8x32xf32> to vector<8x32xbf16>
    %cst_28 = arith.constant dense<0.000000e+00> : vector<3x32xf32>
    %58 = tpu.matmul %55, %57, %cst_28 {dimension_numbers = #tpu.dot_dimension_numbers<[1], [0], [0], [1], [0, 0, 1, 1], [], []>} : vector<3x8xbf16>, vector<8x32xbf16>, vector<3x32xf32> -> vector<3x32xf32>
    %59 = arith.addf %53, %58 : vector<3x32xf32>
    %cst_29 = arith.constant 0.000000e+00 : f32
    %60 = vector.broadcast %cst_29 : f32 to vector<1x32xf32>
    %61 = vector.extract_strided_slice %59 {offsets = [1, 0], sizes = [2, 32], strides = [1, 1]} : vector<3x32xf32> to vector<2x32xf32>
    %62 = tpu.concatenate %61, %60 in 0 : vector<2x32xf32>, vector<1x32xf32> -> vector<3x32xf32>
    %cst_30 = arith.constant 0.000000e+00 : f32
    %63 = vector.broadcast %cst_30 : f32 to vector<1x32xf32>
    %64 = vector.extract_strided_slice %59 {offsets = [0, 0], sizes = [2, 32], strides = [1, 1]} : vector<3x32xf32> to vector<2x32xf32>
    %65 = tpu.concatenate %63, %64 in 0 : vector<1x32xf32>, vector<2x32xf32> -> vector<3x32xf32>
    %cst_31 = arith.constant 0.000000e+00 : f32
    %66 = vector.broadcast %cst_31 : f32 to vector<1x32xf32>
    %67 = vector.extract_strided_slice %59 {offsets = [1, 0], sizes = [2, 32], strides = [1, 1]} : vector<3x32xf32> to vector<2x32xf32>
    %68 = tpu.concatenate %67, %66 in 0 : vector<2x32xf32>, vector<1x32xf32> -> vector<3x32xf32>
    %cst_32 = arith.constant 0.000000e+00 : f32
    %69 = vector.broadcast %cst_32 : f32 to vector<2x32xf32>
    %70 = vector.extract_strided_slice %59 {offsets = [2, 0], sizes = [1, 32], strides = [1, 1]} : vector<3x32xf32> to vector<1x32xf32>
    %71 = tpu.concatenate %70, %69 in 0 : vector<1x32xf32>, vector<2x32xf32> -> vector<3x32xf32>
    %72 = tpu.concatenate %59, %59, %62, %65, %59, %68, %71 in 1 : vector<3x32xf32>, vector<3x32xf32>, vector<3x32xf32>, vector<3x32xf32>, vector<3x32xf32>, vector<3x32xf32>, vector<3x32xf32> -> vector<3x224xf32>
    %73 = vector.extract_strided_slice %45 {offsets = [8, 0], sizes = [8, 64], strides = [1, 1]} : vector<16x64xf32> to vector<8x64xf32>
    %c0_33 = arith.constant 0 : index
    %c0_34 = arith.constant 0 : index
    %c0_35 = arith.constant 0 : index
    %74 = vector.load %arg9[%c0_33, %c0_34, %c0_35] : memref<2x3x8xbf16, #tpu.memory_space<vmem>>, vector<1x3x8xbf16>
    %75 = vector.shape_cast %74 : vector<1x3x8xbf16> to vector<3x8xbf16>
    %76 = vector.extract_strided_slice %73 {offsets = [0, 0], sizes = [8, 32], strides = [1, 1]} : vector<8x64xf32> to vector<8x32xf32>
    %77 = arith.truncf %76 : vector<8x32xf32> to vector<8x32xbf16>
    %cst_36 = arith.constant dense<0.000000e+00> : vector<3x32xf32>
    %78 = tpu.matmul %75, %77, %cst_36 {dimension_numbers = #tpu.dot_dimension_numbers<[1], [0], [0], [1], [0, 0, 1, 1], [], []>} : vector<3x8xbf16>, vector<8x32xbf16>, vector<3x32xf32> -> vector<3x32xf32>
    %79 = arith.addf %46, %78 : vector<3x32xf32>
    %c1_37 = arith.constant 1 : index
    %c0_38 = arith.constant 0 : index
    %c0_39 = arith.constant 0 : index
    %80 = vector.load %arg9[%c1_37, %c0_38, %c0_39] : memref<2x3x8xbf16, #tpu.memory_space<vmem>>, vector<1x3x8xbf16>
    %81 = vector.shape_cast %80 : vector<1x3x8xbf16> to vector<3x8xbf16>
    %82 = vector.extract_strided_slice %73 {offsets = [0, 32], sizes = [8, 32], strides = [1, 1]} : vector<8x64xf32> to vector<8x32xf32>
    %83 = arith.truncf %82 : vector<8x32xf32> to vector<8x32xbf16>
    %cst_40 = arith.constant dense<0.000000e+00> : vector<3x32xf32>
    %84 = tpu.matmul %81, %83, %cst_40 {dimension_numbers = #tpu.dot_dimension_numbers<[1], [0], [0], [1], [0, 0, 1, 1], [], []>} : vector<3x8xbf16>, vector<8x32xbf16>, vector<3x32xf32> -> vector<3x32xf32>
    %85 = arith.addf %79, %84 : vector<3x32xf32>
    %cst_41 = arith.constant 0.000000e+00 : f32
    %86 = vector.broadcast %cst_41 : f32 to vector<1x32xf32>
    %87 = vector.extract_strided_slice %85 {offsets = [1, 0], sizes = [2, 32], strides = [1, 1]} : vector<3x32xf32> to vector<2x32xf32>
    %88 = tpu.concatenate %87, %86 in 0 : vector<2x32xf32>, vector<1x32xf32> -> vector<3x32xf32>
    %cst_42 = arith.constant 0.000000e+00 : f32
    %89 = vector.broadcast %cst_42 : f32 to vector<1x32xf32>
    %90 = vector.extract_strided_slice %85 {offsets = [0, 0], sizes = [2, 32], strides = [1, 1]} : vector<3x32xf32> to vector<2x32xf32>
    %91 = tpu.concatenate %89, %90 in 0 : vector<1x32xf32>, vector<2x32xf32> -> vector<3x32xf32>
    %cst_43 = arith.constant 0.000000e+00 : f32
    %92 = vector.broadcast %cst_43 : f32 to vector<1x32xf32>
    %93 = vector.extract_strided_slice %85 {offsets = [1, 0], sizes = [2, 32], strides = [1, 1]} : vector<3x32xf32> to vector<2x32xf32>
    %94 = tpu.concatenate %93, %92 in 0 : vector<2x32xf32>, vector<1x32xf32> -> vector<3x32xf32>
    %cst_44 = arith.constant 0.000000e+00 : f32
    %95 = vector.broadcast %cst_44 : f32 to vector<2x32xf32>
    %96 = vector.extract_strided_slice %85 {offsets = [2, 0], sizes = [1, 32], strides = [1, 1]} : vector<3x32xf32> to vector<1x32xf32>
    %97 = tpu.concatenate %96, %95 in 0 : vector<1x32xf32>, vector<2x32xf32> -> vector<3x32xf32>
    %98 = tpu.concatenate %85, %85, %88, %91, %85, %94, %97 in 1 : vector<3x32xf32>, vector<3x32xf32>, vector<3x32xf32>, vector<3x32xf32>, vector<3x32xf32>, vector<3x32xf32>, vector<3x32xf32> -> vector<3x224xf32>
    %99 = tpu.concatenate %72, %98 in 0 : vector<3x224xf32>, vector<3x224xf32> -> vector<6x224xf32>
    %100 = arith.truncf %99 : vector<6x224xf32> to vector<6x224xbf16>
    %c0_45 = arith.constant 0 : index
    %c0_46 = arith.constant 0 : index
    %101 = vector.load %arg10[%c0_45, %c0_46] : memref<224x96xbf16, #tpu.memory_space<vmem>>, vector<224x96xbf16>
    %cst_47 = arith.constant dense<0.000000e+00> : vector<6x96xf32>
    %102 = tpu.matmul %100, %101, %cst_47 {dimension_numbers = #tpu.dot_dimension_numbers<[1], [0], [0], [1], [0, 0, 1, 1], [], []>} : vector<6x224xbf16>, vector<224x96xbf16>, vector<6x96xf32> -> vector<6x96xf32>
    %c0_48 = arith.constant 0 : index
    %c0_49 = arith.constant 0 : index
    %103 = vector.load %arg11[%c0_48, %c0_49] : memref<1x96xf32, #tpu.memory_space<vmem>>, vector<1x96xf32>
    %104 = vector.broadcast %103 : vector<1x96xf32> to vector<6x96xf32>
    %105 = arith.addf %102, %104 : vector<6x96xf32>
    %c0_50 = arith.constant 0 : index
    %c0_51 = arith.constant 0 : index
    %106 = vector.load %arg12[%c0_50, %c0_51] : memref<6x96xf32, #tpu.memory_space<vmem>>, vector<6x96xf32>
    tpu.vector_store %arg12[%c0_50, %c0_51], %105 {strides = array<i32>} : memref<6x96xf32, #tpu.memory_space<vmem>>, vector<6x96xf32>,
    return
  }
  func.func @transform_0(%arg0: i32) -> (i32, i32) {
    %c0_i32 = arith.constant 0 : i32
    %c0_i32_0 = arith.constant 0 : i32
    return %arg0, %c0_i32 : i32, i32
  }
  func.func @transform_1(%arg0: i32) -> (i32, i32) {
    %c0_i32 = arith.constant 0 : i32
    %c0_i32_0 = arith.constant 0 : i32
    %c0_i32_1 = arith.constant 0 : i32
    return %c0_i32, %c0_i32_0 : i32, i32
  }
  func.func @transform_2(%arg0: i32) -> (i32, i32) {
    %c0_i32 = arith.constant 0 : i32
    %c0_i32_0 = arith.constant 0 : i32
    %c0_i32_1 = arith.constant 0 : i32
    return %c0_i32, %c0_i32_0 : i32, i32
  }
  func.func @transform_3(%arg0: i32) -> (i32, i32) {
    %c0_i32 = arith.constant 0 : i32
    %c0_i32_0 = arith.constant 0 : i32
    %c0_i32_1 = arith.constant 0 : i32
    return %c0_i32, %c0_i32_0 : i32, i32
  }
  func.func @transform_4(%arg0: i32) -> (i32, i32) {
    %c0_i32 = arith.constant 0 : i32
    %c0_i32_0 = arith.constant 0 : i32
    %c0_i32_1 = arith.constant 0 : i32
    return %c0_i32, %c0_i32_0 : i32, i32
  }
  func.func @transform_5(%arg0: i32) -> (i32, i32) {
    %c0_i32 = arith.constant 0 : i32
    %c0_i32_0 = arith.constant 0 : i32
    %c0_i32_1 = arith.constant 0 : i32
    return %c0_i32, %c0_i32_0 : i32, i32
  }
  func.func @transform_6(%arg0: i32) -> (i32, i32) {
    %c0_i32 = arith.constant 0 : i32
    %c0_i32_0 = arith.constant 0 : i32
    %c0_i32_1 = arith.constant 0 : i32
    return %c0_i32, %c0_i32_0 : i32, i32
  }
  func.func @transform_7(%arg0: i32) -> (i32, i32) {
    %c0_i32 = arith.constant 0 : i32
    %c0_i32_0 = arith.constant 0 : i32
    %c0_i32_1 = arith.constant 0 : i32
    return %c0_i32, %c0_i32_0 : i32, i32
  }
  func.func @transform_8(%arg0: i32) -> (i32, i32, i32) {
    %c0_i32 = arith.constant 0 : i32
    %c0_i32_0 = arith.constant 0 : i32
    %c0_i32_1 = arith.constant 0 : i32
    %c0_i32_2 = arith.constant 0 : i32
    return %c0_i32, %c0_i32_0, %c0_i32_1 : i32, i32, i32
  }
  func.func @transform_9(%arg0: i32) -> (i32, i32) {
    %c0_i32 = arith.constant 0 : i32
    %c0_i32_0 = arith.constant 0 : i32
    %c0_i32_1 = arith.constant 0 : i32
    return %c0_i32, %c0_i32_0 : i32, i32
  }
  func.func @transform_10(%arg0: i32) -> (i32, i32) {
    %c0_i32 = arith.constant 0 : i32
    %c0_i32_0 = arith.constant 0 : i32
    %c0_i32_1 = arith.constant 0 : i32
    return %c0_i32, %c0_i32_0 : i32, i32
  }
  func.func @transform_11(%arg0: i32) -> (i32, i32) {
    %c0_i32 = arith.constant 0 : i32
    %c0_i32_0 = arith.constant 0 : i32
    return %arg0, %c0_i32 : i32, i32
  }
}

module attributes {stable_mosaic.version = 11 : i64} {
  func.func @_encoder_kernel(%arg0: i32, %arg1: i32, %arg2: memref<6x96xf32, #tpu.memory_space<vmem>>, %arg3: memref<1x1x96xf32, #tpu.memory_space<vmem>>, %arg4: memref<1x1x96xf32, #tpu.memory_space<vmem>>, %arg5: memref<1x96x288xbf16, #tpu.memory_space<vmem>>, %arg6: memref<1x96x96xbf16, #tpu.memory_space<vmem>>, %arg7: memref<1x1x96xf32, #tpu.memory_space<vmem>>, %arg8: memref<1x1x96xf32, #tpu.memory_space<vmem>>, %arg9: memref<1x1x96xf32, #tpu.memory_space<vmem>>, %arg10: memref<1x96x384xbf16, #tpu.memory_space<vmem>>, %arg11: memref<1x1x384xf32, #tpu.memory_space<vmem>>, %arg12: memref<1x384x96xbf16, #tpu.memory_space<vmem>>, %arg13: memref<1x1x96xf32, #tpu.memory_space<vmem>>, %arg14: memref<4x3xbf16, #tpu.memory_space<vmem>>, %arg15: memref<3x4xbf16, #tpu.memory_space<vmem>>, %arg16: memref<96x8xf32, #tpu.memory_space<vmem>>, %arg17: memref<8x96xf32, #tpu.memory_space<vmem>>, %arg18: memref<6x96xf32, #tpu.memory_space<vmem>>) attributes {dimension_semantics = [#tpu.dimension_semantics<parallel>, #tpu.dimension_semantics<arbitrary>], iteration_bounds = array<i64: 1, 2>, scalar_prefetch = 0 : i64, scratch_operands = 0 : i64, tpu.core_type = #tpu.core_type<tc>, window_params = [{transform_indices = @transform_0, window_bounds = array<i64: 6, 96>}, {transform_indices = @transform_1, window_bounds = array<i64: 1, 1, 96>}, {transform_indices = @transform_2, window_bounds = array<i64: 1, 1, 96>}, {transform_indices = @transform_3, window_bounds = array<i64: 1, 96, 288>}, {transform_indices = @transform_4, window_bounds = array<i64: 1, 96, 96>}, {transform_indices = @transform_5, window_bounds = array<i64: 1, 1, 96>}, {transform_indices = @transform_6, window_bounds = array<i64: 1, 1, 96>}, {transform_indices = @transform_7, window_bounds = array<i64: 1, 1, 96>}, {transform_indices = @transform_8, window_bounds = array<i64: 1, 96, 384>}, {transform_indices = @transform_9, window_bounds = array<i64: 1, 1, 384>}, {transform_indices = @transform_10, window_bounds = array<i64: 1, 384, 96>}, {transform_indices = @transform_11, window_bounds = array<i64: 1, 1, 96>}, {pipeline_mode = #tpu.pipeline_mode<synchronous>, transform_indices = @transform_12, window_bounds = array<i64: 4, 3>}, {pipeline_mode = #tpu.pipeline_mode<synchronous>, transform_indices = @transform_13, window_bounds = array<i64: 3, 4>}, {pipeline_mode = #tpu.pipeline_mode<synchronous>, transform_indices = @transform_14, window_bounds = array<i64: 96, 8>}, {pipeline_mode = #tpu.pipeline_mode<synchronous>, transform_indices = @transform_15, window_bounds = array<i64: 8, 96>}, {transform_indices = @transform_16, window_bounds = array<i64: 6, 96>}]} {
    %c0_i32 = arith.constant 0 : i32
    %0 = arith.cmpi eq, %arg1, %c0_i32 : i32
    %1 = arith.extui %0 : i1 to i32
    %c0_i32_0 = arith.constant 0 : i32
    %2 = arith.cmpi ne, %1, %c0_i32_0 : i32
    scf.if %2 {
      %c0_80 = arith.constant 0 : index
      %c0_81 = arith.constant 0 : index
      %165 = vector.load %arg2[%c0_80, %c0_81] : memref<6x96xf32, #tpu.memory_space<vmem>>, vector<6x96xf32>
      %c0_82 = arith.constant 0 : index
      %c0_83 = arith.constant 0 : index
      %166 = vector.load %arg18[%c0_82, %c0_83] : memref<6x96xf32, #tpu.memory_space<vmem>>, vector<6x96xf32>
      tpu.vector_store %arg18[%c0_82, %c0_83], %165 {strides = array<i32>} : memref<6x96xf32, #tpu.memory_space<vmem>>, vector<6x96xf32>,
    } else {
    }
    %c0 = arith.constant 0 : index
    %c0_1 = arith.constant 0 : index
    %3 = vector.load %arg18[%c0, %c0_1] : memref<6x96xf32, #tpu.memory_space<vmem>>, vector<6x96xf32>
    %c0_2 = arith.constant 0 : index
    %c0_3 = arith.constant 0 : index
    %c0_4 = arith.constant 0 : index
    %4 = vector.load %arg3[%c0_2, %c0_3, %c0_4] : memref<1x1x96xf32, #tpu.memory_space<vmem>>, vector<1x1x96xf32>
    %5 = vector.shape_cast %4 : vector<1x1x96xf32> to vector<1x96xf32>
    %c0_5 = arith.constant 0 : index
    %c0_6 = arith.constant 0 : index
    %c0_7 = arith.constant 0 : index
    %6 = vector.load %arg4[%c0_5, %c0_6, %c0_7] : memref<1x1x96xf32, #tpu.memory_space<vmem>>, vector<1x1x96xf32>
    %7 = vector.shape_cast %6 : vector<1x1x96xf32> to vector<1x96xf32>
    %cst = arith.constant dense<0.000000e+00> : vector<6xf32>
    %8 = vector.multi_reduction <add>, %3, %cst [1] : vector<6x96xf32> to vector<6xf32>
    %9 = vector.shape_cast %8 : vector<6xf32> to vector<6x1xf32>
    %cst_8 = arith.constant 9.600000e+01 : f32
    %10 = vector.broadcast %cst_8 : f32 to vector<6x1xf32>
    %11 = arith.divf %9, %10 : vector<6x1xf32>
    %12 = vector.broadcast %11 : vector<6x1xf32> to vector<6x96xf32>
    %13 = arith.subf %3, %12 : vector<6x96xf32>
    %14 = arith.mulf %13, %13 : vector<6x96xf32>
    %cst_9 = arith.constant dense<0.000000e+00> : vector<6xf32>
    %15 = vector.multi_reduction <add>, %14, %cst_9 [1] : vector<6x96xf32> to vector<6xf32>
    %16 = vector.shape_cast %15 : vector<6xf32> to vector<6x1xf32>
    %cst_10 = arith.constant 9.600000e+01 : f32
    %17 = vector.broadcast %cst_10 : f32 to vector<6x1xf32>
    %18 = arith.divf %16, %17 : vector<6x1xf32>
    %cst_11 = arith.constant 9.99999974E-6 : f32
    %19 = vector.broadcast %cst_11 : f32 to vector<6x1xf32>
    %20 = arith.addf %18, %19 : vector<6x1xf32>
    %21 = math.rsqrt %20 : vector<6x1xf32>
    %22 = vector.broadcast %21 : vector<6x1xf32> to vector<6x96xf32>
    %23 = arith.mulf %13, %22 : vector<6x96xf32>
    %24 = vector.broadcast %5 : vector<1x96xf32> to vector<6x96xf32>
    %25 = arith.mulf %23, %24 : vector<6x96xf32>
    %26 = vector.broadcast %7 : vector<1x96xf32> to vector<6x96xf32>
    %27 = arith.addf %25, %26 : vector<6x96xf32>
    %28 = arith.truncf %27 : vector<6x96xf32> to vector<6x96xbf16>
    %c0_12 = arith.constant 0 : index
    %c0_13 = arith.constant 0 : index
    %c0_14 = arith.constant 0 : index
    %29 = vector.load %arg5[%c0_12, %c0_13, %c0_14] : memref<1x96x288xbf16, #tpu.memory_space<vmem>>, vector<1x96x288xbf16>
    %30 = vector.shape_cast %29 : vector<1x96x288xbf16> to vector<96x288xbf16>
    %cst_15 = arith.constant dense<0.000000e+00> : vector<6x288xf32>
    %31 = tpu.matmul %28, %30, %cst_15 {dimension_numbers = #tpu.dot_dimension_numbers<[1], [0], [0], [1], [0, 0, 1, 1], [], []>} : vector<6x96xbf16>, vector<96x288xbf16>, vector<6x288xf32> -> vector<6x288xf32>
    %c0_16 = arith.constant 0 : index
    %c0_17 = arith.constant 0 : index
    %32 = vector.load %arg14[%c0_16, %c0_17] : memref<4x3xbf16, #tpu.memory_space<vmem>>, vector<4x3xbf16>
    %c0_18 = arith.constant 0 : index
    %c0_19 = arith.constant 0 : index
    %33 = vector.load %arg15[%c0_18, %c0_19] : memref<3x4xbf16, #tpu.memory_space<vmem>>, vector<3x4xbf16>
    %34 = vector.extract_strided_slice %31 {offsets = [0, 0], sizes = [3, 288], strides = [1, 1]} : vector<6x288xf32> to vector<3x288xf32>
    %35 = arith.truncf %34 : vector<3x288xf32> to vector<3x288xbf16>
    %cst_20 = arith.constant dense<0.000000e+00> : vector<4x288xf32>
    %36 = tpu.matmul %32, %35, %cst_20 {dimension_numbers = #tpu.dot_dimension_numbers<[1], [0], [0], [1], [0, 0, 1, 1], [], []>} : vector<4x3xbf16>, vector<3x288xbf16>, vector<4x288xf32> -> vector<4x288xf32>
    %37 = vector.extract_strided_slice %36 {offsets = [0, 0], sizes = [4, 96], strides = [1, 1]} : vector<4x288xf32> to vector<4x96xf32>
    %38 = vector.extract_strided_slice %36 {offsets = [0, 96], sizes = [4, 96], strides = [1, 1]} : vector<4x288xf32> to vector<4x96xf32>
    %39 = vector.extract_strided_slice %36 {offsets = [0, 192], sizes = [4, 96], strides = [1, 1]} : vector<4x288xf32> to vector<4x96xf32>
    %40 = vector.extract_strided_slice %37 {offsets = [0, 0], sizes = [2, 96], strides = [1, 1]} : vector<4x96xf32> to vector<2x96xf32>
    %41 = vector.extract_strided_slice %38 {offsets = [0, 0], sizes = [2, 96], strides = [1, 1]} : vector<4x96xf32> to vector<2x96xf32>
    %42 = arith.mulf %40, %41 : vector<2x96xf32>
    %43 = vector.extract_strided_slice %37 {offsets = [2, 0], sizes = [2, 96], strides = [1, 1]} : vector<4x96xf32> to vector<2x96xf32>
    %44 = vector.extract_strided_slice %38 {offsets = [2, 0], sizes = [2, 96], strides = [1, 1]} : vector<4x96xf32> to vector<2x96xf32>
    %45 = arith.mulf %43, %44 : vector<2x96xf32>
    %46 = arith.addf %42, %45 : vector<2x96xf32>
    %c0_21 = arith.constant 0 : index
    %c0_22 = arith.constant 0 : index
    %47 = vector.load %arg16[%c0_21, %c0_22] : memref<96x8xf32, #tpu.memory_space<vmem>>, vector<96x8xf32>
    %cst_23 = arith.constant dense<0.000000e+00> : vector<2x8xf32>
    %48 = tpu.matmul %46, %47, %cst_23 {dimension_numbers = #tpu.dot_dimension_numbers<[1], [0], [0], [1], [0, 0, 1, 1], [], []>} : vector<2x96xf32>, vector<96x8xf32>, vector<2x8xf32> -> vector<2x8xf32>
    %cst_24 = arith.constant 0.288675129 : f32
    %49 = vector.broadcast %cst_24 : f32 to vector<2x8xf32>
    %50 = arith.mulf %48, %49 : vector<2x8xf32>
    %cst_25 = arith.constant dense<0xFF800000> : vector<8xf32>
    %51 = vector.multi_reduction <maximumf>, %50, %cst_25 [0] : vector<2x8xf32> to vector<8xf32>
    %52 = vector.shape_cast %51 : vector<8xf32> to vector<1x8xf32>
    %53 = vector.broadcast %52 : vector<1x8xf32> to vector<2x8xf32>
    %54 = arith.subf %50, %53 : vector<2x8xf32>
    %55 = math.exp %54 : vector<2x8xf32>
    %cst_26 = arith.constant dense<0.000000e+00> : vector<8xf32>
    %56 = vector.multi_reduction <add>, %55, %cst_26 [0] : vector<2x8xf32> to vector<8xf32>
    %57 = vector.shape_cast %56 : vector<8xf32> to vector<1x8xf32>
    %58 = tpu.reciprocal %57 {approx = true} : vector<1x8xf32> -> vector<1x8xf32>
    %59 = vector.broadcast %58 : vector<1x8xf32> to vector<2x8xf32>
    %60 = arith.mulf %55, %59 : vector<2x8xf32>
    %c0_27 = arith.constant 0 : index
    %c0_28 = arith.constant 0 : index
    %61 = vector.load %arg17[%c0_27, %c0_28] : memref<8x96xf32, #tpu.memory_space<vmem>>, vector<8x96xf32>
    %cst_29 = arith.constant dense<0.000000e+00> : vector<2x96xf32>
    %62 = tpu.matmul %60, %61, %cst_29 {dimension_numbers = #tpu.dot_dimension_numbers<[1], [0], [0], [1], [0, 0, 1, 1], [], []>} : vector<2x8xf32>, vector<8x96xf32>, vector<2x96xf32> -> vector<2x96xf32>
    %63 = tpu.concatenate %62, %62 in 0 : vector<2x96xf32>, vector<2x96xf32> -> vector<4x96xf32>
    %64 = arith.mulf %63, %39 : vector<4x96xf32>
    %65 = arith.truncf %64 : vector<4x96xf32> to vector<4x96xbf16>
    %cst_30 = arith.constant dense<0.000000e+00> : vector<3x96xf32>
    %66 = tpu.matmul %33, %65, %cst_30 {dimension_numbers = #tpu.dot_dimension_numbers<[1], [0], [0], [1], [0, 0, 1, 1], [], []>} : vector<3x4xbf16>, vector<4x96xbf16>, vector<3x96xf32> -> vector<3x96xf32>
    %67 = vector.extract_strided_slice %31 {offsets = [3, 0], sizes = [3, 288], strides = [1, 1]} : vector<6x288xf32> to vector<3x288xf32>
    %68 = arith.truncf %67 : vector<3x288xf32> to vector<3x288xbf16>
    %cst_31 = arith.constant dense<0.000000e+00> : vector<4x288xf32>
    %69 = tpu.matmul %32, %68, %cst_31 {dimension_numbers = #tpu.dot_dimension_numbers<[1], [0], [0], [1], [0, 0, 1, 1], [], []>} : vector<4x3xbf16>, vector<3x288xbf16>, vector<4x288xf32> -> vector<4x288xf32>
    %70 = vector.extract_strided_slice %69 {offsets = [0, 0], sizes = [4, 96], strides = [1, 1]} : vector<4x288xf32> to vector<4x96xf32>
    %71 = vector.extract_strided_slice %69 {offsets = [0, 96], sizes = [4, 96], strides = [1, 1]} : vector<4x288xf32> to vector<4x96xf32>
    %72 = vector.extract_strided_slice %69 {offsets = [0, 192], sizes = [4, 96], strides = [1, 1]} : vector<4x288xf32> to vector<4x96xf32>
    %73 = vector.extract_strided_slice %70 {offsets = [0, 0], sizes = [2, 96], strides = [1, 1]} : vector<4x96xf32> to vector<2x96xf32>
    %74 = vector.extract_strided_slice %71 {offsets = [0, 0], sizes = [2, 96], strides = [1, 1]} : vector<4x96xf32> to vector<2x96xf32>
    %75 = arith.mulf %73, %74 : vector<2x96xf32>
    %76 = vector.extract_strided_slice %70 {offsets = [2, 0], sizes = [2, 96], strides = [1, 1]} : vector<4x96xf32> to vector<2x96xf32>
    %77 = vector.extract_strided_slice %71 {offsets = [2, 0], sizes = [2, 96], strides = [1, 1]} : vector<4x96xf32> to vector<2x96xf32>
    %78 = arith.mulf %76, %77 : vector<2x96xf32>
    %79 = arith.addf %75, %78 : vector<2x96xf32>
    %c0_32 = arith.constant 0 : index
    %c0_33 = arith.constant 0 : index
    %80 = vector.load %arg16[%c0_32, %c0_33] : memref<96x8xf32, #tpu.memory_space<vmem>>, vector<96x8xf32>
    %cst_34 = arith.constant dense<0.000000e+00> : vector<2x8xf32>
    %81 = tpu.matmul %79, %80, %cst_34 {dimension_numbers = #tpu.dot_dimension_numbers<[1], [0], [0], [1], [0, 0, 1, 1], [], []>} : vector<2x96xf32>, vector<96x8xf32>, vector<2x8xf32> -> vector<2x8xf32>
    %cst_35 = arith.constant 0.288675129 : f32
    %82 = vector.broadcast %cst_35 : f32 to vector<2x8xf32>
    %83 = arith.mulf %81, %82 : vector<2x8xf32>
    %cst_36 = arith.constant dense<0xFF800000> : vector<8xf32>
    %84 = vector.multi_reduction <maximumf>, %83, %cst_36 [0] : vector<2x8xf32> to vector<8xf32>
    %85 = vector.shape_cast %84 : vector<8xf32> to vector<1x8xf32>
    %86 = vector.broadcast %85 : vector<1x8xf32> to vector<2x8xf32>
    %87 = arith.subf %83, %86 : vector<2x8xf32>
    %88 = math.exp %87 : vector<2x8xf32>
    %cst_37 = arith.constant dense<0.000000e+00> : vector<8xf32>
    %89 = vector.multi_reduction <add>, %88, %cst_37 [0] : vector<2x8xf32> to vector<8xf32>
    %90 = vector.shape_cast %89 : vector<8xf32> to vector<1x8xf32>
    %91 = tpu.reciprocal %90 {approx = true} : vector<1x8xf32> -> vector<1x8xf32>
    %92 = vector.broadcast %91 : vector<1x8xf32> to vector<2x8xf32>
    %93 = arith.mulf %88, %92 : vector<2x8xf32>
    %c0_38 = arith.constant 0 : index
    %c0_39 = arith.constant 0 : index
    %94 = vector.load %arg17[%c0_38, %c0_39] : memref<8x96xf32, #tpu.memory_space<vmem>>, vector<8x96xf32>
    %cst_40 = arith.constant dense<0.000000e+00> : vector<2x96xf32>
    %95 = tpu.matmul %93, %94, %cst_40 {dimension_numbers = #tpu.dot_dimension_numbers<[1], [0], [0], [1], [0, 0, 1, 1], [], []>} : vector<2x8xf32>, vector<8x96xf32>, vector<2x96xf32> -> vector<2x96xf32>
    %96 = tpu.concatenate %95, %95 in 0 : vector<2x96xf32>, vector<2x96xf32> -> vector<4x96xf32>
    %97 = arith.mulf %96, %72 : vector<4x96xf32>
    %98 = arith.truncf %97 : vector<4x96xf32> to vector<4x96xbf16>
    %cst_41 = arith.constant dense<0.000000e+00> : vector<3x96xf32>
    %99 = tpu.matmul %33, %98, %cst_41 {dimension_numbers = #tpu.dot_dimension_numbers<[1], [0], [0], [1], [0, 0, 1, 1], [], []>} : vector<3x4xbf16>, vector<4x96xbf16>, vector<3x96xf32> -> vector<3x96xf32>
    %100 = tpu.concatenate %66, %99 in 0 : vector<3x96xf32>, vector<3x96xf32> -> vector<6x96xf32>
    %101 = arith.truncf %100 : vector<6x96xf32> to vector<6x96xbf16>
    %c0_42 = arith.constant 0 : index
    %c0_43 = arith.constant 0 : index
    %c0_44 = arith.constant 0 : index
    %102 = vector.load %arg6[%c0_42, %c0_43, %c0_44] : memref<1x96x96xbf16, #tpu.memory_space<vmem>>, vector<1x96x96xbf16>
    %103 = vector.shape_cast %102 : vector<1x96x96xbf16> to vector<96x96xbf16>
    %cst_45 = arith.constant dense<0.000000e+00> : vector<6x96xf32>
    %104 = tpu.matmul %101, %103, %cst_45 {dimension_numbers = #tpu.dot_dimension_numbers<[1], [0], [0], [1], [0, 0, 1, 1], [], []>} : vector<6x96xbf16>, vector<96x96xbf16>, vector<6x96xf32> -> vector<6x96xf32>
    %105 = arith.addf %3, %104 : vector<6x96xf32>
    %c0_46 = arith.constant 0 : index
    %c0_47 = arith.constant 0 : index
    %c0_48 = arith.constant 0 : index
    %106 = vector.load %arg7[%c0_46, %c0_47, %c0_48] : memref<1x1x96xf32, #tpu.memory_space<vmem>>, vector<1x1x96xf32>
    %107 = vector.shape_cast %106 : vector<1x1x96xf32> to vector<1x96xf32>
    %108 = vector.broadcast %107 : vector<1x96xf32> to vector<6x96xf32>
    %109 = arith.addf %105, %108 : vector<6x96xf32>
    %c0_49 = arith.constant 0 : index
    %c0_50 = arith.constant 0 : index
    %c0_51 = arith.constant 0 : index
    %110 = vector.load %arg8[%c0_49, %c0_50, %c0_51] : memref<1x1x96xf32, #tpu.memory_space<vmem>>, vector<1x1x96xf32>
    %111 = vector.shape_cast %110 : vector<1x1x96xf32> to vector<1x96xf32>
    %c0_52 = arith.constant 0 : index
    %c0_53 = arith.constant 0 : index
    %c0_54 = arith.constant 0 : index
    %112 = vector.load %arg9[%c0_52, %c0_53, %c0_54] : memref<1x1x96xf32, #tpu.memory_space<vmem>>, vector<1x1x96xf32>
    %113 = vector.shape_cast %112 : vector<1x1x96xf32> to vector<1x96xf32>
    %cst_55 = arith.constant dense<0.000000e+00> : vector<6xf32>
    %114 = vector.multi_reduction <add>, %109, %cst_55 [1] : vector<6x96xf32> to vector<6xf32>
    %115 = vector.shape_cast %114 : vector<6xf32> to vector<6x1xf32>
    %cst_56 = arith.constant 9.600000e+01 : f32
    %116 = vector.broadcast %cst_56 : f32 to vector<6x1xf32>
    %117 = arith.divf %115, %116 : vector<6x1xf32>
    %118 = vector.broadcast %117 : vector<6x1xf32> to vector<6x96xf32>
    %119 = arith.subf %109, %118 : vector<6x96xf32>
    %120 = arith.mulf %119, %119 : vector<6x96xf32>
    %cst_57 = arith.constant dense<0.000000e+00> : vector<6xf32>
    %121 = vector.multi_reduction <add>, %120, %cst_57 [1] : vector<6x96xf32> to vector<6xf32>
    %122 = vector.shape_cast %121 : vector<6xf32> to vector<6x1xf32>
    %cst_58 = arith.constant 9.600000e+01 : f32
    %123 = vector.broadcast %cst_58 : f32 to vector<6x1xf32>
    %124 = arith.divf %122, %123 : vector<6x1xf32>
    %cst_59 = arith.constant 9.99999974E-6 : f32
    %125 = vector.broadcast %cst_59 : f32 to vector<6x1xf32>
    %126 = arith.addf %124, %125 : vector<6x1xf32>
    %127 = math.rsqrt %126 : vector<6x1xf32>
    %128 = vector.broadcast %127 : vector<6x1xf32> to vector<6x96xf32>
    %129 = arith.mulf %119, %128 : vector<6x96xf32>
    %130 = vector.broadcast %111 : vector<1x96xf32> to vector<6x96xf32>
    %131 = arith.mulf %129, %130 : vector<6x96xf32>
    %132 = vector.broadcast %113 : vector<1x96xf32> to vector<6x96xf32>
    %133 = arith.addf %131, %132 : vector<6x96xf32>
    %134 = arith.truncf %133 : vector<6x96xf32> to vector<6x96xbf16>
    %c0_60 = arith.constant 0 : index
    %c0_61 = arith.constant 0 : index
    %c0_62 = arith.constant 0 : index
    %135 = vector.load %arg10[%c0_60, %c0_61, %c0_62] : memref<1x96x384xbf16, #tpu.memory_space<vmem>>, vector<1x96x384xbf16>
    %136 = vector.shape_cast %135 : vector<1x96x384xbf16> to vector<96x384xbf16>
    %cst_63 = arith.constant dense<0.000000e+00> : vector<6x384xf32>
    %137 = tpu.matmul %134, %136, %cst_63 {dimension_numbers = #tpu.dot_dimension_numbers<[1], [0], [0], [1], [0, 0, 1, 1], [], []>} : vector<6x96xbf16>, vector<96x384xbf16>, vector<6x384xf32> -> vector<6x384xf32>
    %c0_64 = arith.constant 0 : index
    %c0_65 = arith.constant 0 : index
    %c0_66 = arith.constant 0 : index
    %138 = vector.load %arg11[%c0_64, %c0_65, %c0_66] : memref<1x1x384xf32, #tpu.memory_space<vmem>>, vector<1x1x384xf32>
    %139 = vector.shape_cast %138 : vector<1x1x384xf32> to vector<1x384xf32>
    %140 = vector.broadcast %139 : vector<1x384xf32> to vector<6x384xf32>
    %141 = arith.addf %137, %140 : vector<6x384xf32>
    %cst_67 = arith.constant 5.000000e-01 : f32
    %142 = vector.broadcast %cst_67 : f32 to vector<6x384xf32>
    %143 = arith.mulf %142, %141 : vector<6x384xf32>
    %cst_68 = arith.constant 4.471500e-02 : f32
    %144 = vector.broadcast %cst_68 : f32 to vector<6x384xf32>
    %145 = arith.mulf %144, %141 : vector<6x384xf32>
    %146 = arith.mulf %145, %141 : vector<6x384xf32>
    %147 = arith.mulf %146, %141 : vector<6x384xf32>
    %148 = arith.addf %141, %147 : vector<6x384xf32>
    %cst_69 = arith.constant 0.797884583 : f32
    %149 = vector.broadcast %cst_69 : f32 to vector<6x384xf32>
    %150 = arith.mulf %149, %148 : vector<6x384xf32>
    %151 = math.tanh %150 : vector<6x384xf32>
    %cst_70 = arith.constant 1.000000e+00 : f32
    %152 = vector.broadcast %cst_70 : f32 to vector<6x384xf32>
    %153 = arith.addf %152, %151 : vector<6x384xf32>
    %154 = arith.mulf %143, %153 : vector<6x384xf32>
    %155 = arith.truncf %154 : vector<6x384xf32> to vector<6x384xbf16>
    %c0_71 = arith.constant 0 : index
    %c0_72 = arith.constant 0 : index
    %c0_73 = arith.constant 0 : index
    %156 = vector.load %arg12[%c0_71, %c0_72, %c0_73] : memref<1x384x96xbf16, #tpu.memory_space<vmem>>, vector<1x384x96xbf16>
    %157 = vector.shape_cast %156 : vector<1x384x96xbf16> to vector<384x96xbf16>
    %cst_74 = arith.constant dense<0.000000e+00> : vector<6x96xf32>
    %158 = tpu.matmul %155, %157, %cst_74 {dimension_numbers = #tpu.dot_dimension_numbers<[1], [0], [0], [1], [0, 0, 1, 1], [], []>} : vector<6x384xbf16>, vector<384x96xbf16>, vector<6x96xf32> -> vector<6x96xf32>
    %c0_75 = arith.constant 0 : index
    %c0_76 = arith.constant 0 : index
    %c0_77 = arith.constant 0 : index
    %159 = vector.load %arg13[%c0_75, %c0_76, %c0_77] : memref<1x1x96xf32, #tpu.memory_space<vmem>>, vector<1x1x96xf32>
    %160 = vector.shape_cast %159 : vector<1x1x96xf32> to vector<1x96xf32>
    %161 = vector.broadcast %160 : vector<1x96xf32> to vector<6x96xf32>
    %162 = arith.addf %158, %161 : vector<6x96xf32>
    %163 = arith.addf %109, %162 : vector<6x96xf32>
    %c0_78 = arith.constant 0 : index
    %c0_79 = arith.constant 0 : index
    %164 = vector.load %arg18[%c0_78, %c0_79] : memref<6x96xf32, #tpu.memory_space<vmem>>, vector<6x96xf32>
    tpu.vector_store %arg18[%c0_78, %c0_79], %163 {strides = array<i32>} : memref<6x96xf32, #tpu.memory_space<vmem>>, vector<6x96xf32>,
    return
  }
  func.func @transform_0(%arg0: i32, %arg1: i32) -> (i32, i32) {
    %c0_i32 = arith.constant 0 : i32
    %c0_i32_0 = arith.constant 0 : i32
    return %arg0, %c0_i32 : i32, i32
  }
  func.func @transform_1(%arg0: i32, %arg1: i32) -> (i32, i32, i32) {
    %c0_i32 = arith.constant 0 : i32
    %c0_i32_0 = arith.constant 0 : i32
    %c0_i32_1 = arith.constant 0 : i32
    return %arg1, %c0_i32, %c0_i32_0 : i32, i32, i32
  }
  func.func @transform_2(%arg0: i32, %arg1: i32) -> (i32, i32, i32) {
    %c0_i32 = arith.constant 0 : i32
    %c0_i32_0 = arith.constant 0 : i32
    %c0_i32_1 = arith.constant 0 : i32
    return %arg1, %c0_i32, %c0_i32_0 : i32, i32, i32
  }
  func.func @transform_3(%arg0: i32, %arg1: i32) -> (i32, i32, i32) {
    %c0_i32 = arith.constant 0 : i32
    %c0_i32_0 = arith.constant 0 : i32
    %c0_i32_1 = arith.constant 0 : i32
    return %arg1, %c0_i32, %c0_i32_0 : i32, i32, i32
  }
  func.func @transform_4(%arg0: i32, %arg1: i32) -> (i32, i32, i32) {
    %c0_i32 = arith.constant 0 : i32
    %c0_i32_0 = arith.constant 0 : i32
    %c0_i32_1 = arith.constant 0 : i32
    return %arg1, %c0_i32, %c0_i32_0 : i32, i32, i32
  }
  func.func @transform_5(%arg0: i32, %arg1: i32) -> (i32, i32, i32) {
    %c0_i32 = arith.constant 0 : i32
    %c0_i32_0 = arith.constant 0 : i32
    %c0_i32_1 = arith.constant 0 : i32
    return %arg1, %c0_i32, %c0_i32_0 : i32, i32, i32
  }
  func.func @transform_6(%arg0: i32, %arg1: i32) -> (i32, i32, i32) {
    %c0_i32 = arith.constant 0 : i32
    %c0_i32_0 = arith.constant 0 : i32
    %c0_i32_1 = arith.constant 0 : i32
    return %arg1, %c0_i32, %c0_i32_0 : i32, i32, i32
  }
  func.func @transform_7(%arg0: i32, %arg1: i32) -> (i32, i32, i32) {
    %c0_i32 = arith.constant 0 : i32
    %c0_i32_0 = arith.constant 0 : i32
    %c0_i32_1 = arith.constant 0 : i32
    return %arg1, %c0_i32, %c0_i32_0 : i32, i32, i32
  }
  func.func @transform_8(%arg0: i32, %arg1: i32) -> (i32, i32, i32) {
    %c0_i32 = arith.constant 0 : i32
    %c0_i32_0 = arith.constant 0 : i32
    %c0_i32_1 = arith.constant 0 : i32
    return %arg1, %c0_i32, %c0_i32_0 : i32, i32, i32
  }
  func.func @transform_9(%arg0: i32, %arg1: i32) -> (i32, i32, i32) {
    %c0_i32 = arith.constant 0 : i32
    %c0_i32_0 = arith.constant 0 : i32
    %c0_i32_1 = arith.constant 0 : i32
    return %arg1, %c0_i32, %c0_i32_0 : i32, i32, i32
  }
  func.func @transform_10(%arg0: i32, %arg1: i32) -> (i32, i32, i32) {
    %c0_i32 = arith.constant 0 : i32
    %c0_i32_0 = arith.constant 0 : i32
    %c0_i32_1 = arith.constant 0 : i32
    return %arg1, %c0_i32, %c0_i32_0 : i32, i32, i32
  }
  func.func @transform_11(%arg0: i32, %arg1: i32) -> (i32, i32, i32) {
    %c0_i32 = arith.constant 0 : i32
    %c0_i32_0 = arith.constant 0 : i32
    %c0_i32_1 = arith.constant 0 : i32
    return %arg1, %c0_i32, %c0_i32_0 : i32, i32, i32
  }
  func.func @transform_12(%arg0: i32, %arg1: i32) -> (i32, i32) {
    %c0_i32 = arith.constant 0 : i32
    %c0_i32_0 = arith.constant 0 : i32
    %c0_i32_1 = arith.constant 0 : i32
    return %c0_i32, %c0_i32_0 : i32, i32
  }
  func.func @transform_13(%arg0: i32, %arg1: i32) -> (i32, i32) {
    %c0_i32 = arith.constant 0 : i32
    %c0_i32_0 = arith.constant 0 : i32
    %c0_i32_1 = arith.constant 0 : i32
    return %c0_i32, %c0_i32_0 : i32, i32
  }
  func.func @transform_14(%arg0: i32, %arg1: i32) -> (i32, i32) {
    %c0_i32 = arith.constant 0 : i32
    %c0_i32_0 = arith.constant 0 : i32
    %c0_i32_1 = arith.constant 0 : i32
    return %c0_i32, %c0_i32_0 : i32, i32
  }
  func.func @transform_15(%arg0: i32, %arg1: i32) -> (i32, i32) {
    %c0_i32 = arith.constant 0 : i32
    %c0_i32_0 = arith.constant 0 : i32
    %c0_i32_1 = arith.constant 0 : i32
    return %c0_i32, %c0_i32_0 : i32, i32
  }
  func.func @transform_16(%arg0: i32, %arg1: i32) -> (i32, i32) {
    %c0_i32 = arith.constant 0 : i32
    %c0_i32_0 = arith.constant 0 : i32
    return %arg0, %c0_i32 : i32, i32
  }
}

module attributes {stable_mosaic.version = 11 : i64} {
  func.func @_head_kernel(%arg0: i32, %arg1: memref<6x96xf32, #tpu.memory_space<vmem>>, %arg2: memref<288x96xbf16, #tpu.memory_space<vmem>>, %arg3: memref<1x96xf32, #tpu.memory_space<vmem>>, %arg4: memref<1x96xf32, #tpu.memory_space<vmem>>, %arg5: memref<1x96xf32, #tpu.memory_space<vmem>>, %arg6: memref<96x128xbf16, #tpu.memory_space<vmem>>, %arg7: memref<1x128xf32, #tpu.memory_space<vmem>>, %arg8: memref<2x128xf32, #tpu.memory_space<vmem>>) attributes {dimension_semantics = [#tpu.dimension_semantics<parallel>], iteration_bounds = array<i64: 1>, scalar_prefetch = 0 : i64, scratch_operands = 0 : i64, tpu.core_type = #tpu.core_type<tc>, window_params = [{transform_indices = @transform_0, window_bounds = array<i64: 6, 96>}, {pipeline_mode = #tpu.pipeline_mode<synchronous>, transform_indices = @transform_1, window_bounds = array<i64: 288, 96>}, {pipeline_mode = #tpu.pipeline_mode<synchronous>, transform_indices = @transform_2, window_bounds = array<i64: 1, 96>}, {pipeline_mode = #tpu.pipeline_mode<synchronous>, transform_indices = @transform_3, window_bounds = array<i64: 1, 96>}, {pipeline_mode = #tpu.pipeline_mode<synchronous>, transform_indices = @transform_4, window_bounds = array<i64: 1, 96>}, {pipeline_mode = #tpu.pipeline_mode<synchronous>, transform_indices = @transform_5, window_bounds = array<i64: 96, 128>}, {pipeline_mode = #tpu.pipeline_mode<synchronous>, transform_indices = @transform_6, window_bounds = array<i64: 1, 128>}, {transform_indices = @transform_7, window_bounds = array<i64: 2, 128>}]} {
    %c0 = arith.constant 0 : index
    %c0_0 = arith.constant 0 : index
    %0 = vector.load %arg1[%c0, %c0_0] : memref<6x96xf32, #tpu.memory_space<vmem>>, vector<6x96xf32>
    %1 = vector.extract_strided_slice %0 {offsets = [0, 0], sizes = [3, 96], strides = [1, 1]} : vector<6x96xf32> to vector<3x96xf32>
    %cst = arith.constant 0.000000e+00 : f32
    %2 = vector.broadcast %cst : f32 to vector<1x96xf32>
    %3 = vector.extract_strided_slice %1 {offsets = [0, 0], sizes = [2, 96], strides = [1, 1]} : vector<3x96xf32> to vector<2x96xf32>
    %4 = tpu.concatenate %2, %3 in 0 : vector<1x96xf32>, vector<2x96xf32> -> vector<3x96xf32>
    %cst_1 = arith.constant 0.000000e+00 : f32
    %5 = vector.broadcast %cst_1 : f32 to vector<1x96xf32>
    %6 = vector.extract_strided_slice %1 {offsets = [1, 0], sizes = [2, 96], strides = [1, 1]} : vector<3x96xf32> to vector<2x96xf32>
    %7 = tpu.concatenate %6, %5 in 0 : vector<2x96xf32>, vector<1x96xf32> -> vector<3x96xf32>
    %8 = tpu.concatenate %4, %1, %7 in 1 : vector<3x96xf32>, vector<3x96xf32>, vector<3x96xf32> -> vector<3x288xf32>
    %9 = vector.extract_strided_slice %0 {offsets = [3, 0], sizes = [3, 96], strides = [1, 1]} : vector<6x96xf32> to vector<3x96xf32>
    %cst_2 = arith.constant 0.000000e+00 : f32
    %10 = vector.broadcast %cst_2 : f32 to vector<1x96xf32>
    %11 = vector.extract_strided_slice %9 {offsets = [0, 0], sizes = [2, 96], strides = [1, 1]} : vector<3x96xf32> to vector<2x96xf32>
    %12 = tpu.concatenate %10, %11 in 0 : vector<1x96xf32>, vector<2x96xf32> -> vector<3x96xf32>
    %cst_3 = arith.constant 0.000000e+00 : f32
    %13 = vector.broadcast %cst_3 : f32 to vector<1x96xf32>
    %14 = vector.extract_strided_slice %9 {offsets = [1, 0], sizes = [2, 96], strides = [1, 1]} : vector<3x96xf32> to vector<2x96xf32>
    %15 = tpu.concatenate %14, %13 in 0 : vector<2x96xf32>, vector<1x96xf32> -> vector<3x96xf32>
    %16 = tpu.concatenate %12, %9, %15 in 1 : vector<3x96xf32>, vector<3x96xf32>, vector<3x96xf32> -> vector<3x288xf32>
    %17 = tpu.concatenate %8, %16 in 0 : vector<3x288xf32>, vector<3x288xf32> -> vector<6x288xf32>
    %18 = arith.truncf %17 : vector<6x288xf32> to vector<6x288xbf16>
    %c0_4 = arith.constant 0 : index
    %c0_5 = arith.constant 0 : index
    %19 = vector.load %arg2[%c0_4, %c0_5] : memref<288x96xbf16, #tpu.memory_space<vmem>>, vector<288x96xbf16>
    %cst_6 = arith.constant dense<0.000000e+00> : vector<6x96xf32>
    %20 = tpu.matmul %18, %19, %cst_6 {dimension_numbers = #tpu.dot_dimension_numbers<[1], [0], [0], [1], [0, 0, 1, 1], [], []>} : vector<6x288xbf16>, vector<288x96xbf16>, vector<6x96xf32> -> vector<6x96xf32>
    %c0_7 = arith.constant 0 : index
    %c0_8 = arith.constant 0 : index
    %21 = vector.load %arg3[%c0_7, %c0_8] : memref<1x96xf32, #tpu.memory_space<vmem>>, vector<1x96xf32>
    %22 = vector.broadcast %21 : vector<1x96xf32> to vector<6x96xf32>
    %23 = arith.addf %20, %22 : vector<6x96xf32>
    %24 = arith.addf %0, %23 : vector<6x96xf32>
    %c0_9 = arith.constant 0 : index
    %c0_10 = arith.constant 0 : index
    %25 = vector.load %arg4[%c0_9, %c0_10] : memref<1x96xf32, #tpu.memory_space<vmem>>, vector<1x96xf32>
    %c0_11 = arith.constant 0 : index
    %c0_12 = arith.constant 0 : index
    %26 = vector.load %arg5[%c0_11, %c0_12] : memref<1x96xf32, #tpu.memory_space<vmem>>, vector<1x96xf32>
    %cst_13 = arith.constant dense<0.000000e+00> : vector<6xf32>
    %27 = vector.multi_reduction <add>, %24, %cst_13 [1] : vector<6x96xf32> to vector<6xf32>
    %28 = vector.shape_cast %27 : vector<6xf32> to vector<6x1xf32>
    %cst_14 = arith.constant 9.600000e+01 : f32
    %29 = vector.broadcast %cst_14 : f32 to vector<6x1xf32>
    %30 = arith.divf %28, %29 : vector<6x1xf32>
    %31 = vector.broadcast %30 : vector<6x1xf32> to vector<6x96xf32>
    %32 = arith.subf %24, %31 : vector<6x96xf32>
    %33 = arith.mulf %32, %32 : vector<6x96xf32>
    %cst_15 = arith.constant dense<0.000000e+00> : vector<6xf32>
    %34 = vector.multi_reduction <add>, %33, %cst_15 [1] : vector<6x96xf32> to vector<6xf32>
    %35 = vector.shape_cast %34 : vector<6xf32> to vector<6x1xf32>
    %cst_16 = arith.constant 9.600000e+01 : f32
    %36 = vector.broadcast %cst_16 : f32 to vector<6x1xf32>
    %37 = arith.divf %35, %36 : vector<6x1xf32>
    %cst_17 = arith.constant 9.99999974E-6 : f32
    %38 = vector.broadcast %cst_17 : f32 to vector<6x1xf32>
    %39 = arith.addf %37, %38 : vector<6x1xf32>
    %40 = math.rsqrt %39 : vector<6x1xf32>
    %41 = vector.broadcast %40 : vector<6x1xf32> to vector<6x96xf32>
    %42 = arith.mulf %32, %41 : vector<6x96xf32>
    %43 = vector.broadcast %25 : vector<1x96xf32> to vector<6x96xf32>
    %44 = arith.mulf %42, %43 : vector<6x96xf32>
    %45 = vector.broadcast %26 : vector<1x96xf32> to vector<6x96xf32>
    %46 = arith.addf %44, %45 : vector<6x96xf32>
    %47 = vector.extract_strided_slice %46 {offsets = [0, 0], sizes = [3, 96], strides = [1, 1]} : vector<6x96xf32> to vector<3x96xf32>
    %cst_18 = arith.constant dense<0.000000e+00> : vector<96xf32>
    %48 = vector.multi_reduction <add>, %47, %cst_18 [0] : vector<3x96xf32> to vector<96xf32>
    %49 = vector.shape_cast %48 : vector<96xf32> to vector<1x96xf32>
    %cst_19 = arith.constant 3.000000e+00 : f32
    %50 = vector.broadcast %cst_19 : f32 to vector<1x96xf32>
    %51 = arith.divf %49, %50 : vector<1x96xf32>
    %52 = vector.extract_strided_slice %46 {offsets = [3, 0], sizes = [3, 96], strides = [1, 1]} : vector<6x96xf32> to vector<3x96xf32>
    %cst_20 = arith.constant dense<0.000000e+00> : vector<96xf32>
    %53 = vector.multi_reduction <add>, %52, %cst_20 [0] : vector<3x96xf32> to vector<96xf32>
    %54 = vector.shape_cast %53 : vector<96xf32> to vector<1x96xf32>
    %cst_21 = arith.constant 3.000000e+00 : f32
    %55 = vector.broadcast %cst_21 : f32 to vector<1x96xf32>
    %56 = arith.divf %54, %55 : vector<1x96xf32>
    %57 = tpu.concatenate %51, %56 in 0 : vector<1x96xf32>, vector<1x96xf32> -> vector<2x96xf32>
    %58 = arith.truncf %57 : vector<2x96xf32> to vector<2x96xbf16>
    %c0_22 = arith.constant 0 : index
    %c0_23 = arith.constant 0 : index
    %59 = vector.load %arg6[%c0_22, %c0_23] : memref<96x128xbf16, #tpu.memory_space<vmem>>, vector<96x128xbf16>
    %cst_24 = arith.constant dense<0.000000e+00> : vector<2x128xf32>
    %60 = tpu.matmul %58, %59, %cst_24 {dimension_numbers = #tpu.dot_dimension_numbers<[1], [0], [0], [1], [0, 0, 1, 1], [], []>} : vector<2x96xbf16>, vector<96x128xbf16>, vector<2x128xf32> -> vector<2x128xf32>
    %c0_25 = arith.constant 0 : index
    %c0_26 = arith.constant 0 : index
    %61 = vector.load %arg7[%c0_25, %c0_26] : memref<1x128xf32, #tpu.memory_space<vmem>>, vector<1x128xf32>
    %62 = vector.broadcast %61 : vector<1x128xf32> to vector<2x128xf32>
    %63 = arith.addf %60, %62 : vector<2x128xf32>
    %c0_27 = arith.constant 0 : index
    %c0_28 = arith.constant 0 : index
    %64 = vector.load %arg8[%c0_27, %c0_28] : memref<2x128xf32, #tpu.memory_space<vmem>>, vector<2x128xf32>
    tpu.vector_store %arg8[%c0_27, %c0_28], %63 {strides = array<i32>} : memref<2x128xf32, #tpu.memory_space<vmem>>, vector<2x128xf32>,
    return
  }
  func.func @transform_0(%arg0: i32) -> (i32, i32) {
    %c0_i32 = arith.constant 0 : i32
    %c0_i32_0 = arith.constant 0 : i32
    return %arg0, %c0_i32 : i32, i32
  }
  func.func @transform_1(%arg0: i32) -> (i32, i32) {
    %c0_i32 = arith.constant 0 : i32
    %c0_i32_0 = arith.constant 0 : i32
    %c0_i32_1 = arith.constant 0 : i32
    return %c0_i32, %c0_i32_0 : i32, i32
  }
  func.func @transform_2(%arg0: i32) -> (i32, i32) {
    %c0_i32 = arith.constant 0 : i32
    %c0_i32_0 = arith.constant 0 : i32
    %c0_i32_1 = arith.constant 0 : i32
    return %c0_i32, %c0_i32_0 : i32, i32
  }
  func.func @transform_3(%arg0: i32) -> (i32, i32) {
    %c0_i32 = arith.constant 0 : i32
    %c0_i32_0 = arith.constant 0 : i32
    %c0_i32_1 = arith.constant 0 : i32
    return %c0_i32, %c0_i32_0 : i32, i32
  }
  func.func @transform_4(%arg0: i32) -> (i32, i32) {
    %c0_i32 = arith.constant 0 : i32
    %c0_i32_0 = arith.constant 0 : i32
    %c0_i32_1 = arith.constant 0 : i32
    return %c0_i32, %c0_i32_0 : i32, i32
  }
  func.func @transform_5(%arg0: i32) -> (i32, i32) {
    %c0_i32 = arith.constant 0 : i32
    %c0_i32_0 = arith.constant 0 : i32
    %c0_i32_1 = arith.constant 0 : i32
    return %c0_i32, %c0_i32_0 : i32, i32
  }
  func.func @transform_6(%arg0: i32) -> (i32, i32) {
    %c0_i32 = arith.constant 0 : i32
    %c0_i32_0 = arith.constant 0 : i32
    %c0_i32_1 = arith.constant 0 : i32
    return %c0_i32, %c0_i32_0 : i32, i32
  }
  func.func @transform_7(%arg0: i32) -> (i32, i32) {
    %c0_i32 = arith.constant 0 : i32
    %c0_i32_0 = arith.constant 0 : i32
    return %arg0, %c0_i32 : i32, i32
  }
}

</mosaic_0001>

<bundles_post_ra>
// kernel: forward.5
= control target key start
LH: loop header
LB: loop body
LE: loop exit
PB: predicated region body
PF: predicated region fallthrough
CT: control target
= control target key end

     0   :  { %12 = vsyncpa [#allocation3], 0  ;;  %s1074_s0 = inlined_call_operand.hbm [shape: f32[6,96], index: 0, kind: input, shape index: {}]   ;;  %s1075_s1 = inlined_call_operand.hbm [shape: bf16[288,96], index: 1, kind: input, shape index: {}]   ;;  %s1076_s2 = inlined_call_operand.hbm [shape: f32[1,96], index: 2, kind: input, shape index: {}]   ;;  %s1077_s3 = inlined_call_operand.hbm [shape: f32[1,96], index: 3, kind: input, shape index: {}]   ;;  %s1078_s4 = inlined_call_operand.hbm [shape: f32[1,96], index: 4, kind: input, shape index: {}]   ;;  %s1079_s5 = inlined_call_operand.hbm [shape: bf16[96,128], index: 5, kind: input, shape index: {}]   ;;  %s1080_s6 = inlined_call_operand.hbm [shape: f32[1,128], index: 6, kind: input, shape index: {}]   ;;  %s1081_s7 = inlined_call_operand.hbm [shape: f32[2,128], index: 7, kind: output, shape index: {}]  }
   0x1   :  { %13 = vsyncpa [#allocation6], 0 }
   0x2   :  { %14 = vsyncpa [#allocation9], 0 }
   0x3   :  { %15 = vsyncpa [#allocation12], 0 }
   0x4   :  { %16 = vsyncpa [#allocation4], 0  ;;  %s888_s24 = smov [#allocation5]   ;;  %s702_s28 = scalar_lea.hbm %s1075_s1, 2304 }
   0x5   :  { %s32_s25 = sshll.u32 %s888_s24, 4  ;;  %p703_p0 = scmp.ne.s32.totalorder %s1075_s1, %s702_s28  ;;  %s33_s25 = int_to_ptr.vmem [resolvable:$true] %s32_s25 }
   0x6   :  { %p706_p1 = scmp.lt.u32.totalorder %s702_s28, %s1075_s1 }
   0x8   :  { %p708_p2 = pnand %p706_p1, %p703_p0 }
   0xa   :  { %711 = shalt.err (!%p708_p2)
}
   0xb   :  { %s712_s10 = scalar_lea.vmem %s33_s25, 2304  ;;  %p717_p4 = scmp.lt.s32.totalorder %s33_s25, %s33_s25 }
   0xc   :  { %p713_p3 = scmp.ne.s32.totalorder %s33_s25, %s712_s10  ;;  %p718_p5 = scmp.lt.s32.totalorder %s712_s10, %s712_s10 }
   0xe   :  { %p719_p6 = por %p718_p5, %p717_p4 }
  0x10   :  { %p720_p7 = pnand %p719_p6, %p713_p3 }
  0x12   :  { %723 = shalt.err (!%p720_p7)
}
  0x13   :  { %s889_s11 = smov 64   ;;  %s890_s12 = smov 4  }
  0x14   :  { %38 = dma.hbm_to_vmem [thread:$0]  %s1075_s1, 2304, %s33_s25, [#allocation6], %s889_s11, %s889_s11, %s890_s12  }
  0x15   :  { %s891_s15 = smov [#allocation8]   ;;  %s892_s17 = smov [#allocation11]  }
  0x16   :  { %s55_s16 = sshll.u32 %s891_s15, 4  ;;  %s74_s18 = sshll.u32 %s892_s17, 4  ;;  %s56_s16 = int_to_ptr.vmem [resolvable:$true] %s55_s16  ;;  %s75_s18 = int_to_ptr.vmem [resolvable:$true] %s74_s18 }
  0x17   :  { %s724_s21 = scalar_lea.hbm %s1077_s3, 16 }
  0x18   :  { %p725_p8 = scmp.ne.s32.totalorder %s1077_s3, %s724_s21  ;;  %p728_p9 = scmp.lt.u32.totalorder %s724_s21, %s1077_s3 }
  0x1a   :  { %p730_p10 = pnand %p728_p9, %p725_p8 }
  0x1c   :  { %733 = shalt.err (!%p730_p10)
}
  0x1d   :  { %s734_s1 = scalar_lea.vmem %s56_s16, 16  ;;  %s738_s25 = scalar_lea.vmem %s56_s16, 32 }
  0x1e   :  { %p735_p11 = scmp.ne.s32.totalorder %s56_s16, %s734_s1  ;;  %p739_p12 = scmp.lt.s32.totalorder %s56_s16, %s56_s16 }
  0x1f   :  { %p740_p13 = scmp.lt.s32.totalorder %s738_s25, %s734_s1 }
  0x21   :  { %p741_p0 = por %p740_p13, %p739_p12 }
  0x23   :  { %p742_p1 = pnand %p741_p0, %p735_p11 }
  0x25   :  { %745 = shalt.err (!%p742_p1)
}
  0x26   :  { %58 = dma.hbm_to_vmem [thread:$0]  %s1077_s3, 16, %s56_s16, [#allocation9]  }
  0x27   :  { %s746_s8 = scalar_lea.hbm %s1079_s5, 768 }
  0x28   :  { %p747_p2 = scmp.ne.s32.totalorder %s1079_s5, %s746_s8  ;;  %p750_p3 = scmp.lt.u32.totalorder %s746_s8, %s1079_s5 }
  0x2a   :  { %p752_p4 = pnand %p750_p3, %p747_p2 }
  0x2c   :  { %755 = shalt.err (!%p752_p4)
}
  0x2d   :  { %s756_s15 = scalar_lea.vmem %s75_s18, 768  ;;  %p761_p6 = scmp.lt.s32.totalorder %s75_s18, %s75_s18 }
  0x2e   :  { %p757_p5 = scmp.ne.s32.totalorder %s75_s18, %s756_s15  ;;  %p762_p7 = scmp.lt.s32.totalorder %s756_s15, %s756_s15 }
  0x30   :  { %p763_p8 = por %p762_p7, %p761_p6 }
  0x32   :  { %p764_p9 = pnand %p763_p8, %p757_p5 }
  0x34   :  { %767 = shalt.err (!%p764_p9)
}
  0x35   :  { %80 = dma.hbm_to_vmem [thread:$0]  %s1079_s5, 768, %s75_s18, [#allocation12], %s889_s11, %s889_s11, %s890_s12  }
  0x36   :  { %s893_s17 = smov [#allocation2]   ;;  %s894_s20 = smov [#allocation7]  }
  0x37   :  { %s23_s19 = sshll.u32 %s893_s17, 4  ;;  %s45_s21 = sshll.u32 %s894_s20, 4  ;;  %s24_s19 = int_to_ptr.vmem [resolvable:$true] %s23_s19  ;;  %s46_s21 = int_to_ptr.vmem [resolvable:$true] %s45_s21 }
  0x38   :  { %s768_s24 = scalar_lea.hbm %s1074_s0, 128 }
  0x39   :  { %p769_p10 = scmp.ne.s32.totalorder %s1074_s0, %s768_s24  ;;  %p772_p11 = scmp.lt.u32.totalorder %s768_s24, %s1074_s0 }
  0x3b   :  { %p774_p12 = pnand %p772_p11, %p769_p10 }
  0x3d   :  { %777 = shalt.err (!%p774_p12)
}
  0x3e   :  { %s778_s5 = scalar_lea.vmem %s24_s19, 128  ;;  %p783_p0 = scmp.lt.s32.totalorder %s24_s19, %s24_s19 }
  0x3f   :  { %p779_p13 = scmp.ne.s32.totalorder %s24_s19, %s778_s5  ;;  %p784_p1 = scmp.lt.s32.totalorder %s778_s5, %s778_s5 }
  0x41   :  { %p785_p2 = por %p784_p1, %p783_p0 }
  0x43   :  { %p786_p3 = pnand %p785_p2, %p779_p13 }
  0x45   :  { %789 = shalt.err (!%p786_p3)
}
  0x46   :  { %26 = dma.hbm_to_vmem [thread:$0]  %s1074_s0, 128, %s24_s19, [#allocation3]  }
  0x47   :  { %s790_s30 = scalar_lea.hbm %s1076_s2, 16 }
  0x48   :  { %p791_p4 = scmp.ne.s32.totalorder %s1076_s2, %s790_s30  ;;  %p794_p5 = scmp.lt.u32.totalorder %s790_s30, %s1076_s2 }
  0x4a   :  { %p796_p6 = pnand %p794_p5, %p791_p4 }
  0x4c   :  { %799 = shalt.err (!%p796_p6)
}
  0x4d   :  { %s800_s14 = scalar_lea.vmem %s46_s21, 16  ;;  %s804_s15 = scalar_lea.vmem %s46_s21, 32 }
  0x4e   :  { %p801_p7 = scmp.ne.s32.totalorder %s46_s21, %s800_s14  ;;  %p805_p8 = scmp.lt.s32.totalorder %s46_s21, %s46_s21 }
  0x4f   :  { %p806_p9 = scmp.lt.s32.totalorder %s804_s15, %s800_s14 }
  0x51   :  { %p807_p10 = por %p806_p9, %p805_p8 }
  0x53   :  { %p808_p11 = pnand %p807_p10, %p801_p7 }
  0x55   :  { %811 = shalt.err (!%p808_p11)
}
  0x56   :  { %48 = dma.hbm_to_vmem [thread:$0]  %s1076_s2, 16, %s46_s21, [#allocation6]  }
  0x57   :  { %s895_s16 = smov [#allocation10]   ;;  %s896_s19 = smov [#allocation13]  }
  0x58   :  { %s65_s17 = sshll.u32 %s895_s16, 4  ;;  %s87_s20 = sshll.u32 %s896_s19, 4  ;;  %s66_s17 = int_to_ptr.vmem [resolvable:$true] %s65_s17  ;;  %s88_s20 = int_to_ptr.vmem [resolvable:$true] %s87_s20 }
  0x59   :  { %s812_s24 = scalar_lea.hbm %s1078_s4, 16 }
  0x5a   :  { %p813_p12 = scmp.ne.s32.totalorder %s1078_s4, %s812_s24  ;;  %p816_p13 = scmp.lt.u32.totalorder %s812_s24, %s1078_s4 }
  0x5c   :  { %p818_p0 = pnand %p816_p13, %p813_p12 }
  0x5e   :  { %821 = shalt.err (!%p818_p0)
}
  0x5f   :  { %s822_s2 = scalar_lea.vmem %s66_s17, 16  ;;  %s826_s21 = scalar_lea.vmem %s66_s17, 32 }
  0x60   :  { %p823_p1 = scmp.ne.s32.totalorder %s66_s17, %s822_s2  ;;  %p827_p2 = scmp.lt.s32.totalorder %s66_s17, %s66_s17 }
  0x61   :  { %p828_p3 = scmp.lt.s32.totalorder %s826_s21, %s822_s2 }
  0x63   :  { %p829_p4 = por %p828_p3, %p827_p2 }
  0x65   :  { %p830_p5 = pnand %p829_p4, %p823_p1 }
  0x67   :  { %833 = shalt.err (!%p830_p5)
}
  0x68   :  { %68 = dma.hbm_to_vmem [thread:$0]  %s1078_s4, 16, %s66_s17, [#allocation9]  }
  0x69   :  { %s834_s29 = scalar_lea.hbm %s1080_s6, 16 }
  0x6a   :  { %p835_p6 = scmp.ne.s32.totalorder %s1080_s6, %s834_s29  ;;  %p838_p7 = scmp.lt.u32.totalorder %s834_s29, %s1080_s6 }
  0x6c   :  { %p840_p8 = pnand %p838_p7, %p835_p6 }
  0x6e   :  { %843 = shalt.err (!%p840_p8)
}
  0x6f   :  { %s844_s13 = scalar_lea.vmem %s88_s20, 16  ;;  %s848_s14 = scalar_lea.vmem %s88_s20, 32 }
  0x70   :  { %p845_p9 = scmp.ne.s32.totalorder %s88_s20, %s844_s13  ;;  %p849_p10 = scmp.lt.s32.totalorder %s88_s20, %s88_s20 }
  0x71   :  { %p850_p11 = scmp.lt.s32.totalorder %s848_s14, %s844_s13 }
  0x73   :  { %p851_p12 = por %p850_p11, %p849_p10 }
  0x75   :  { %p852_p13 = pnand %p851_p12, %p845_p9 }
  0x77   :  { %855 = shalt.err (!%p852_p13)
}
  0x78   :  { %90 = dma.hbm_to_vmem [thread:$0]  %s1080_s6, 16, %s88_s20, [#allocation12]  }
  0x79   :  { %878 = dma.done.wait [#allocation3], 128  }
  0x7a   :  { %879 = vsyncadd [#allocation3], 4294967168 }
  0x7b   :  { %880 = dma.done.wait [#allocation6], 2320  }
  0x7c   :  { %881 = vsyncadd [#allocation6], 4294964976 }
  0x7d   :  { %882 = dma.done.wait [#allocation9], 32  }
  0x7e   :  { %883 = vsyncadd [#allocation9], 4294967264 }
  0x7f   :  { %884 = dma.done.wait [#allocation12], 784  }
  0x80   :  { %885 = vsyncadd [#allocation12], 4294966512  ;;  %v897_v0 = vmov 0.0   ;;  %vm121_vm0 = vcmask 1041408   ;;  %v1032_v1 = vld [vmem:[#allocation2] sm:$0x3f] }
  0x81   :  { %634 = vmatprep.subr.bf16.mxu1 %v897_v0  ;;  %vm898_vm1 = vmmov 0   ;;  %v140_v2 = vrot.slane %v1032_v1, 3  ;;  %v119_v3 = vrot.slane %v1032_v1, 1  ;;  %v676_v4 = vld [vmem:[#allocation5 + $0x40] sm:$0xff]   ;;  %v137_v5 = vrot.slane %v1032_v1, 4  ;;  %v678_v9 = vld [vmem:[#allocation5 + $0x48] sm:$0xff]  }
  0x82   :  { %638 = vmatprep.mubr.msk.bf16.mxu1 %vm898_vm1, %v897_v0  ;;  %v677_v6 = vld [vmem:[#allocation5] sm:$0xff]   ;;  %602 = vmatprep.subr.bf16.mxu0 %v676_v4  ;;  %v679_v10 = vld [vmem:[#allocation5 + $0x8] sm:$0xff]   ;;  %s899_s6 = smov 96   ;;  %v680_v11 = vld [vmem:[#allocation5 + $0x50] sm:$0xff]   ;;  %v134_v26 = vrot.slane %v1032_v1, 2  ;;  %vm117_vm2 = vcmask 1040384  }
  0x83   :  { %v671_v7 = vpack.i.bf16 %v1032_v1, %v140_v2  ;;  %v122_v8 = vsel %vm121_vm0, %v119_v3, 0.0  ;;  %603 = vmatpush3.bf16.msra.mxu0 %v677_v6  ;;  %v139_v12 = vsel %vm121_vm0, %v137_v5, 0.0  ;;  %v681_v13 = vld [vmem:[#allocation5 + $0x10] sm:$0xff]   ;;  %v682_v14 = vld [vmem:[#allocation5 + $0x58] sm:$0xff]   ;;  %v684_v16 = vld [vmem:[#allocation5 + $0x60] sm:$0xff]   ;;  %v115_v27 = vrot.slane %v1032_v1, 7 }
  0x84   :  { %127 = vrot.lane.b32.xlu1 %v122_v8, %s889_s11  ;;  %604 = vmatprep.subr.bf16.mxu0 %v678_v9  ;;  %v683_v15 = vld [vmem:[#allocation5 + $0x18] sm:$0xff]   ;;  %v688_v17 = vld [vmem:[#allocation5 + $0x80] sm:$0xff]   ;;  %v691_v19 = vld [vmem:[#allocation5 + $0x88] sm:$0xff]   ;;  %vm130_vm3 = vcmask 785408   ;;  %v136_v29 = vsel %vm117_vm2, 0.0, %v134_v26  ;;  %vm132_vm4 = vcmask 523264  }
  0x85   :  { %672 = vrot.lane.b32.xlu0 %v671_v7, %s899_s6  ;;  %v685_v18 = vld [vmem:[#allocation5 + $0x20] sm:$0xff]   ;;  %635 = vmatpush3.bf16.msra.mxu1 %v688_v17  ;;  %v686_v20 = vld [vmem:[#allocation5 + $0x68] sm:$0xff]   ;;  %v689_v22 = vld [vmem:[#allocation5 + $0x70] sm:$0xff]   ;;  %v118_v32 = vsel %vm117_vm2, 0.0, %v115_v27  ;;  %vm158_vm5 = vcmask 1042432   ;;  %vm316_vm6 = vcmask 261120  }
  0x86   :  { %636 = vmatprep.subr.bf16.mxu1 %v897_v0  ;;  %v687_v21 = vld [vmem:[#allocation5 + $0x28] sm:$0xff]   ;;  %v690_v23 = vld [vmem:[#allocation5 + $0x30] sm:$0xff]   ;;  %v692_v24 = vld [vmem:[#allocation5 + $0x78] sm:$0xff]   ;;  %vm403_vm7 = vcmask 783360   ;;  %vm432_vm8 = vcmask 780288  }
  0x87   :  { %605 = vmatpush3.bf16.msra.mxu0 %v679_v10  ;;  %v693_v25 = vld [vmem:[#allocation5 + $0x38] sm:$0xff]   ;;  %v572_v52 = vld [vmem:[#allocation7] ss:$0 sm:$0xff]  ;;  %v696_v7 = vld [vmem:[#allocation11 + $0x10] sm:$0xff]  }
  0x88   :  { %606 = vmatprep.subr.bf16.mxu0 %v680_v11  ;;  %v694_v5 = vld [vmem:[#allocation11] sm:$0xff]   ;;  %v695_v6 = vld [vmem:[#allocation11 + $0x8] sm:$0xff]   ;;  %v697_v8 = vld [vmem:[#allocation11 + $0x18] sm:$0xff]  }
  0x89   :  { %145 = vrot.lane.b32.xlu0 %v139_v12, %s889_s11  ;;  %637 = vmatpush3.bf16.msra.mxu1 %v691_v19  ;;  %v699_v9 = vld [vmem:[#allocation11 + $0x28] sm:$0xff]   ;;  %s900_s11 = smov [#allocation14]  }
  0x8a   :  { %642 = vmatprep.subr.bf16.mxu1 %v897_v0  ;;  %s560_s0 = sshll.u32 %s900_s11, 4  ;;  %s561_s0 = int_to_ptr.vmem [resolvable:$true] %s560_s0 }
  0x8b   :  { %607 = vmatpush3.bf16.msra.mxu0 %v681_v13  ;;  %s856_s3 = scalar_lea.vmem %s561_s0, 32  ;;  %p861_p1 = scmp.lt.s32.totalorder %s561_s0, %s561_s0 }
  0x8c   :  { %608 = vmatprep.subr.bf16.mxu0 %v682_v14  ;;  %v592_v14 = vld [vmem:[#allocation8] ss:$0 sm:$0xff]  ;;  %p857_p0 = scmp.ne.s32.totalorder %s561_s0, %s856_s3  ;;  %p862_p2 = scmp.lt.s32.totalorder %s856_s3, %s856_s3 }
  0x8e   :  { %p863_p3 = por %p862_p2, %p861_p1 }
  0x8f   :  { %609 = vmatpush3.bf16.msra.mxu0 %v683_v15 }
  0x90   :  { %610 = vmatprep.subr.bf16.mxu0 %v684_v16  ;;  %v593_v16 = vld [vmem:[#allocation10] ss:$0 sm:$0xff]  ;;  %p864_p4 = pnand %p863_p3, %p857_p0 }
  0x93   :  { %611 = vmatpush3.bf16.msra.mxu0 %v685_v18 }
  0x94   :  { %612 = vmatprep.subr.bf16.mxu0 %v686_v20 }
  0x97   :  { %613 = vmatpush3.bf16.msra.mxu0 %v687_v21 }
  0x98   :  { %614 = vmatprep.subr.bf16.mxu0 %v689_v22 }
  0x9b   :  { %615 = vmatpush3.bf16.msra.mxu0 %v690_v23 }
  0x9c   :  { %616 = vmatprep.subr.bf16.mxu0 %v692_v24 }
  0x9f   :  { %617 = vmatpush3.bf16.msra.mxu0 %v693_v25 }
  0xf6   :  { %v128_v35 = vpop.permute.xlu1 %127 }
  0xf7   :  { %v673_v28 = vpop.permute.xlu0 %672 }
  0xf8   :  { %v674_v30 = vunpack.i.l.bf16 %v673_v28  ;;  %v675_v31 = vunpack.i.h.bf16 %v673_v28 }
  0xfa   :  { %v148_v33 = vsel %vm130_vm3, %v136_v29, %v674_v30  ;;  %v131_v39 = vsel %vm130_vm3, %v118_v32, %v675_v31  ;;  %v133_v41 = vsel %vm132_vm4, %v675_v31, %v128_v35 }
  0xfb   :  { %v152_v34 = vrot.slane %v148_v33, 5  ;;  %v146_v36 = vpop.permute.xlu0 %145 }
  0xfc   :  { %v149_v37 = vsel %vm132_vm4, %v674_v30, %v146_v36  ;;  %v154_v38 = vrot.slane %v146_v36, 5 }
  0xfd   :  { %v153_v40 = vrot.slane %v149_v37, 5  ;;  %v159_v43 = vsel %vm158_vm5, %v131_v39, %v152_v34  ;;  %v594_v37 = vld [vmem:[#allocation13] ss:$0 sm:$0xff] }
  0xfe   :  { %v161_v42 = vsel %vm158_vm5, %v128_v35, %v154_v38  ;;  %v162_v47 = vpack.c.bf16 %v159_v43, %v159_v43 }
  0xff   :  { %v164_v44 = vpack.c.bf16 %v161_v42, %v161_v42  ;;  %v160_v45 = vsel %vm158_vm5, %v133_v41, %v153_v40 }
 0x100   :  { %v163_v46 = vpack.c.bf16 %v160_v45, %v160_v45 }
 0x101   :  { %639 = vmatmul.mubr.msk.bf16.vlgmr.msra.gmra.mrb[0].mxu1 %vm316_vm6, %v164_v44 }
 0x102   :  { %352 = vmatprep.mubr.bf16.mxu0 %v163_v46  ;;  %654 = vmatprep.mubr.msk.bf16.mxu1 %vm898_vm1, %v897_v0 }
 0x103   :  { %353 = vmatmul.mubr.bf16.vlgmr.msra.gmra.mrb[0].mxu0 %v162_v47  ;;  %643 = vmatpush3.bf16.msra.mxu1 %v694_v5 }
 0x104   :  { %644 = vmatprep.subr.bf16.mxu1 %v897_v0 }
 0x107   :  { %645 = vmatpush3.bf16.msra.mxu1 %v695_v6 }
 0x108   :  { %646 = vmatprep.subr.bf16.mxu1 %v897_v0 }
 0x10b   :  { %647 = vmatpush3.bf16.msra.mxu1 %v696_v7 }
 0x10c   :  { %648 = vmatprep.subr.bf16.mxu1 %v897_v0 }
 0x10f   :  { %649 = vmatpush3.bf16.msra.mxu1 %v697_v8 }
 0x110   :  { %650 = vmatprep.subr.bf16.mxu1 %v897_v0 }
 0x1d4   :  { %v394_v48 = vpop.f32.mrb[0].mxu1 }
 0x1d5   :  { %v640_v49 = vpop.f32.mrb[1].mxu1 }
 0x1d6   :  { %v618_v50 = vpop.f32.mrb[0].mxu0  ;;  %v397_v51 = vpop.f32.mrb[2].mxu1 }
 0x1d7   :  { %v619_v53 = vpop.f32.mrb[1].mxu0  ;;  %v641_v54 = vpop.f32.mrb[3].mxu1 }
 0x1d8   :  { %v620_v55 = vadd.f32 %v619_v53, %v618_v50  ;;  %v621_v56 = vpop.f32.mrb[2].mxu0 }
 0x1d9   :  { %v622_v57 = vpop.f32.mrb[3].mxu0 }
 0x1da   :  { %v355_v58 = vadd.f32 %v620_v55, %v572_v52 }
 0x1dc   :  { %v395_v59 = vadd.f32 %v394_v48, %v355_v58 }
 0x1de   :  { %v400_v60 = vadd.f32 %v395_v59, %v1032_v1  ;;  %v698_v1 = vld [vmem:[#allocation11 + $0x20] sm:$0xff]  }
 0x1df   :  { %651 = vmatpush3.bf16.msra.mxu1 %v698_v1 }
 0x1e0   :  { %v404_v61 = vsel %vm403_vm7, %v400_v60, 0.0  ;;  %652 = vmatprep.subr.bf16.mxu1 %v897_v0 }
 0x1e1   :  { %405 = vadd.xlane.f32.xlu1 %v404_v61 }
 0x1e3   :  { %653 = vmatpush3.bf16.msra.mxu1 %v699_v9 }
 0x26e   :  { %v406_v62 = vpop.xlane.xlu1 %405 }
 0x26f   :  { %v408_v63 = vmul.f32 0.010416667, %v406_v62 }
 0x271   :  { %v409_v2 = vsub.f32 %v400_v60, %v408_v63 }
 0x273   :  { %v410_v3 = vmul.f32 %v409_v2, %v409_v2 }
 0x275   :  { %v411_v4 = vsel %vm403_vm7, %v410_v3, 0.0 }
 0x276   :  { %412 = vadd.xlane.f32.xlu0 %v411_v4 }
 0x303   :  { %v413_v10 = vpop.xlane.xlu0 %412 }
 0x304   :  { %v414_v11 = vmul.f32 0.010416667, %v413_v10 }
 0x306   :  { %v415_v12 = vadd.f32 1e-05, %v414_v11 }
 0x308   :  { %700 = vrsqrt.f32 %v415_v12 }
 0x312   :  { %v701_v13 = vpop.eup %700 }
 0x313   :  { %v417_v15 = vmul.f32 %v701_v13, %v409_v2 }
 0x315   :  { %v424_v17 = vmul.f32 %v592_v14, %v417_v15 }
 0x317   :  { %v431_v18 = vadd.f32 %v593_v16, %v424_v17 }
 0x319   :  { %v433_v19 = vsel %vm432_vm8, %v431_v18, 0.0  ;;  %v443_v20 = vrot.slane %v431_v18, 3 }
 0x31a   :  { %v434_v21 = vrot.slane %v433_v19, 4 }
 0x31b   :  { %v445_v22 = vsel %vm432_vm8, %v443_v20, 0.0 }
 0x31c   :  { %v435_v23 = vadd.f32 %v434_v21, %v433_v19  ;;  %v446_v24 = vrot.slane %v445_v22, 4 }
 0x31e   :  { %v436_v25 = vrot.slane %v435_v23, 2  ;;  %v447_v0 = vadd.f32 %v446_v24, %v445_v22 }
 0x320   :  { %v437_v26 = vadd.f32 %v436_v25, %v435_v23  ;;  %v448_v27 = vrot.slane %v447_v0, 2 }
 0x322   :  { %v438_v28 = vrot.slane %v437_v26, 1  ;;  %v449_v29 = vadd.f32 %v448_v27, %v447_v0 }
 0x324   :  { %v439_v30 = vadd.f32 %v438_v28, %v437_v26  ;;  %v450_v31 = vrot.slane %v449_v29, 1 }
 0x326   :  { %v451_v32 = vadd.f32 %v450_v31, %v449_v29  ;;  %v441_v33 = vmul.f32 0.33333334, %v439_v30 }
 0x328   :  { %v452_v34 = vmul.f32 0.33333334, %v451_v32 }
 0x32a   :  { %v453_v35 = vsel %vm117_vm2, %v441_v33, %v452_v34 }
 0x32b   :  { %v454_v36 = vpack.c.bf16 %v453_v35, %v453_v35 }
 0x32d   :  { %655 = vmatmul.mubr.msk.bf16.vlgmr.msra.gmra.mrb[4].mxu1 %vm130_vm3, %v454_v36 }
 0x400   :  { %v547_v38 = vpop.f32.mrb[4].mxu1 }
 0x401   :  { %v548_v39 = vadd.f32 %v594_v37, %v547_v38  ;;  %v656_v40 = vpop.f32.mrb[5].mxu1 }
 0x402   :  { %v550_v41 = vpop.f32.mrb[6].mxu1 }
 0x403   :  { %553 = vst [vmem:[#allocation14] sm:$0x3] %v548_v39  ;;  %v657_v42 = vpop.f32.mrb[7].mxu1 }
 0x404   :  { %867 = shalt.err (!%p864_p4)
}
 0x405   :  { %s868_s19 = scalar_lea.hbm %s1081_s7, 32 }
 0x406   :  { %p869_p5 = scmp.ne.s32.totalorder %s1081_s7, %s868_s19  ;;  %p872_p6 = scmp.lt.u32.totalorder %s868_s19, %s1081_s7 }
 0x408   :  { %p874_p7 = pnand %p872_p6, %p869_p5 }
 0x40a   :  { %877 = shalt.err (!%p874_p7)
}
 0x40b   :  { %563 = dma.vmem_to_hbm [thread:$0]  %s561_s0, 32, %s1081_s7, [#allocation4]  }
 0x40c   :  { %886 = dma.done.wait [#allocation4], 32  }
 0x40d   :  { %887 = vsyncadd [#allocation4], 4294967264 }
 0x40e   :  { %567 = vsyncpa [#allocation3], 1 }
 0x40f   :  { %568 = vsyncpa [#allocation6], 1 }
 0x410   :  { %569 = vsyncpa [#allocation9], 1 }
 0x411   :  { %570 = vsyncpa [#allocation12], 1 }
 0x412   :  { %571 = vsyncpa [#allocation4], 1 }

// kernel: forward.3
= control target key start
LH: loop header
LB: loop body
LE: loop exit
PB: predicated region body
PF: predicated region fallthrough
CT: control target
= control target key end

     0   :  { %16 = vsyncpa [#allocation3], 0  ;;  %s1657_s0 = inlined_call_operand.hbm [shape: f32[16,16], index: 0, kind: input, shape index: {}]   ;;  %s1658_s1 = inlined_call_operand.hbm [shape: bf16[16,32], index: 1, kind: input, shape index: {}]   ;;  %s1659_s2 = inlined_call_operand.hbm [shape: f32[1,32], index: 2, kind: input, shape index: {}]   ;;  %s1660_s3 = inlined_call_operand.hbm [shape: f32[16,32], index: 3, kind: input, shape index: {}]   ;;  %s1661_s4 = inlined_call_operand.hbm [shape: bf16[32,32], index: 4, kind: input, shape index: {}]   ;;  %s1662_s5 = inlined_call_operand.hbm [shape: f32[1,32], index: 5, kind: input, shape index: {}]   ;;  %s1663_s6 = inlined_call_operand.hbm [shape: bf16[32,64], index: 6, kind: input, shape index: {}]   ;;  %s1664_s7 = inlined_call_operand.hbm [shape: f32[3,32], index: 7, kind: input, shape index: {}]   ;;  %s1665_s8 = inlined_call_operand.hbm [shape: bf16[2,3,8], index: 8, kind: input, shape index: {}]   ;;  %s1666_s9 = inlined_call_operand.hbm [shape: bf16[224,96], index: 9, kind: input, shape index: {}]   ;;  %s1667_s10 = inlined_call_operand.hbm [shape: f32[1,96], index: 10, kind: input, shape index: {}]   ;;  %s1668_s11 = inlined_call_operand.hbm [shape: f32[6,96], index: 11, kind: output, shape index: {}]  }
   0x1   :  { %17 = vsyncpa [#allocation6], 0 }
   0x2   :  { %18 = vsyncpa [#allocation9], 0 }
   0x3   :  { %19 = vsyncpa [#allocation12], 0 }
   0x4   :  { %20 = vsyncpa [#allocation15], 0 }
   0x5   :  { %21 = vsyncpa [#allocation18], 0 }
   0x6   :  { %22 = vsyncpa [#allocation4], 0  ;;  %s1329_s17 = smov [#allocation5]   ;;  %s1051_s21 = scalar_lea.hbm %s1658_s1, 128 }
   0x7   :  { %s40_s18 = sshll.u32 %s1329_s17, 4  ;;  %p1052_p0 = scmp.ne.s32.totalorder %s1658_s1, %s1051_s21  ;;  %s41_s18 = int_to_ptr.vmem [resolvable:$true] %s40_s18 }
   0x8   :  { %p1055_p1 = scmp.lt.u32.totalorder %s1051_s21, %s1658_s1 }
   0xa   :  { %p1057_p2 = pnand %p1055_p1, %p1052_p0 }
   0xc   :  { %1060 = shalt.err (!%p1057_p2)
}
   0xd   :  { %s1061_s26 = scalar_lea.vmem %s41_s18, 128  ;;  %p1066_p4 = scmp.lt.s32.totalorder %s41_s18, %s41_s18 }
   0xe   :  { %p1062_p3 = scmp.ne.s32.totalorder %s41_s18, %s1061_s26  ;;  %p1067_p5 = scmp.lt.s32.totalorder %s1061_s26, %s1061_s26 }
  0x10   :  { %p1068_p6 = por %p1067_p5, %p1066_p4 }
  0x12   :  { %p1069_p7 = pnand %p1068_p6, %p1062_p3 }
  0x14   :  { %1072 = shalt.err (!%p1069_p7)
}
  0x15   :  { %s1330_s27 = smov 64   ;;  %s1331_s28 = smov 4  }
  0x16   :  { %46 = dma.hbm_to_vmem [thread:$0]  %s1658_s1, 128, %s41_s18, [#allocation6], %s1330_s27, %s1330_s27, %s1331_s28  }
  0x17   :  { %s1332_s12 = smov [#allocation8]   ;;  %s1333_s14 = smov [#allocation11]  }
  0x18   :  { %s62_s13 = sshll.u32 %s1332_s12, 4  ;;  %s87_s15 = sshll.u32 %s1333_s14, 4  ;;  %s63_s13 = int_to_ptr.vmem [resolvable:$true] %s62_s13  ;;  %s88_s15 = int_to_ptr.vmem [resolvable:$true] %s87_s15 }
  0x19   :  { %s1073_s19 = scalar_lea.hbm %s1660_s3, 256 }
  0x1a   :  { %p1074_p8 = scmp.ne.s32.totalorder %s1660_s3, %s1073_s19  ;;  %p1077_p9 = scmp.lt.u32.totalorder %s1073_s19, %s1660_s3 }
  0x1c   :  { %p1079_p10 = pnand %p1077_p9, %p1074_p8 }
  0x1e   :  { %1082 = shalt.err (!%p1079_p10)
}
  0x1f   :  { %s1083_s1 = scalar_lea.vmem %s63_s13, 256  ;;  %p1088_p12 = scmp.lt.s32.totalorder %s63_s13, %s63_s13 }
  0x20   :  { %p1084_p11 = scmp.ne.s32.totalorder %s63_s13, %s1083_s1  ;;  %p1089_p13 = scmp.lt.s32.totalorder %s1083_s1, %s1083_s1 }
  0x22   :  { %p1090_p0 = por %p1089_p13, %p1088_p12 }
  0x24   :  { %p1091_p1 = pnand %p1090_p0, %p1084_p11 }
  0x26   :  { %1094 = shalt.err (!%p1091_p1)
}
  0x27   :  { %s1334_s18 = smov 128   ;;  %s1335_s24 = smov 8  }
  0x28   :  { %68 = dma.hbm_to_vmem [thread:$0]  %s1660_s3, 256, %s63_s13, [#allocation9], %s1334_s18, %s1334_s18, %s1335_s24  }
  0x29   :  { %s1095_s12 = scalar_lea.hbm %s1662_s5, 16 }
  0x2a   :  { %p1096_p2 = scmp.ne.s32.totalorder %s1662_s5, %s1095_s12  ;;  %p1099_p3 = scmp.lt.u32.totalorder %s1095_s12, %s1662_s5 }
  0x2c   :  { %p1101_p4 = pnand %p1099_p3, %p1096_p2 }
  0x2e   :  { %1104 = shalt.err (!%p1101_p4)
}
  0x2f   :  { %s1105_s20 = scalar_lea.vmem %s88_s15, 16  ;;  %s1109_s21 = scalar_lea.vmem %s88_s15, 32 }
  0x30   :  { %p1106_p5 = scmp.ne.s32.totalorder %s88_s15, %s1105_s20  ;;  %p1110_p6 = scmp.lt.s32.totalorder %s88_s15, %s88_s15 }
  0x31   :  { %p1111_p7 = scmp.lt.s32.totalorder %s1109_s21, %s1105_s20 }
  0x33   :  { %p1112_p8 = por %p1111_p7, %p1110_p6 }
  0x35   :  { %p1113_p9 = pnand %p1112_p8, %p1106_p5 }
  0x37   :  { %1116 = shalt.err (!%p1113_p9)
}
  0x38   :  { %90 = dma.hbm_to_vmem [thread:$0]  %s1662_s5, 16, %s88_s15, [#allocation12]  }
  0x39   :  { %s1336_s22 = smov [#allocation14]   ;;  %s1337_s1 = smov [#allocation17]  }
  0x3a   :  { %s109_s23 = sshll.u32 %s1336_s22, 4  ;;  %s130_s25 = sshll.u32 %s1337_s1, 4  ;;  %s110_s23 = int_to_ptr.vmem [resolvable:$true] %s109_s23  ;;  %s131_s25 = int_to_ptr.vmem [resolvable:$true] %s130_s25 }
  0x3b   :  { %s1117_s30 = scalar_lea.hbm %s1664_s7, 64 }
  0x3c   :  { %p1118_p10 = scmp.ne.s32.totalorder %s1664_s7, %s1117_s30  ;;  %p1121_p11 = scmp.lt.u32.totalorder %s1117_s30, %s1664_s7 }
  0x3e   :  { %p1123_p12 = pnand %p1121_p11, %p1118_p10 }
  0x40   :  { %1126 = shalt.err (!%p1123_p12)
}
  0x41   :  { %s1127_s5 = scalar_lea.vmem %s110_s23, 64  ;;  %p1132_p0 = scmp.lt.s32.totalorder %s110_s23, %s110_s23 }
  0x42   :  { %p1128_p13 = scmp.ne.s32.totalorder %s110_s23, %s1127_s5  ;;  %p1133_p1 = scmp.lt.s32.totalorder %s1127_s5, %s1127_s5 }
  0x44   :  { %p1134_p2 = por %p1133_p1, %p1132_p0 }
  0x46   :  { %p1135_p3 = pnand %p1134_p2, %p1128_p13 }
  0x48   :  { %1138 = shalt.err (!%p1135_p3)
}
  0x49   :  { %112 = dma.hbm_to_vmem [thread:$0]  %s1664_s7, 64, %s110_s23, [#allocation15]  }
  0x4a   :  { %s1139_s3 = scalar_lea.hbm %s1666_s9, 1792 }
  0x4b   :  { %p1140_p4 = scmp.ne.s32.totalorder %s1666_s9, %s1139_s3  ;;  %p1143_p5 = scmp.lt.u32.totalorder %s1139_s3, %s1666_s9 }
  0x4d   :  { %p1145_p6 = pnand %p1143_p5, %p1140_p4 }
  0x4f   :  { %1148 = shalt.err (!%p1145_p6)
}
  0x50   :  { %s1149_s29 = scalar_lea.vmem %s131_s25, 1792  ;;  %p1154_p8 = scmp.lt.s32.totalorder %s131_s25, %s131_s25 }
  0x51   :  { %p1150_p7 = scmp.ne.s32.totalorder %s131_s25, %s1149_s29  ;;  %p1155_p9 = scmp.lt.s32.totalorder %s1149_s29, %s1149_s29 }
  0x53   :  { %p1156_p10 = por %p1155_p9, %p1154_p8 }
  0x55   :  { %p1157_p11 = pnand %p1156_p10, %p1150_p7 }
  0x57   :  { %1160 = shalt.err (!%p1157_p11)
}
  0x58   :  { %136 = dma.hbm_to_vmem [thread:$0]  %s1666_s9, 1792, %s131_s25, [#allocation18], %s1330_s27, %s1330_s27, %s1331_s28  }
  0x59   :  { %s1338_s30 = smov [#allocation2]   ;;  %s1339_s14 = smov [#allocation7]  }
  0x5a   :  { %s28_s12 = sshll.u32 %s1338_s30, 4  ;;  %s53_s16 = sshll.u32 %s1339_s14, 4  ;;  %s29_s12 = int_to_ptr.vmem [resolvable:$true] %s28_s12  ;;  %s54_s16 = int_to_ptr.vmem [resolvable:$true] %s53_s16 }
  0x5b   :  { %s1161_s15 = scalar_lea.hbm %s1657_s0, 256 }
  0x5c   :  { %p1162_p12 = scmp.ne.s32.totalorder %s1657_s0, %s1161_s15  ;;  %p1165_p13 = scmp.lt.u32.totalorder %s1161_s15, %s1657_s0 }
  0x5e   :  { %p1167_p0 = pnand %p1165_p13, %p1162_p12 }
  0x60   :  { %1170 = shalt.err (!%p1167_p0)
}
  0x61   :  { %s1171_s9 = scalar_lea.vmem %s29_s12, 256  ;;  %p1176_p2 = scmp.lt.s32.totalorder %s29_s12, %s29_s12 }
  0x62   :  { %p1172_p1 = scmp.ne.s32.totalorder %s29_s12, %s1171_s9  ;;  %p1177_p3 = scmp.lt.s32.totalorder %s1171_s9, %s1171_s9 }
  0x64   :  { %p1178_p4 = por %p1177_p3, %p1176_p2 }
  0x66   :  { %p1179_p5 = pnand %p1178_p4, %p1172_p1 }
  0x68   :  { %1182 = shalt.err (!%p1179_p5)
}
  0x69   :  { %34 = dma.hbm_to_vmem [thread:$0]  %s1657_s0, 256, %s29_s12, [#allocation3], %s1334_s18, %s1334_s18, %s1335_s24  }
  0x6a   :  { %s1183_s26 = scalar_lea.hbm %s1659_s2, 16 }
  0x6b   :  { %p1184_p6 = scmp.ne.s32.totalorder %s1659_s2, %s1183_s26  ;;  %p1187_p7 = scmp.lt.u32.totalorder %s1183_s26, %s1659_s2 }
  0x6d   :  { %p1189_p8 = pnand %p1187_p7, %p1184_p6 }
  0x6f   :  { %1192 = shalt.err (!%p1189_p8)
}
  0x70   :  { %s1193_s14 = scalar_lea.vmem %s54_s16, 16  ;;  %s1197_s17 = scalar_lea.vmem %s54_s16, 32 }
  0x71   :  { %p1194_p9 = scmp.ne.s32.totalorder %s54_s16, %s1193_s14  ;;  %p1198_p10 = scmp.lt.s32.totalorder %s54_s16, %s54_s16 }
  0x72   :  { %p1199_p11 = scmp.lt.s32.totalorder %s1197_s17, %s1193_s14 }
  0x74   :  { %p1200_p12 = por %p1199_p11, %p1198_p10 }
  0x76   :  { %p1201_p13 = pnand %p1200_p12, %p1194_p9 }
  0x78   :  { %1204 = shalt.err (!%p1201_p13)
}
  0x79   :  { %56 = dma.hbm_to_vmem [thread:$0]  %s1659_s2, 16, %s54_s16, [#allocation6]  }
  0x7a   :  { %s1340_s24 = smov [#allocation10]   ;;  %s1341_s5 = smov [#allocation13]  }
  0x7b   :  { %s74_s12 = sshll.u32 %s1340_s24, 4  ;;  %s96_s15 = sshll.u32 %s1341_s5, 4  ;;  %s75_s12 = int_to_ptr.vmem [resolvable:$true] %s74_s12  ;;  %s97_s15 = int_to_ptr.vmem [resolvable:$true] %s96_s15 }
  0x7c   :  { %s1205_s21 = scalar_lea.hbm %s1661_s4, 256 }
  0x7d   :  { %p1206_p0 = scmp.ne.s32.totalorder %s1661_s4, %s1205_s21  ;;  %p1209_p1 = scmp.lt.u32.totalorder %s1205_s21, %s1661_s4 }
  0x7f   :  { %p1211_p2 = pnand %p1209_p1, %p1206_p0 }
  0x81   :  { %1214 = shalt.err (!%p1211_p2)
}
  0x82   :  { %s1215_s2 = scalar_lea.vmem %s75_s12, 256  ;;  %p1220_p4 = scmp.lt.s32.totalorder %s75_s12, %s75_s12 }
  0x83   :  { %p1216_p3 = scmp.ne.s32.totalorder %s75_s12, %s1215_s2  ;;  %p1221_p5 = scmp.lt.s32.totalorder %s1215_s2, %s1215_s2 }
  0x85   :  { %p1222_p6 = por %p1221_p5, %p1220_p4 }
  0x87   :  { %p1223_p7 = pnand %p1222_p6, %p1216_p3 }
  0x89   :  { %1226 = shalt.err (!%p1223_p7)
}
  0x8a   :  { %80 = dma.hbm_to_vmem [thread:$0]  %s1661_s4, 256, %s75_s12, [#allocation9], %s1330_s27, %s1330_s27, %s1331_s28  }
  0x8b   :  { %s1227_s29 = scalar_lea.hbm %s1663_s6, 256 }
  0x8c   :  { %p1228_p8 = scmp.ne.s32.totalorder %s1663_s6, %s1227_s29  ;;  %p1231_p9 = scmp.lt.u32.totalorder %s1227_s29, %s1663_s6 }
  0x8e   :  { %p1233_p10 = pnand %p1231_p9, %p1228_p8 }
  0x90   :  { %1236 = shalt.err (!%p1233_p10)
}
  0x91   :  { %s1237_s17 = scalar_lea.vmem %s97_s15, 256  ;;  %p1242_p12 = scmp.lt.s32.totalorder %s97_s15, %s97_s15 }
  0x92   :  { %p1238_p11 = scmp.ne.s32.totalorder %s97_s15, %s1237_s17  ;;  %p1243_p13 = scmp.lt.s32.totalorder %s1237_s17, %s1237_s17 }
  0x94   :  { %p1244_p0 = por %p1243_p13, %p1242_p12 }
  0x96   :  { %p1245_p1 = pnand %p1244_p0, %p1238_p11 }
  0x98   :  { %1248 = shalt.err (!%p1245_p1)
}
  0x99   :  { %102 = dma.hbm_to_vmem [thread:$0]  %s1663_s6, 256, %s97_s15, [#allocation12], %s1330_s27, %s1330_s27, %s1331_s28  }
  0x9a   :  { %s1342_s18 = smov [#allocation16]   ;;  %s1249_s19 = scalar_lea.hbm %s1665_s8, 64 }
  0x9b   :  { %s118_s24 = sshll.u32 %s1342_s18, 4  ;;  %p1250_p2 = scmp.ne.s32.totalorder %s1665_s8, %s1249_s19  ;;  %s119_s24 = int_to_ptr.vmem [resolvable:$true] %s118_s24 }
  0x9c   :  { %p1253_p3 = scmp.lt.u32.totalorder %s1249_s19, %s1665_s8 }
  0x9e   :  { %p1255_p4 = pnand %p1253_p3, %p1250_p2 }
  0xa0   :  { %1258 = shalt.err (!%p1255_p4)
}
  0xa1   :  { %s1259_s25 = scalar_lea.vmem %s119_s24, 64  ;;  %p1264_p6 = scmp.lt.s32.totalorder %s119_s24, %s119_s24 }
  0xa2   :  { %p1260_p5 = scmp.ne.s32.totalorder %s119_s24, %s1259_s25  ;;  %p1265_p7 = scmp.lt.s32.totalorder %s1259_s25, %s1259_s25 }
  0xa4   :  { %p1266_p8 = por %p1265_p7, %p1264_p6 }
  0xa6   :  { %p1267_p9 = pnand %p1266_p8, %p1260_p5 }
  0xa8   :  { %1270 = shalt.err (!%p1267_p9)
}
  0xa9   :  { %s1343_s6 = smov 32   ;;  %s1344_s28 = smov 2  }
  0xaa   :  { %124 = dma.hbm_to_vmem [thread:$0]  %s1665_s8, 64, %s119_s24, [#allocation15], %s1343_s6, %s1343_s6, %s1344_s28  }
  0xab   :  { %s1345_s2 = smov [#allocation19]   ;;  %s1271_s26 = scalar_lea.hbm %s1667_s10, 16 }
  0xac   :  { %s143_s16 = sshll.u32 %s1345_s2, 4  ;;  %p1272_p10 = scmp.ne.s32.totalorder %s1667_s10, %s1271_s26  ;;  %s144_s16 = int_to_ptr.vmem [resolvable:$true] %s143_s16 }
  0xad   :  { %p1275_p11 = scmp.lt.u32.totalorder %s1271_s26, %s1667_s10 }
  0xaf   :  { %p1277_p12 = pnand %p1275_p11, %p1272_p10 }
  0xb1   :  { %1280 = shalt.err (!%p1277_p12)
}
  0xb2   :  { %s1281_s14 = scalar_lea.vmem %s144_s16, 16  ;;  %s1285_s8 = scalar_lea.vmem %s144_s16, 32 }
  0xb3   :  { %p1282_p13 = scmp.ne.s32.totalorder %s144_s16, %s1281_s14  ;;  %p1286_p0 = scmp.lt.s32.totalorder %s144_s16, %s144_s16 }
  0xb4   :  { %p1287_p1 = scmp.lt.s32.totalorder %s1285_s8, %s1281_s14 }
  0xb6   :  { %p1288_p2 = por %p1287_p1, %p1286_p0 }
  0xb8   :  { %p1289_p3 = pnand %p1288_p2, %p1282_p13 }
  0xba   :  { %1292 = shalt.err (!%p1289_p3)
}
  0xbb   :  { %146 = dma.hbm_to_vmem [thread:$0]  %s1667_s10, 16, %s144_s16, [#allocation18]  }
  0xbc   :  { %1315 = dma.done.wait [#allocation3], 256  }
  0xbd   :  { %1316 = vsyncadd [#allocation3], 4294967040 }
  0xbe   :  { %1317 = dma.done.wait [#allocation6], 144  }
  0xbf   :  { %1318 = vsyncadd [#allocation6], 4294967152 }
  0xc0   :  { %1319 = dma.done.wait [#allocation9], 512  }
  0xc1   :  { %1320 = vsyncadd [#allocation9], 4294966784 }
  0xc2   :  { %1321 = dma.done.wait [#allocation12], 272  }
  0xc3   :  { %1322 = vsyncadd [#allocation12], 4294967024 }
  0xc4   :  { %1323 = dma.done.wait [#allocation15], 128  }
  0xc5   :  { %1324 = vsyncadd [#allocation15], 4294967168 }
  0xc6   :  { %1325 = dma.done.wait [#allocation18], 1808  }
  0xc7   :  { %1326 = vsyncadd [#allocation18], 4294965488  ;;  %v1346_v0 = vmov 0.0   ;;  %vm1347_vm0 = vmmov 0   ;;  %v1032_v1 = vld [vmem:[#allocation5] sm:$0xff]   ;;  %v181_v2 = vld [vmem:[#allocation2] sm:$0xff]  ;;  %v257_v7 = vlaneseq }
  0xc8   :  { %934 = vmatprep.subr.bf16.mxu0 %v1346_v0  ;;  %936 = vmatprep.mubr.msk.bf16.mxu0 %vm1347_vm0, %v1346_v0  ;;  %v182_v3 = vld [vmem:[#allocation2 + $0x8] sm:$0xff]  ;;  %vm199_vm1 = vcmask 130048   ;;  %v1034_v6 = vld [vmem:[#allocation10 + $0x8] sm:$0xff]   ;;  %v244_v11 = vld [vmem:[#allocation8] sm:$0xff]  ;;  %vm250_vm2 = vcmask 1040384   ;;  %vm311_vm5 = vcmask 261120  }
  0xc9   :  { %935 = vmatpush3.bf16.msra.mxu0 %v1032_v1  ;;  %v183_v4 = vpack.c.bf16 %v182_v3, %v181_v2  ;;  %v1033_v5 = vld [vmem:[#allocation10] sm:$0xff]   ;;  %v258_v8 = vshrl.u32 %v257_v7, 7  ;;  %v888_v9 = vld [vmem:[#allocation7] ss:$0 sm:$0xff]  ;;  %v245_v16 = vld [vmem:[#allocation8 + $0x8] sm:$0xff]  ;;  %vm435_vm6 = vcmask 1043456  }
  0xca   :  { %940 = vmatprep.subr.bf16.mxu0 %v1346_v0  ;;  %v1035_v32 = vld [vmem:[#allocation13] sm:$0xff]   ;;  %v1036_v33 = vld [vmem:[#allocation13 + $0x8] sm:$0xff]   ;;  %v894_v37 = vld [vmem:[#allocation11] ss:$0 sm:$0xff]  ;;  %s1348_s10 = smov 96   ;;  %vm431_vm7 = vcmask 64512  }
  0xcb   :  { %v259_v14 = vadd.s32 8, %v258_v8  ;;  %v264_v22 = vand.u32 7, %v258_v8  ;;  %v429_v50 = vld [vmem:[#allocation16] sm:$0x3]  ;;  %v481_v54 = vld [vmem:[#allocation16 + $0x2] sm:$0x3] }
  0xcc   :  { %937 = vmatmul.mubr.msk.bf16.vlgmr.msra.gmra.mrb[0].mxu0 %vm199_vm1, %v183_v4  ;;  %v1037_v58 = vld [vmem:[#allocation17] sm:$0xff]   ;;  %v1349_v59 = vmov 0   ;;  %v1038_v60 = vld [vmem:[#allocation17 + $0x8] sm:$0xff]   ;;  %v1039_v61 = vld [vmem:[#allocation17 + $0x10] sm:$0xff]   ;;  %vm535_vm8 = vcmask 1041408   ;;  %vm562_vm9 = vcmask 523264  }
  0xcd   :  { %944 = vmatprep.mubr.msk.bf16.mxu0 %vm1347_vm0, %v1346_v0  ;;  %941 = vmatpush3.bf16.msra.mxu0 %v1033_v5  ;;  %v271_v23 = vand.u32 7, %v259_v14  ;;  %vm284_vm3 = vcmp.ne.s32.totalorder %v264_v22, 0  ;;  %v1040_v62 = vld [vmem:[#allocation17 + $0x18] sm:$0xff]   ;;  %v1041_v63 = vld [vmem:[#allocation17 + $0x20] sm:$0xff]   ;;  %v1043_v2 = vld [vmem:[#allocation17 + $0x30] sm:$0xff]   ;;  %vm564_vm10 = vcmask 785408  }
  0xce   :  { %942 = vmatprep.subr.bf16.mxu0 %v1346_v0  ;;  %826 = vmatprep.subr.bf16.mxu1 %v1349_v59  ;;  %v428_v1 = vld [vmem:[#allocation14] sm:$0x7]  ;;  %vm699_vm11 = vcmask 1042432   ;;  %vm866_vm12 = vcmask 783360  }
  0xcf   :  { %vm285_vm4 = vcmp.ne.s32.totalorder %v271_v23, 0  ;;  %827 = vmatpush1.bf16.msra.mxu1 %v1037_v58 }
  0xd0   :  { %828 = vmatprep.subr.bf16.mxu1 %v1349_v59 }
  0xd1   :  { %943 = vmatpush3.bf16.msra.mxu0 %v1034_v6  ;;  %v1044_v6 = vld [vmem:[#allocation17 + $0x38] sm:$0xff]  }
  0xd2   :  { %948 = vmatprep.subr.bf16.mxu0 %v1346_v0 }
  0xd3   :  { %829 = vmatpush1.bf16.msra.mxu1 %v1038_v60 }
  0xd4   :  { %830 = vmatprep.subr.bf16.mxu1 %v1349_v59 }
  0xd7   :  { %831 = vmatpush1.bf16.msra.mxu1 %v1039_v61 }
  0xd8   :  { %832 = vmatprep.subr.bf16.mxu1 %v1349_v59 }
  0xdb   :  { %833 = vmatpush1.bf16.msra.mxu1 %v1040_v62 }
  0xdc   :  { %834 = vmatprep.subr.bf16.mxu1 %v1349_v59 }
  0xdf   :  { %835 = vmatpush1.bf16.msra.mxu1 %v1041_v63 }
  0xe0   :  { %836 = vmatprep.subr.bf16.mxu1 %v1349_v59 }
 0x19f   :  { %v237_v10 = vpop.f32.mrb[0].mxu0 }
 0x1a0   :  { %v238_v12 = vadd.f32 %v888_v9, %v237_v10  ;;  %v938_v13 = vpop.f32.mrb[1].mxu0 }
 0x1a1   :  { %v240_v15 = vpop.f32.mrb[2].mxu0 }
 0x1a2   :  { %v246_v17 = vadd.f32 %v244_v11, %v238_v12  ;;  %v241_v18 = vadd.f32 %v888_v9, %v240_v15  ;;  %v939_v19 = vpop.f32.mrb[3].mxu0  ;;  %v1045_v12 = vld [vmem:[#allocation17 + $0x40] sm:$0xff]   ;;  %v1046_v15 = vld [vmem:[#allocation17 + $0x48] sm:$0xff]  }
 0x1a4   :  { %v251_v20 = vrot.slane %v246_v17, 7  ;;  %v247_v21 = vadd.f32 %v245_v16, %v241_v18  ;;  %v1048_v18 = vld [vmem:[#allocation17 + $0x58] sm:$0xff]  }
 0x1a6   :  { %v256_v24 = vsel %vm250_vm2, %v246_v17, %v251_v20  ;;  %v252_v25 = vrot.slane %v247_v21, 7 }
 0x1a7   :  { %v286_v26 = vsub.f32 %v246_v17, %v256_v24 }
 0x1a8   :  { %v253_v27 = vsel %vm250_vm2, %v251_v20, %v252_v25 }
 0x1a9   :  { %v287_v28 = vsub.f32 %v247_v21, %v253_v27  ;;  %v292_v29 = vsel %vm284_vm3, %v286_v26, 0.0  ;;  %v1049_v26 = vld [vmem:[#allocation17 + $0x60] sm:$0xff]  }
 0x1ab   :  { %v293_v30 = vsel %vm285_vm4, %v287_v28, 0.0 }
 0x1ac   :  { %v294_v31 = vpack.c.bf16 %v293_v30, %v292_v29  ;;  %v1050_v30 = vld [vmem:[#allocation17 + $0x68] sm:$0xff]  }
 0x1ae   :  { %945 = vmatmul.mubr.msk.bf16.vlgmr.msra.gmra.mrb[4].mxu0 %vm311_vm5, %v294_v31 }
 0x1af   :  { %952 = vmatprep.mubr.msk.bf16.mxu0 %vm1347_vm0, %v1346_v0  ;;  %949 = vmatpush3.bf16.msra.mxu0 %v1035_v32 }
 0x1b0   :  { %950 = vmatprep.subr.bf16.mxu0 %v1346_v0 }
 0x1b3   :  { %951 = vmatpush3.bf16.msra.mxu0 %v1036_v33 }
 0x1b4   :  { %956 = vmatprep.subr.bf16.mxu0 %v1346_v0 }
 0x281   :  { %v349_v34 = vpop.f32.mrb[4].mxu0 }
 0x282   :  { %v356_v35 = vadd.f32 %v349_v34, %v246_v17  ;;  %v946_v36 = vpop.f32.mrb[5].mxu0  ;;  %v1047_v17 = vld [vmem:[#allocation17 + $0x50] sm:$0xff]  }
 0x283   :  { %v352_v38 = vpop.f32.mrb[6].mxu0 }
 0x284   :  { %v357_v39 = vadd.f32 %v352_v38, %v247_v21  ;;  %v947_v40 = vpop.f32.mrb[7].mxu0  ;;  %v365_v41 = vadd.f32 %v894_v37, %v356_v35 }
 0x286   :  { %v366_v42 = vadd.f32 %v894_v37, %v357_v39 }
 0x288   :  { %v367_v43 = vpack.c.bf16 %v366_v42, %v365_v41 }
 0x28a   :  { %953 = vmatmul.mubr.msk.bf16.vlgmr.msra.gmra.mrb[8].mxu0 %vm311_vm5, %v367_v43 }
 0x28b   :  { %958 = vmatprep.mubr.msk.bf16.mxu0 %vm1347_vm0, %v1346_v0 }
 0x35d   :  { %v421_v44 = vpop.f32.mrb[8].mxu0 }
 0x35e   :  { %v430_v45 = vpack.c.bf16 %v421_v44, %v421_v44  ;;  %v954_v46 = vpop.f32.mrb[9].mxu0 }
 0x35f   :  { %v424_v47 = vpop.f32.mrb[10].mxu0 }
 0x360   :  { %v437_v48 = vsel %vm435_vm6, %v430_v45, 0  ;;  %483 = vrot.lane.b32.xlu0 %v430_v45, %s1348_s10  ;;  %v955_v49 = vpop.f32.mrb[11].mxu0  ;;  %v568_v51 = vpack.c.bf16 %v424_v47, %v424_v47 }
 0x361   :  { %957 = vmatpush3.bf16.msra.mxu0 %v437_v48 }
 0x362   :  { %962 = vmatprep.subr.bf16.mxu0 %v1346_v0  ;;  %v570_v55 = vsel %vm435_vm6, %v568_v51, 0 }
 0x364   :  { %614 = vrot.lane.b32.xlu0 %v568_v51, %s1348_s10  ;;  %959 = vmatmul.mubr.msk.bf16.vlgmr.msra.gmra.mrb[12].mxu0 %vm431_vm7, %v429_v50 }
 0x365   :  { %964 = vmatprep.mubr.msk.bf16.mxu0 %vm1347_vm0, %v1346_v0 }
 0x3d2   :  { %v484_v52 = vpop.permute.xlu0 %483 }
 0x3d3   :  { %v489_v53 = vsel %vm435_vm6, %v484_v52, 0 }
 0x3d4   :  { %963 = vmatpush3.bf16.msra.mxu0 %v489_v53 }
 0x3d5   :  { %968 = vmatprep.subr.bf16.mxu0 %v1346_v0 }
 0x3d6   :  { %v615_v56 = vpop.permute.xlu0 %614 }
 0x3d7   :  { %965 = vmatmul.mubr.msk.bf16.vlgmr.msra.gmra.mrb[12].mxu0 %vm431_vm7, %v481_v54  ;;  %v617_v57 = vsel %vm435_vm6, %v615_v56, 0 }
 0x3d8   :  { %969 = vmatpush3.bf16.msra.mxu0 %v570_v55  ;;  %970 = vmatprep.mubr.msk.bf16.mxu0 %vm1347_vm0, %v1346_v0 }
 0x3d9   :  { %974 = vmatprep.subr.bf16.mxu0 %v1346_v0 }
 0x3df   :  { %971 = vmatmul.mubr.msk.bf16.vlgmr.msra.gmra.mrb[16].mxu0 %vm431_vm7, %v429_v50 }
 0x3e0   :  { %975 = vmatpush3.bf16.msra.mxu0 %v617_v57  ;;  %976 = vmatprep.mubr.msk.bf16.mxu0 %vm1347_vm0, %v1346_v0  ;;  %v1042_v0 = vld [vmem:[#allocation17 + $0x28] sm:$0xff]  }
 0x3e1   :  { %837 = vmatpush1.bf16.msra.mxu1 %v1042_v0 }
 0x3e2   :  { %838 = vmatprep.subr.bf16.mxu1 %v1349_v59 }
 0x3e5   :  { %839 = vmatpush1.bf16.msra.mxu1 %v1043_v2  ;;  %v902_v2 = vld [vmem:[#allocation19] ss:$0 sm:$0xff] }
 0x3e6   :  { %840 = vmatprep.subr.bf16.mxu1 %v1349_v59 }
 0x3e9   :  { %841 = vmatpush1.bf16.msra.mxu1 %v1044_v6 }
 0x3ea   :  { %842 = vmatprep.subr.bf16.mxu1 %v1349_v59 }
 0x3eb   :  { %977 = vmatmul.mubr.msk.bf16.vlgmr.msra.gmra.mrb[16].mxu0 %vm431_vm7, %v481_v54 }
 0x3ed   :  { %843 = vmatpush1.bf16.msra.mxu1 %v1045_v12 }
 0x3ee   :  { %844 = vmatprep.subr.bf16.mxu1 %v1349_v59 }
 0x3f1   :  { %845 = vmatpush1.bf16.msra.mxu1 %v1046_v15 }
 0x3f2   :  { %846 = vmatprep.subr.bf16.mxu1 %v1349_v59 }
 0x3f5   :  { %847 = vmatpush1.bf16.msra.mxu1 %v1047_v17 }
 0x3f6   :  { %848 = vmatprep.subr.bf16.mxu1 %v1349_v59 }
 0x3f9   :  { %849 = vmatpush1.bf16.msra.mxu1 %v1048_v18 }
 0x3fa   :  { %850 = vmatprep.subr.bf16.mxu1 %v1349_v59 }
 0x3fd   :  { %851 = vmatpush1.bf16.msra.mxu1 %v1049_v26 }
 0x3fe   :  { %852 = vmatprep.subr.bf16.mxu1 %v1349_v59 }
 0x401   :  { %853 = vmatpush1.bf16.msra.mxu1 %v1050_v30 }
 0x4aa   :  { %v525_v3 = vpop.f32.mrb[12].mxu0 }
 0x4ab   :  { %v1607_v4 = vadd.f32 %v525_v3, %v428_v1  ;;  %v966_v5 = vpop.f32.mrb[13].mxu0 }
 0x4ac   :  { %v528_v7 = vpop.f32.mrb[14].mxu0 }
 0x4ad   :  { %v967_v8 = vpop.f32.mrb[15].mxu0  ;;  %v533_v9 = vrot.slane %v1607_v4, 1  ;;  %v540_v10 = vrot.slane %v1607_v4, 2  ;;  %v537_v34 = vrot.slane %v1607_v4, 7 }
 0x4af   :  { %v536_v11 = vsel %vm535_vm8, %v533_v9, 0.0  ;;  %v542_v14 = vsel %vm250_vm2, %v540_v10, 0.0  ;;  %v539_v35 = vsel %vm250_vm2, 0.0, %v537_v34 }
 0x4b0   :  { %v1012_v13 = vpack.i.bf16 %v536_v11, %v1607_v4  ;;  %v1027_v16 = vpack.i.bf16 %v542_v14, %v536_v11 }
 0x4b2   :  { %1013 = vrot.lane.b32.xlu0 %v1012_v13, %s1343_s6 }
 0x4b6   :  { %1028 = vrot.lane.b32.xlu0 %v1027_v16, %s1330_s27 }
 0x4be   :  { %v653_v19 = vpop.f32.mrb[16].mxu0 }
 0x4bf   :  { %v981_v20 = vadd.f32 %v653_v19, %v428_v1  ;;  %v978_v21 = vpop.f32.mrb[17].mxu0 }
 0x4c0   :  { %v656_v22 = vpop.f32.mrb[18].mxu0 }
 0x4c1   :  { %v979_v23 = vpop.f32.mrb[19].mxu0  ;;  %v661_v24 = vrot.slane %v981_v20, 1  ;;  %v667_v25 = vrot.slane %v981_v20, 2  ;;  %v664_v32 = vrot.slane %v981_v20, 7 }
 0x4c3   :  { %v663_v27 = vsel %vm535_vm8, %v661_v24, 0.0  ;;  %v669_v29 = vsel %vm250_vm2, %v667_v25, 0.0  ;;  %v666_v33 = vsel %vm250_vm2, 0.0, %v664_v32 }
 0x4c4   :  { %v1017_v28 = vpack.i.bf16 %v663_v27, %v981_v20  ;;  %v1022_v31 = vpack.i.bf16 %v669_v29, %v663_v27 }
 0x4c6   :  { %1018 = vrot.lane.b32.xlu1 %v1017_v28, %s1343_s6 }
 0x4ca   :  { %1023 = vrot.lane.b32.xlu1 %v1022_v31, %s1330_s27  ;;  %s1350_s27 = smov [#allocation20]  }
 0x4cb   :  { %s874_s0 = sshll.u32 %s1350_s27, 4  ;;  %s875_s0 = int_to_ptr.vmem [resolvable:$true] %s874_s0 }
 0x4cc   :  { %s1293_s18 = scalar_lea.vmem %s875_s0, 128  ;;  %p1298_p5 = scmp.lt.s32.totalorder %s875_s0, %s875_s0 }
 0x4cd   :  { %p1294_p4 = scmp.ne.s32.totalorder %s875_s0, %s1293_s18  ;;  %p1299_p6 = scmp.lt.s32.totalorder %s1293_s18, %s1293_s18 }
 0x4ce   :  { %678 = vrot.lane.b32.xlu1 %v666_v33, %s1348_s10 }
 0x4cf   :  { %p1300_p7 = por %p1299_p6, %p1298_p5 }
 0x4d1   :  { %p1301_p8 = pnand %p1300_p7, %p1294_p4 }
 0x4d2   :  { %551 = vrot.lane.b32.xlu1 %v539_v35, %s1348_s10 }
 0x524   :  { %v1014_v36 = vpop.permute.xlu0 %1013 }
 0x525   :  { %v1016_v41 = vunpack.i.h.bf16 %v1014_v36  ;;  %v1015_v48 = vunpack.i.l.bf16 %v1014_v36 }
 0x527   :  { %v566_v53 = vsel %vm311_vm5, %v1607_v4, %v1016_v41  ;;  %v561_v58 = vsel %vm311_vm5, %v1607_v4, %v1015_v48 }
 0x528   :  { %v1029_v38 = vpop.permute.xlu0 %1028 }
 0x529   :  { %v1031_v43 = vunpack.i.h.bf16 %v1029_v38  ;;  %v1030_v51 = vunpack.i.l.bf16 %v1029_v38 }
 0x52b   :  { %v567_v56 = vsel %vm562_vm9, %v566_v53, %v1031_v43  ;;  %v563_v61 = vsel %vm562_vm9, %v561_v58, %v1030_v51 }
 0x538   :  { %v1019_v37 = vpop.permute.xlu1 %1018 }
 0x539   :  { %v1021_v39 = vunpack.i.h.bf16 %v1019_v37  ;;  %v1020_v40 = vunpack.i.l.bf16 %v1019_v37 }
 0x53b   :  { %v691_v46 = vsel %vm311_vm5, %v981_v20, %v1021_v39  ;;  %v688_v47 = vsel %vm311_vm5, %v981_v20, %v1020_v40 }
 0x53c   :  { %v1024_v42 = vpop.permute.xlu1 %1023 }
 0x53d   :  { %v1026_v44 = vunpack.i.h.bf16 %v1024_v42  ;;  %v1025_v45 = vunpack.i.l.bf16 %v1024_v42 }
 0x53f   :  { %v692_v49 = vsel %vm562_vm9, %v691_v46, %v1026_v44  ;;  %v689_v50 = vsel %vm562_vm9, %v688_v47, %v1025_v45 }
 0x540   :  { %v679_v52 = vpop.permute.xlu1 %678  ;;  %v696_v54 = vrot.slane %v692_v49, 5 }
 0x541   :  { %v690_v55 = vsel %vm564_vm10, %v689_v50, %v679_v52 }
 0x542   :  { %v701_v57 = vsel %vm699_vm11, %v567_v56, %v696_v54  ;;  %v695_v60 = vrot.slane %v690_v55, 5 }
 0x543   :  { %v703_v59 = vpack.c.bf16 %v701_v57, %v701_v57 }
 0x544   :  { %v552_v62 = vpop.permute.xlu1 %551 }
 0x545   :  { %v565_v63 = vsel %vm564_vm10, %v563_v61, %v552_v62  ;;  %917 = vmatprep.mubr.msk.bf16.mxu1 %vm564_vm10, %v703_v59 }
 0x546   :  { %v700_v0 = vsel %vm699_vm11, %v565_v63, %v695_v60 }
 0x547   :  { %v702_v1 = vpack.c.bf16 %v700_v0, %v700_v0 }
 0x549   :  { %859 = vmatmul.mubr.bf16.vlgmr.msra.gmra.mrb[0].mxu1 %v702_v1 }
 0x61c   :  { %v860_v3 = vpop.f32.mrb[0].mxu1 }
 0x61d   :  { %v861_v5 = vadd.f32 %v902_v2, %v860_v3  ;;  %v862_v6 = vpop.f32.mrb[1].mxu1 }
 0x61e   :  { %v863_v4 = vpop.f32.mrb[2].mxu1 }
 0x61f   :  { %v864_v7 = vpop.f32.mrb[3].mxu1  ;;  %867 = vst.msk [vmem:[#allocation20] sm:$0x3f] %vm866_vm12, %v861_v5 }
 0x620   :  { %1304 = shalt.err (!%p1301_p8)
}
 0x621   :  { %s1305_s5 = scalar_lea.hbm %s1668_s11, 128 }
 0x622   :  { %p1306_p9 = scmp.ne.s32.totalorder %s1668_s11, %s1305_s5  ;;  %p1309_p10 = scmp.lt.u32.totalorder %s1305_s5, %s1668_s11 }
 0x624   :  { %p1311_p11 = pnand %p1309_p10, %p1306_p9 }
 0x626   :  { %1314 = shalt.err (!%p1311_p11)
}
 0x627   :  { %877 = dma.vmem_to_hbm [thread:$0]  %s875_s0, 128, %s1668_s11, [#allocation4]  }
 0x628   :  { %1327 = dma.done.wait [#allocation4], 128  }
 0x629   :  { %1328 = vsyncadd [#allocation4], 4294967168 }
 0x62a   :  { %881 = vsyncpa [#allocation3], 1 }
 0x62b   :  { %882 = vsyncpa [#allocation6], 1 }
 0x62c   :  { %883 = vsyncpa [#allocation9], 1 }
 0x62d   :  { %884 = vsyncpa [#allocation12], 1 }
 0x62e   :  { %885 = vsyncpa [#allocation15], 1 }
 0x62f   :  { %886 = vsyncpa [#allocation18], 1 }
 0x630   :  { %887 = vsyncpa [#allocation4], 1 }

// kernel: forward.4
= control target key start
LH: loop header
LB: loop body
LE: loop exit
PB: predicated region body
PF: predicated region fallthrough
CT: control target
= control target key end

     0   :  { %s5186_s0 = inlined_call_operand.hbm [shape: f32[6,96], index: 0, kind: input, shape index: {}]   ;;  %s5187_s1 = inlined_call_operand.hbm [shape: f32[2,1,96], index: 1, kind: input, shape index: {}]   ;;  %s5188_s2 = inlined_call_operand.hbm [shape: f32[2,1,96], index: 2, kind: input, shape index: {}]   ;;  %s5189_s3 = inlined_call_operand.hbm [shape: bf16[2,96,288], index: 3, kind: input, shape index: {}]   ;;  %s5190_s4 = inlined_call_operand.hbm [shape: bf16[2,96,96], index: 4, kind: input, shape index: {}]   ;;  %s5191_s5 = inlined_call_operand.hbm [shape: f32[2,1,96], index: 5, kind: input, shape index: {}]   ;;  %s5192_s6 = inlined_call_operand.hbm [shape: f32[2,1,96], index: 6, kind: input, shape index: {}]   ;;  %s5193_s7 = inlined_call_operand.hbm [shape: f32[2,1,96], index: 7, kind: input, shape index: {}]   ;;  %s5194_s8 = inlined_call_operand.hbm [shape: bf16[2,96,384], index: 8, kind: input, shape index: {}]   ;;  %s5195_s9 = inlined_call_operand.hbm [shape: f32[2,1,384], index: 9, kind: input, shape index: {}]   ;;  %s5196_s10 = inlined_call_operand.hbm [shape: bf16[2,384,96], index: 10, kind: input, shape index: {}]   ;;  %s5197_s11 = inlined_call_operand.hbm [shape: f32[2,1,96], index: 11, kind: input, shape index: {}]   ;;  %s5198_s12 = inlined_call_operand.hbm [shape: bf16[4,3], index: 12, kind: input, shape index: {}]   ;;  %s5199_s13 = inlined_call_operand.hbm [shape: bf16[3,4], index: 13, kind: input, shape index: {}]   ;;  %s5200_s14 = inlined_call_operand.hbm [shape: f32[96,8], index: 14, kind: input, shape index: {}]   ;;  %s5201_s15 = inlined_call_operand.hbm [shape: f32[8,96], index: 15, kind: input, shape index: {}]   ;;  %s5202_s16 = inlined_call_operand.hbm [shape: f32[6,96], index: 16, kind: output, shape index: {}]  }
   0x1   :  { %5240 = sst [smem:[#allocation48_spill]] %s5186_s0 }
   0x2   :  { %5241 = sst [smem:[#allocation49_spill]] %s5187_s1 }
   0x3   :  { %5242 = sst [smem:[#allocation50_spill]] %s5189_s3 }
   0x4   :  { %5243 = sst [smem:[#allocation51_spill]] %s5191_s5 }
   0x5   :  { %5244 = sst [smem:[#allocation52_spill]] %s5193_s7 }
   0x6   :  { %5245 = sst [smem:[#allocation53_spill]] %s5196_s10 }
   0x7   :  { %5246 = sst [smem:[#allocation54_spill]] %s5197_s11 }
   0x8   :  { %5247 = sst [smem:[#allocation55_spill]] %s5198_s12 }
   0x9   :  { %5248 = sst [smem:[#allocation56_spill]] %s5199_s13 }
   0xa   :  { %5249 = sst [smem:[#allocation57_spill]] %s5202_s16 }
   0xb   :  { %21 = vsyncpa [#allocation3], 0 }
   0xc   :  { %22 = vsyncpa [#allocation6], 0 }
   0xd   :  { %24 = vsyncpa [#allocation6 + $0x1], 0 }
   0xe   :  { %25 = vsyncpa [#allocation9], 0 }
   0xf   :  { %27 = vsyncpa [#allocation9 + $0x1], 0 }
  0x10   :  { %28 = vsyncpa [#allocation12], 0 }
  0x11   :  { %30 = vsyncpa [#allocation12 + $0x1], 0 }
  0x12   :  { %31 = vsyncpa [#allocation15], 0 }
  0x13   :  { %33 = vsyncpa [#allocation15 + $0x1], 0 }
  0x14   :  { %34 = vsyncpa [#allocation18], 0 }
  0x15   :  { %36 = vsyncpa [#allocation18 + $0x1], 0 }
  0x16   :  { %37 = vsyncpa [#allocation21], 0 }
  0x17   :  { %39 = vsyncpa [#allocation21 + $0x1], 0 }
  0x18   :  { %40 = vsyncpa [#allocation24], 0 }
  0x19   :  { %41 = vsyncpa [#allocation27], 0 }
  0x1a   :  { %42 = vsyncpa [#allocation4], 0  ;;  %s4290_s21 = smov 0   ;;  %s4292_s22 = smov 0  }
  0x1b   :  { %s4294_s23 = smov 0   ;;  %s4296_s24 = smov 0  }
  0x1c   :  { %s4298_s25 = smov 0   ;;  %s4300_s26 = smov 0  }
  0x1d LB: > { %5250 = sst [smem:[#allocation40_spill]] %s4157_s22  ;;  %s4319_s27 = sadd.s32 4294967295, %s4173_s26   ;;  %s4173_s26 = sphi %s4300_s26, %s48_s26   ;;  %s4169_s25 = sphi %s4298_s25, %s5316_s25   ;;  %s4165_s24 = sphi %s4296_s24, %s5315_s24   ;;  %s4161_s23 = sphi %s4294_s23, %s5314_s23   ;;  %s4157_s22 = sphi %s4292_s22, %s5313_s22   ;;  %s4153_s21 = sphi %s4290_s21, %s5310_s21  }
  0x1e   : > { %5251 = sst [smem:[#allocation41_spill]] %s4165_s24  ;;  %p100_p0 = scmp.ne.s32.totalorder %s4161_s23, %s4157_s22 }
  0x1f   : > { %5252 = sst [smem:[#allocation42_spill]] %s4173_s26  ;;  %p101_p1 = scmp.eq.s32.totalorder %s4173_s26, 0 }
  0x20   : > { %5253 = sst [smem:[#allocation43_spill]] %s4319_s27  ;;  %p106_p2 = scmp.ne.s32.totalorder %s4157_s22, %s4153_s21 }
  0x21   : > { %p5212_p3 = scmp.eq.s32.totalorder %s4319_s27, 0  ;;  %p102_p4 = por %p101_p1, %p100_p0 }
  0x22   : > { %p2903_p5 = scmp.ge.s32.totalorder %s4173_s26, 1  ;;  %p487_p7 = scmp.lt.s32.totalorder %s4173_s26, 3 }
  0x23   : > { %p4330_p6 = por %p5212_p3, %p106_p2  ;;  %s4175_s0 = smov [#allocation22]  }
  0x24   : > { %p4335_p8 = pnand %p2903_p5, %p487_p7  ;;  %s513_s17 = sshll.u32 %s4175_s0, 4  ;;  %s514_s17 = int_to_ptr.vmem [resolvable:$true] %s513_s17 }
  0x25   : > { %s5254_s29 = scalar_select %p4330_p6, 1, 0 }
  0x26   : > { %s5256_s30 = scalar_select %p4335_p8, 1, 0 }
  0x27   : > { %5255 = sst [smem:[#allocation44_spill]] %s5254_s29  ;;  %p3361_p9 = pneg %p4335_p8 }
  0x28   : > { %5257 = sst [smem:[#allocation45_spill]] %s5256_s30  ;;  %p3416_p10 = scmp.lt.s32.totalorder %s4173_s26, 2 }
  0x29   : > { %p4344_p11 = pnand %p3361_p9, %p5212_p3  ;;  %s4176_s20 = smov [#allocation23]  }
  0x2a   : > { %p4348_p12 = pnand %p3416_p10, %p102_p4  ;;  %s524_s21 = sshll.u32 %s4176_s20, 4  ;;  %s525_s21 = int_to_ptr.vmem [resolvable:$true] %s524_s21 }
  0x2b   : > { %s5258_s18 = scalar_select %p4344_p11, 1, 0 }
  0x2c   : > { %s5259_s19 = scalar_select %p4348_p12, 1, 0 }
  0x2d   : > { %s5260_s12 = sld [smem:[#allocation55_spill]]  ;;  %p4360_p0 = pneg %p4344_p11 }
  0x2f   : > { %s5261_s22 = scalar_select %p4360_p0, 1, 0 }
  0x33   : > { %s3587_s0 = scalar_lea.hbm %s5260_s12, 32 }
  0x34   : > { %p3588_p13 = scmp.ne.s32.totalorder %s5260_s12, %s3587_s0  ;;  %p3594_p4 = scmp.lt.u32.totalorder %s3587_s0, %s5260_s12 }
  0x36   : > { %p3590_p1 = pnand %p4360_p0, %p3588_p13 }
  0x38   : > { %p3591_p2 = pneg %p3590_p1 }
  0x3a   : > { %p3596_p5 = pnand %p3594_p4, %p3591_p2 }
  0x3c   : > { %3599 = shalt.err (!%p3596_p5)
}
  0x3d   : > { %s3600_s16 = scalar_lea.vmem %s514_s17, 32  ;;  %p3608_p3 = scmp.lt.s32.totalorder %s514_s17, %s514_s17 }
  0x3e   : > { %p3601_p7 = scmp.ne.s32.totalorder %s514_s17, %s3600_s16  ;;  %p3609_p6 = scmp.lt.s32.totalorder %s3600_s16, %s3600_s16 }
  0x40   : > { %p3603_p9 = pnand %p3601_p7, %p4360_p0  ;;  %p3610_p8 = por %p3609_p6, %p3608_p3 }
  0x42   : > { %p3604_p10 = pneg %p3603_p9 }
  0x44   : > { %p3611_p12 = pnand %p3610_p8, %p3604_p10 }
  0x46   : > { %3614 = shalt.err (!%p3611_p12)
}
  0x47   : > { %3367 = dma.hbm_to_vmem [thread:$0]  (!%p4344_p11), %s5260_s12, 32, %s514_s17, [#allocation21]  }
  0x48   : > { %s57_s27 = sadd.s32 1, %s4169_s25  ;;  %s5262_s13 = sld [smem:[#allocation56_spill]] }
  0x4e   : > { %s3615_s20 = scalar_lea.hbm %s5262_s13, 32 }
  0x4f   : > { %p3616_p3 = scmp.ne.s32.totalorder %s5262_s13, %s3615_s20  ;;  %p3622_p12 = scmp.lt.u32.totalorder %s3615_s20, %s5262_s13 }
  0x51   : > { %p3618_p6 = pnand %p3616_p3, %p4360_p0 }
  0x53   : > { %p3619_p8 = pneg %p3618_p6 }
  0x55   : > { %p3624_p13 = pnand %p3622_p12, %p3619_p8 }
  0x57   : > { %3627 = shalt.err (!%p3624_p13)
}
  0x58   : > { %s3628_s17 = scalar_lea.vmem %s525_s21, 32  ;;  %p3636_p5 = scmp.lt.s32.totalorder %s525_s21, %s525_s21 }
  0x59   : > { %p3629_p1 = scmp.ne.s32.totalorder %s525_s21, %s3628_s17  ;;  %p3637_p7 = scmp.lt.s32.totalorder %s3628_s17, %s3628_s17 }
  0x5b   : > { %p3631_p2 = pnand %p3629_p1, %p4360_p0  ;;  %p3638_p9 = por %p3637_p7, %p3636_p5 }
  0x5d   : > { %p3632_p4 = pneg %p3631_p2 }
  0x5f   : > { %p3639_p10 = pnand %p3638_p9, %p3632_p4 }
  0x61   : > { %3642 = shalt.err (!%p3639_p10)
}
  0x62   : > { %3370 = dma.hbm_to_vmem [thread:$0]  (!%p4344_p11), %s5262_s13, 32, %s525_s21, [#allocation24]  }
  0x63   : > { %p58_p3 = scmp.ge.s32.totalorder %s57_s27, 2  ;;  %s4396_s10 = sand.u32 1, %s4173_s26  }
  0x64   : > { %s4399_s28 = sand.u32 1, %s4161_s23   ;;  %s4404_s29 = sshll.u32 %s4169_s25, 4 }
  0x65   : > { %s5318_s27 = smov (%p58_p3, %s57_s27), 0  ;;  %s5264_s1 = sld [smem:[#allocation49_spill]] }
  0x66   : > { %5263 = sst [smem:[#allocation46_spill]] %s5318_s27  ;;  %s90_s30 = ssub.s32 %s4169_s25, %s5318_s27 }
  0x67   : > { %p91_p6 = scmp.eq.s32.totalorder %s90_s30, 0  ;;  %s562_s21 = scalar_lea.vmem [#allocation5], %s4399_s28 }
  0x68   : > { %s569_s17 = sshll.u32 %s562_s21, 4  ;;  %s5265_s11 = sadd.s32 1, %s4161_s23  ;;  %s4415_s17 = int_to_ptr.vmem [resolvable:$true] %s569_s17 }
  0x69   : > { %s4420_s24 = scalar_select %p91_p6, %s4161_s23, %s5265_s11  }
  0x6a   : > { %s5226_s12 = scalar_lea.sflag [#allocation6], %s4396_s10  ;;  %p5267_p12 = scmp.ne.s32.totalorder %s5259_s19, 0 }
  0x6b   : > { %s4412_s16 = scalar_lea.hbm %s5264_s1, %s4404_s29  ;;  %5266 = sst [smem:[#allocation47_spill]] %s4420_s24 }
  0x6c   : > { %s3643_s13 = scalar_lea.hbm %s4412_s16, 16  ;;  %p4427_p13 = pneg %p5267_p12 }
  0x6d   : > { %p3644_p8 = scmp.ne.s32.totalorder %s4412_s16, %s3643_s13  ;;  %s3648_s21 = scalar_lea.hbm %s5264_s1, 32 }
  0x6e   : > { %s5268_s20 = scalar_select %p4427_p13, 1, 0 }
  0x6f   : > { %p3646_p1 = pnand %p4427_p13, %p3644_p8  ;;  %p3649_p4 = scmp.lt.u32.totalorder %s4412_s16, %s5264_s1 }
  0x70   : > { %p3650_p5 = scmp.lt.u32.totalorder %s3648_s21, %s3643_s13  ;;  %p3652_p9 = scmp.lt.u32.totalorder %s3643_s13, %s4412_s16 }
  0x71   : > { %p3647_p2 = pneg %p3646_p1 }
  0x72   : > { %p3651_p7 = por %p3650_p5, %p3649_p4 }
  0x74   : > { %p3653_p10 = por %p3652_p9, %p3651_p7 }
  0x76   : > { %p3654_p3 = pnand %p3653_p10, %p3647_p2 }
  0x78   : > { %3657 = shalt.err (!%p3654_p3)
}
  0x79   : > { %s3658_s11 = scalar_lea.vmem %s4415_s17, 16  ;;  %s4177_s30 = smov [#allocation5]  }
  0x7a   : > { %p3659_p6 = scmp.ne.s32.totalorder %s4415_s17, %s3658_s11  ;;  %s3663_s0 = sshll.u32 %s4177_s30, 4  ;;  %s3664_s0 = int_to_ptr.vmem [resolvable:$false] %s3663_s0 }
  0x7b   : > { %s3665_s26 = scalar_lea.vmem %s3664_s0, 32  ;;  %p3666_p11 = scmp.lt.s32.totalorder %s4415_s17, %s3664_s0 }
  0x7c   : > { %p3661_p8 = pnand %p3659_p6, %p4427_p13  ;;  %p3667_p0 = scmp.lt.s32.totalorder %s3665_s26, %s3658_s11 }
  0x7e   : > { %p3662_p1 = pneg %p3661_p8  ;;  %p3668_p4 = por %p3667_p0, %p3666_p11 }
  0x80   : > { %p3669_p5 = pnand %p3668_p4, %p3662_p1 }
  0x82   : > { %3672 = shalt.err (!%p3669_p5)
}
  0x83   : > { %3380 = dma.hbm_to_vmem [thread:$0]  (!%p5267_p12), %s4412_s16, 16, %s4415_s17, %s5226_s12  }
  0x84   : > { %s5225_s13 = smul.u32 144, %s4399_s28  ;;  %s5269_s3 = sld [smem:[#allocation50_spill]] }
  0x85   : > { %s5224_s27 = smul.u32 2304, %s4169_s25  ;;  %s5233_s1 = scalar_lea.sflag [#allocation9], %s4396_s10 }
  0x86   : > { %s597_s0 = scalar_lea.vmem [#allocation8], %s5225_s13 }
  0x87   : > { %s604_s26 = sshll.u32 %s597_s0, 4  ;;  %s4463_s26 = int_to_ptr.vmem [resolvable:$true] %s604_s26 }
  0x8a   : > { %s4459_s30 = scalar_lea.hbm %s5269_s3, %s5224_s27  ;;  %s3678_s21 = scalar_lea.hbm %s5269_s3, 4608 }
  0x8b   : > { %s3673_s24 = scalar_lea.hbm %s4459_s30, 2304  ;;  %p3679_p7 = scmp.lt.u32.totalorder %s4459_s30, %s5269_s3 }
  0x8c   : > { %p3674_p11 = scmp.ne.s32.totalorder %s4459_s30, %s3673_s24  ;;  %p3680_p9 = scmp.lt.u32.totalorder %s3678_s21, %s3673_s24 }
  0x8d   : > { %p3682_p3 = scmp.lt.u32.totalorder %s3673_s24, %s4459_s30 }
  0x8e   : > { %p3676_p0 = pnand %p3674_p11, %p4427_p13  ;;  %p3681_p10 = por %p3680_p9, %p3679_p7 }
  0x90   : > { %p3677_p2 = pneg %p3676_p0  ;;  %p3683_p6 = por %p3682_p3, %p3681_p10 }
  0x92   : > { %p3684_p8 = pnand %p3683_p6, %p3677_p2 }
  0x94   : > { %3687 = shalt.err (!%p3684_p8)
}
  0x95   : > { %s3688_s0 = scalar_lea.vmem %s4463_s26, 2304  ;;  %s4178_s16 = smov [#allocation8]  }
  0x96   : > { %p3689_p1 = scmp.ne.s32.totalorder %s4463_s26, %s3688_s0  ;;  %s3693_s17 = sshll.u32 %s4178_s16, 4  ;;  %s3694_s17 = int_to_ptr.vmem [resolvable:$false] %s3693_s17 }
  0x97   : > { %s3695_s27 = scalar_lea.vmem %s3694_s17, 4608  ;;  %p3696_p11 = scmp.lt.s32.totalorder %s4463_s26, %s3694_s17 }
  0x98   : > { %p3691_p4 = pnand %p3689_p1, %p4427_p13  ;;  %p3697_p0 = scmp.lt.s32.totalorder %s3695_s27, %s3688_s0 }
  0x9a   : > { %p3692_p5 = pneg %p3691_p4  ;;  %p3698_p7 = por %p3697_p0, %p3696_p11 }
  0x9c   : > { %p3699_p9 = pnand %p3698_p7, %p3692_p5 }
  0x9e   : > { %3702 = shalt.err (!%p3699_p9)
}
  0x9f   : > { %s5227_s24 = smov 192   ;;  %s5228_s21 = smov 12  }
  0xa0   : > { %3386 = dma.hbm_to_vmem [thread:$0]  (!%p5267_p12), %s4459_s30, 2304, %s4463_s26, %s5233_s1, %s5227_s24, %s5227_s24, %s5228_s21  }
  0xa1   : > { %s5270_s5 = sld [smem:[#allocation51_spill]]  ;;  %s638_s17 = scalar_lea.vmem [#allocation11], %s4399_s28 }
  0xa2   : > { %s645_s27 = sshll.u32 %s638_s17, 4  ;;  %s5230_s13 = scalar_lea.sflag [#allocation12], %s4396_s10  ;;  %s646_s27 = int_to_ptr.vmem [resolvable:$true] %s645_s27 }
  0xa7   : > { %s4496_s16 = scalar_lea.hbm %s5270_s5, %s4404_s29  ;;  %s3708_s26 = scalar_lea.hbm %s5270_s5, 32 }
  0xa8   : > { %s3703_s12 = scalar_lea.hbm %s4496_s16, 16  ;;  %p3709_p6 = scmp.lt.u32.totalorder %s4496_s16, %s5270_s5 }
  0xa9   : > { %p3704_p2 = scmp.ne.s32.totalorder %s4496_s16, %s3703_s12  ;;  %p3710_p8 = scmp.lt.u32.totalorder %s3708_s26, %s3703_s12 }
  0xaa   : > { %p3712_p4 = scmp.lt.u32.totalorder %s3703_s12, %s4496_s16 }
  0xab   : > { %p3706_p10 = pnand %p3704_p2, %p4427_p13  ;;  %p3711_p1 = por %p3710_p8, %p3709_p6 }
  0xad   : > { %p3707_p3 = pneg %p3706_p10  ;;  %p3713_p5 = por %p3712_p4, %p3711_p1 }
  0xaf   : > { %p3714_p11 = pnand %p3713_p5, %p3707_p3 }
  0xb1   : > { %3717 = shalt.err (!%p3714_p11)
}
  0xb2   : > { %s3718_s17 = scalar_lea.vmem %s646_s27, 16  ;;  %s4181_s24 = smov [#allocation11]  }
  0xb3   : > { %p3719_p0 = scmp.ne.s32.totalorder %s646_s27, %s3718_s17  ;;  %s3723_s21 = sshll.u32 %s4181_s24, 4  ;;  %s3724_s21 = int_to_ptr.vmem [resolvable:$false] %s3723_s21 }
  0xb4   : > { %s3725_s3 = scalar_lea.vmem %s3724_s21, 32  ;;  %p3726_p2 = scmp.lt.s32.totalorder %s646_s27, %s3724_s21 }
  0xb5   : > { %p3721_p7 = pnand %p3719_p0, %p4427_p13  ;;  %p3727_p10 = scmp.lt.s32.totalorder %s3725_s3, %s3718_s17 }
  0xb7   : > { %p3722_p9 = pneg %p3721_p7  ;;  %p3728_p12 = por %p3727_p10, %p3726_p2 }
  0xb9   : > { %p3729_p6 = pnand %p3728_p12, %p3722_p9 }
  0xbb   : > { %3732 = shalt.err (!%p3729_p6)
}
  0xbc   : > { %p5271_p8 = scmp.ne.s32.totalorder %s5259_s19, 0  ;;  %s5272_s7 = sld [smem:[#allocation52_spill]] }
  0xbd   : > { %s672_s21 = scalar_lea.vmem [#allocation14], %s4399_s28  ;;  %s3307_s11 = smul.u32 3, %s4399_s28 }
  0xbe   : > { %3392 = dma.hbm_to_vmem [thread:$0]  (!%p5271_p8), %s4496_s16, 16, %s646_s27, %s5230_s13  }
  0xbf   : > { %s679_s26 = sshll.u32 %s672_s21, 4  ;;  %s5231_s0 = scalar_lea.sflag [#allocation15], %s4396_s10  ;;  %s4526_s26 = int_to_ptr.vmem [resolvable:$true] %s679_s26 }
  0xc2   : > { %s4523_s30 = scalar_lea.hbm %s5272_s7, %s4404_s29  ;;  %s3738_s3 = scalar_lea.hbm %s5272_s7, 32 }
  0xc3   : > { %s3733_s17 = scalar_lea.hbm %s4523_s30, 16  ;;  %p3739_p4 = scmp.lt.u32.totalorder %s4523_s30, %s5272_s7 }
  0xc4   : > { %p3734_p12 = scmp.ne.s32.totalorder %s4523_s30, %s3733_s17  ;;  %p3740_p5 = scmp.lt.u32.totalorder %s3738_s3, %s3733_s17 }
  0xc5   : > { %p3742_p0 = scmp.lt.u32.totalorder %s3733_s17, %s4523_s30 }
  0xc6   : > { %p3736_p3 = pnand %p3734_p12, %p4427_p13  ;;  %p3741_p11 = por %p3740_p5, %p3739_p4 }
  0xc8   : > { %p3737_p1 = pneg %p3736_p3  ;;  %p3743_p7 = por %p3742_p0, %p3741_p11 }
  0xca   : > { %p3744_p9 = pnand %p3743_p7, %p3737_p1 }
  0xcc   : > { %3747 = shalt.err (!%p3744_p9)
}
  0xcd   : > { %s3748_s21 = scalar_lea.vmem %s4526_s26, 16  ;;  %s4182_s16 = smov [#allocation14]  }
  0xce   : > { %p3749_p2 = scmp.ne.s32.totalorder %s4526_s26, %s3748_s21  ;;  %s3753_s27 = sshll.u32 %s4182_s16, 4  ;;  %s3754_s27 = int_to_ptr.vmem [resolvable:$false] %s3753_s27 }
  0xcf   : > { %s3755_s12 = scalar_lea.vmem %s3754_s27, 32  ;;  %p3756_p12 = scmp.lt.s32.totalorder %s4526_s26, %s3754_s27 }
  0xd0   : > { %p3751_p10 = pnand %p3749_p2, %p4427_p13  ;;  %p3757_p3 = scmp.lt.s32.totalorder %s3755_s12, %s3748_s21 }
  0xd2   : > { %p3752_p6 = pneg %p3751_p10  ;;  %p3758_p4 = por %p3757_p3, %p3756_p12 }
  0xd4   : > { %p3759_p5 = pnand %p3758_p4, %p3752_p6 }
  0xd6   : > { %3762 = shalt.err (!%p3759_p5)
}
  0xd7   : > { %3398 = dma.hbm_to_vmem [thread:$0]  (!%p5271_p8), %s4523_s30, 16, %s4526_s26, %s5231_s0  }
  0xd8   : > { %s3308_s17 = smul.u32 48, %s4169_s25  ;;  %s711_s3 = scalar_lea.vmem [#allocation17], %s3307_s11 }
  0xd9   : > { %s719_s24 = sshll.u32 %s711_s3, 4  ;;  %s5236_s12 = scalar_lea.sflag [#allocation18], %s4396_s10  ;;  %s720_s24 = int_to_ptr.vmem [resolvable:$true] %s719_s24 }
  0xda   : > { %s4559_s27 = scalar_lea.hbm %s5195_s9, %s3308_s17  ;;  %s3768_s11 = scalar_lea.hbm %s5195_s9, 96 }
  0xdb   : > { %s3763_s13 = scalar_lea.hbm %s4559_s27, 48  ;;  %p3769_p7 = scmp.lt.u32.totalorder %s4559_s27, %s5195_s9 }
  0xdc   : > { %p3764_p1 = scmp.ne.s32.totalorder %s4559_s27, %s3763_s13  ;;  %p3770_p9 = scmp.lt.u32.totalorder %s3768_s11, %s3763_s13 }
  0xdd   : > { %p3772_p10 = scmp.lt.u32.totalorder %s3763_s13, %s4559_s27 }
  0xde   : > { %p3766_p11 = pnand %p3764_p1, %p4427_p13  ;;  %p3771_p2 = por %p3770_p9, %p3769_p7 }
  0xe0   : > { %p3767_p0 = pneg %p3766_p11  ;;  %p3773_p6 = por %p3772_p10, %p3771_p2 }
  0xe2   : > { %p3774_p12 = pnand %p3773_p6, %p3767_p0 }
  0xe4   : > { %3777 = shalt.err (!%p3774_p12)
}
  0xe5   : > { %s3778_s17 = scalar_lea.vmem %s720_s24, 48  ;;  %s4183_s16 = smov [#allocation17]  }
  0xe6   : > { %p3779_p3 = scmp.ne.s32.totalorder %s720_s24, %s3778_s17  ;;  %s3783_s21 = sshll.u32 %s4183_s16, 4  ;;  %s3784_s21 = int_to_ptr.vmem [resolvable:$false] %s3783_s21 }
  0xe7   : > { %s3785_s30 = scalar_lea.vmem %s3784_s21, 96  ;;  %p3786_p1 = scmp.lt.s32.totalorder %s720_s24, %s3784_s21 }
  0xe8   : > { %p3781_p4 = pnand %p3779_p3, %p4427_p13  ;;  %p3787_p11 = scmp.lt.s32.totalorder %s3785_s30, %s3778_s17 }
  0xea   : > { %p3782_p5 = pneg %p3781_p4  ;;  %p3788_p8 = por %p3787_p11, %p3786_p1 }
  0xec   : > { %p3789_p7 = pnand %p3788_p8, %p3782_p5 }
  0xee   : > { %3792 = shalt.err (!%p3789_p7)
}
  0xef   : > { %p5273_p9 = scmp.ne.s32.totalorder %s5259_s19, 0  ;;  %s4184_s13 = smov [#allocation2]  }
  0xf0   : > { %s502_s0 = sshll.u32 %s4184_s13, 4  ;;  %s4185_s26 = smov [#allocation25]   ;;  %s503_s0 = int_to_ptr.vmem [resolvable:$true] %s502_s0 }
  0xf1   : > { %3404 = dma.hbm_to_vmem [thread:$0]  (!%p5273_p9), %s4559_s27, 48, %s720_s24, %s5236_s12  }
  0xf2   : > { %s534_s11 = sshll.u32 %s4185_s26, 4  ;;  %s5274_s1 = sld [smem:[#allocation48_spill]]  ;;  %s535_s11 = int_to_ptr.vmem [resolvable:$true] %s534_s11 }
  0xf3   : > { %p5275_p0 = scmp.ne.s32.totalorder %s5261_s22, 0 }
  0xf8   : > { %s3793_s21 = scalar_lea.hbm %s5274_s1, 128 }
  0xf9   : > { %p3794_p8 = scmp.ne.s32.totalorder %s5274_s1, %s3793_s21  ;;  %p3800_p6 = scmp.lt.u32.totalorder %s3793_s21, %s5274_s1 }
  0xfb   : > { %p3796_p2 = pnand %p3794_p8, %p5275_p0 }
  0xfd   : > { %p3797_p10 = pneg %p3796_p2 }
  0xff   : > { %p3802_p12 = pnand %p3800_p6, %p3797_p10 }
 0x101   : > { %3805 = shalt.err (!%p3802_p12)
}
 0x102   : > { %s3806_s24 = scalar_lea.vmem %s503_s0, 128  ;;  %p3814_p1 = scmp.lt.s32.totalorder %s503_s0, %s503_s0 }
 0x103   : > { %p3807_p3 = scmp.ne.s32.totalorder %s503_s0, %s3806_s24  ;;  %p3815_p11 = scmp.lt.s32.totalorder %s3806_s24, %s3806_s24 }
 0x105   : > { %p3809_p4 = pnand %p3807_p3, %p5275_p0  ;;  %p3816_p7 = por %p3815_p11, %p3814_p1 }
 0x107   : > { %p3810_p5 = pneg %p3809_p4 }
 0x109   : > { %p3817_p9 = pnand %p3816_p7, %p3810_p5 }
 0x10b   : > { %3820 = shalt.err (!%p3817_p9)
}
 0x10c   : > { %p5276_p8 = scmp.ne.s32.totalorder %s5258_s18, 0  ;;  %s3821_s26 = scalar_lea.hbm %s5200_s14, 1536 }
 0x10d   : > { %p3822_p2 = scmp.ne.s32.totalorder %s5200_s14, %s3821_s26  ;;  %p3828_p9 = scmp.lt.u32.totalorder %s3821_s26, %s5200_s14 }
 0x10e   : > { %3364 = dma.hbm_to_vmem [thread:$0]  (!%p5276_p8), %s5274_s1, 128, %s503_s0, [#allocation3]  }
 0x10f   : > { %p3824_p10 = pnand %p3822_p2, %p5275_p0 }
 0x111   : > { %p3825_p6 = pneg %p3824_p10 }
 0x113   : > { %p3830_p12 = pnand %p3828_p9, %p3825_p6 }
 0x115   : > { %3833 = shalt.err (!%p3830_p12)
}
 0x116   : > { %s3834_s30 = scalar_lea.vmem %s535_s11, 1536  ;;  %p3842_p1 = scmp.lt.s32.totalorder %s535_s11, %s535_s11 }
 0x117   : > { %p3835_p3 = scmp.ne.s32.totalorder %s535_s11, %s3834_s30  ;;  %p3843_p11 = scmp.lt.s32.totalorder %s3834_s30, %s3834_s30 }
 0x119   : > { %p3837_p4 = pnand %p3835_p3, %p5275_p0  ;;  %p3844_p7 = por %p3843_p11, %p3842_p1 }
 0x11b   : > { %p3838_p5 = pneg %p3837_p4 }
 0x11d   : > { %p3845_p13 = pnand %p3844_p7, %p3838_p5 }
 0x11f   : > { %3848 = shalt.err (!%p3845_p13)
}
 0x120   : > { %s4186_s0 = smov 128   ;;  %s4187_s24 = smov 8  }
 0x121   : > { %3373 = dma.hbm_to_vmem [thread:$0]  (!%p5276_p8), %s5200_s14, 1536, %s535_s11, [#allocation24], %s4186_s0, %s4186_s0, %s4187_s24  }
 0x122   : > { %s4188_s5 = smov [#allocation26]   ;;  %s4621_s16 = scalar_lea.hbm %s5188_s2, %s4404_s29 }
 0x123   : > { %s548_s7 = sshll.u32 %s4188_s5, 4  ;;  %s3849_s30 = scalar_lea.hbm %s5201_s15, 128  ;;  %s549_s7 = int_to_ptr.vmem [resolvable:$true] %s548_s7 }
 0x124   : > { %p3850_p13 = scmp.ne.s32.totalorder %s5201_s15, %s3849_s30  ;;  %p3856_p6 = scmp.lt.u32.totalorder %s3849_s30, %s5201_s15 }
 0x126   : > { %p3852_p2 = pnand %p3850_p13, %p5275_p0 }
 0x128   : > { %p3853_p10 = pneg %p3852_p2 }
 0x12a   : > { %p3858_p9 = pnand %p3856_p6, %p3853_p10 }
 0x12c   : > { %3861 = shalt.err (!%p3858_p9)
}
 0x12d   : > { %s3862_s24 = scalar_lea.vmem %s549_s7, 128  ;;  %p3870_p5 = scmp.lt.s32.totalorder %s549_s7, %s549_s7 }
 0x12e   : > { %p3863_p12 = scmp.ne.s32.totalorder %s549_s7, %s3862_s24  ;;  %p3871_p1 = scmp.lt.s32.totalorder %s3862_s24, %s3862_s24 }
 0x130   : > { %p3865_p3 = pnand %p3863_p12, %p5275_p0  ;;  %p3872_p11 = por %p3871_p1, %p3870_p5 }
 0x132   : > { %p3866_p4 = pneg %p3865_p3 }
 0x134   : > { %p3873_p7 = pnand %p3872_p11, %p3866_p4 }
 0x136   : > { %3876 = shalt.err (!%p3873_p7)
}
 0x137   : > { %3376 = dma.hbm_to_vmem [thread:$0]  (!%p5276_p8), %s5201_s15, 128, %s549_s7, [#allocation27]  }
 0x138   : > { %s579_s22 = scalar_lea.vmem [#allocation7], %s4399_s28  ;;  %s3303_s13 = smul.u32 48, %s4399_s28 }
 0x139   : > { %s586_s27 = sshll.u32 %s579_s22, 4  ;;  %s3304_s5 = smul.u32 768, %s4169_s25  ;;  %s587_s27 = int_to_ptr.vmem [resolvable:$true] %s586_s27 }
 0x13a   : > { %s3877_s26 = scalar_lea.hbm %s4621_s16, 16  ;;  %p5277_p13 = scmp.ne.s32.totalorder %s5268_s20, 0 }
 0x13b   : > { %p3878_p0 = scmp.ne.s32.totalorder %s4621_s16, %s3877_s26  ;;  %s3882_s21 = scalar_lea.hbm %s5188_s2, 32 }
 0x13c   : > { %p3883_p6 = scmp.lt.u32.totalorder %s4621_s16, %s5188_s2  ;;  %p3884_p9 = scmp.lt.u32.totalorder %s3882_s21, %s3877_s26 }
 0x13d   : > { %p3880_p2 = pnand %p3878_p0, %p5277_p13  ;;  %p3886_p12 = scmp.lt.u32.totalorder %s3877_s26, %s4621_s16 }
 0x13e   : > { %p3885_p8 = por %p3884_p9, %p3883_p6 }
 0x13f   : > { %p3881_p10 = pneg %p3880_p2 }
 0x140   : > { %p3887_p3 = por %p3886_p12, %p3885_p8 }
 0x142   : > { %p3888_p4 = pnand %p3887_p3, %p3881_p10 }
 0x144   : > { %3891 = shalt.err (!%p3888_p4)
}
 0x145   : > { %s3892_s7 = scalar_lea.vmem %s587_s27, 16  ;;  %s4189_s11 = smov [#allocation7]  }
 0x146   : > { %p3893_p5 = scmp.ne.s32.totalorder %s587_s27, %s3892_s7  ;;  %s3897_s0 = sshll.u32 %s4189_s11, 4  ;;  %s3898_s0 = int_to_ptr.vmem [resolvable:$false] %s3897_s0 }
 0x147   : > { %s3899_s24 = scalar_lea.vmem %s3898_s0, 32  ;;  %p3900_p7 = scmp.lt.s32.totalorder %s587_s27, %s3898_s0 }
 0x148   : > { %p3895_p1 = pnand %p3893_p5, %p5277_p13  ;;  %p3901_p0 = scmp.lt.s32.totalorder %s3899_s24, %s3892_s7 }
 0x14a   : > { %p3896_p11 = pneg %p3895_p1  ;;  %p3902_p2 = por %p3901_p0, %p3900_p7 }
 0x14c   : > { %p3903_p6 = pnand %p3902_p2, %p3896_p11 }
 0x14e   : > { %3906 = shalt.err (!%p3903_p6)
}
 0x14f   : > { %p5278_p9 = scmp.ne.s32.totalorder %s5259_s19, 0  ;;  %s5279_s1 = scalar_lea.sflag [#allocation6], %s4396_s10 }
 0x150   : > { %s4666_s26 = scalar_lea.hbm %s5190_s4, %s3304_s5  ;;  %s618_s18 = scalar_lea.vmem [#allocation10], %s3303_s13 }
 0x151   : > { %3383 = dma.hbm_to_vmem [thread:$0]  (!%p5278_p9), %s4621_s16, 16, %s587_s27, %s5279_s1  }
 0x152   : > { %s625_s3 = sshll.u32 %s618_s18, 4  ;;  %s3907_s21 = scalar_lea.hbm %s4666_s26, 768  ;;  %s4670_s3 = int_to_ptr.vmem [resolvable:$true] %s625_s3 }
 0x153   : > { %p3908_p10 = scmp.ne.s32.totalorder %s4666_s26, %s3907_s21  ;;  %s3912_s17 = scalar_lea.hbm %s5190_s4, 1536 }
 0x154   : > { %p3913_p3 = scmp.lt.u32.totalorder %s4666_s26, %s5190_s4  ;;  %p3914_p4 = scmp.lt.u32.totalorder %s3912_s17, %s3907_s21 }
 0x155   : > { %p3910_p8 = pnand %p3908_p10, %p5277_p13  ;;  %p3916_p1 = scmp.lt.u32.totalorder %s3907_s21, %s4666_s26 }
 0x156   : > { %p3915_p5 = por %p3914_p4, %p3913_p3 }
 0x157   : > { %p3911_p12 = pneg %p3910_p8 }
 0x158   : > { %p3917_p11 = por %p3916_p1, %p3915_p5 }
 0x15a   : > { %p3918_p7 = pnand %p3917_p11, %p3911_p12 }
 0x15c   : > { %3921 = shalt.err (!%p3918_p7)
}
 0x15d   : > { %s3922_s13 = scalar_lea.vmem %s4670_s3, 768  ;;  %s4190_s7 = smov [#allocation10]  }
 0x15e   : > { %p3923_p0 = scmp.ne.s32.totalorder %s4670_s3, %s3922_s13  ;;  %s3927_s11 = sshll.u32 %s4190_s7, 4  ;;  %s3928_s11 = int_to_ptr.vmem [resolvable:$false] %s3927_s11 }
 0x15f   : > { %s3929_s0 = scalar_lea.vmem %s3928_s11, 1536  ;;  %p3930_p10 = scmp.lt.s32.totalorder %s4670_s3, %s3928_s11 }
 0x160   : > { %p3925_p2 = pnand %p3923_p0, %p5277_p13  ;;  %p3931_p8 = scmp.lt.s32.totalorder %s3929_s0, %s3922_s13 }
 0x162   : > { %p3926_p6 = pneg %p3925_p2  ;;  %p3932_p3 = por %p3931_p8, %p3930_p10 }
 0x164   : > { %p3933_p4 = pnand %p3932_p3, %p3926_p6 }
 0x166   : > { %3936 = shalt.err (!%p3933_p4)
}
 0x167   : > { %s4191_s24 = smov 64   ;;  %s4192_s1 = smov 4  }
 0x168   : > { %s5280_s12 = scalar_lea.sflag [#allocation9], %s4396_s10  ;;  %s4702_s21 = scalar_lea.hbm %s5192_s6, %s4404_s29 }
 0x169   : > { %3389 = dma.hbm_to_vmem [thread:$0]  (!%p5278_p9), %s4666_s26, 768, %s4670_s3, %s5280_s12, %s4191_s24, %s4191_s24, %s4192_s1  }
 0x16a   : > { %s655_s16 = scalar_lea.vmem [#allocation13], %s4399_s28  ;;  %s5281_s17 = smul.u32 2304, %s4169_s25 }
 0x16b   : > { %s662_s27 = sshll.u32 %s655_s16, 4  ;;  %s3937_s7 = scalar_lea.hbm %s4702_s21, 16  ;;  %s663_s27 = int_to_ptr.vmem [resolvable:$true] %s662_s27 }
 0x16c   : > { %s4710_s13 = scalar_lea.hbm %s5194_s8, %s5281_s17  ;;  %p3938_p12 = scmp.ne.s32.totalorder %s4702_s21, %s3937_s7 }
 0x16d   : > { %s3942_s11 = scalar_lea.hbm %s5192_s6, 32  ;;  %p3943_p11 = scmp.lt.u32.totalorder %s4702_s21, %s5192_s6 }
 0x16e   : > { %p3940_p5 = pnand %p3938_p12, %p5277_p13  ;;  %p3944_p7 = scmp.lt.u32.totalorder %s3942_s11, %s3937_s7 }
 0x16f   : > { %p3946_p2 = scmp.lt.u32.totalorder %s3937_s7, %s4702_s21 }
 0x170   : > { %p3941_p1 = pneg %p3940_p5  ;;  %p3945_p0 = por %p3944_p7, %p3943_p11 }
 0x172   : > { %p3947_p6 = por %p3946_p2, %p3945_p0 }
 0x174   : > { %p3948_p10 = pnand %p3947_p6, %p3941_p1 }
 0x176   : > { %3951 = shalt.err (!%p3948_p10)
}
 0x177   : > { %s3952_s22 = scalar_lea.vmem %s663_s27, 16  ;;  %s4193_s18 = smov [#allocation13]  }
 0x178   : > { %p3953_p8 = scmp.ne.s32.totalorder %s663_s27, %s3952_s22  ;;  %s3957_s16 = sshll.u32 %s4193_s18, 4  ;;  %s3958_s16 = int_to_ptr.vmem [resolvable:$false] %s3957_s16 }
 0x179   : > { %s3959_s17 = scalar_lea.vmem %s3958_s16, 32  ;;  %p3960_p12 = scmp.lt.s32.totalorder %s663_s27, %s3958_s16 }
 0x17a   : > { %p3955_p3 = pnand %p3953_p8, %p5277_p13  ;;  %p3961_p5 = scmp.lt.s32.totalorder %s3959_s17, %s3952_s22 }
 0x17c   : > { %p3956_p4 = pneg %p3955_p3  ;;  %p3962_p9 = por %p3961_p5, %p3960_p12 }
 0x17e   : > { %p3963_p7 = pnand %p3962_p9, %p3956_p4 }
 0x180   : > { %3966 = shalt.err (!%p3963_p7)
}
 0x181   : > { %p5282_p11 = scmp.ne.s32.totalorder %s5259_s19, 0  ;;  %s5283_s5 = scalar_lea.sflag [#allocation12], %s4396_s10 }
 0x182   : > { %s5284_s30 = smul.u32 144, %s4399_s28  ;;  %s3967_s0 = scalar_lea.hbm %s4710_s13, 2304 }
 0x183   : > { %3395 = dma.hbm_to_vmem [thread:$0]  (!%p5282_p11), %s4702_s21, 16, %s663_s27, %s5283_s5  }
 0x184   : > { %s690_s7 = scalar_lea.vmem [#allocation16], %s5284_s30  ;;  %s3309_s3 = smul.u32 192, %s4399_s28 }
 0x185   : > { %s697_s26 = sshll.u32 %s690_s7, 4  ;;  %s3310_s11 = smul.u32 3072, %s4169_s25  ;;  %s4734_s26 = int_to_ptr.vmem [resolvable:$true] %s697_s26 }
 0x186   : > { %p3968_p9 = scmp.ne.s32.totalorder %s4710_s13, %s3967_s0  ;;  %s3972_s18 = scalar_lea.hbm %s5194_s8, 4608 }
 0x187   : > { %p3973_p2 = scmp.lt.u32.totalorder %s4710_s13, %s5194_s8  ;;  %p3974_p6 = scmp.lt.u32.totalorder %s3972_s18, %s3967_s0 }
 0x188   : > { %p3970_p1 = pnand %p3968_p9, %p5277_p13  ;;  %p3976_p8 = scmp.lt.u32.totalorder %s3967_s0, %s4710_s13 }
 0x189   : > { %p3975_p10 = por %p3974_p6, %p3973_p2 }
 0x18a   : > { %p3971_p0 = pneg %p3970_p1 }
 0x18b   : > { %p3977_p3 = por %p3976_p8, %p3975_p10 }
 0x18d   : > { %p3978_p4 = pnand %p3977_p3, %p3971_p0 }
 0x18f   : > { %3981 = shalt.err (!%p3978_p4)
}
 0x190   : > { %s3982_s21 = scalar_lea.vmem %s4734_s26, 2304  ;;  %s4194_s27 = smov [#allocation16]  }
 0x191   : > { %p3983_p12 = scmp.ne.s32.totalorder %s4734_s26, %s3982_s21  ;;  %s3987_s5 = sshll.u32 %s4194_s27, 4  ;;  %s3988_s5 = int_to_ptr.vmem [resolvable:$false] %s3987_s5 }
 0x192   : > { %s3989_s30 = scalar_lea.vmem %s3988_s5, 4608  ;;  %p3990_p9 = scmp.lt.s32.totalorder %s4734_s26, %s3988_s5 }
 0x193   : > { %p3985_p5 = pnand %p3983_p12, %p5277_p13  ;;  %p3991_p1 = scmp.lt.s32.totalorder %s3989_s30, %s3982_s21 }
 0x195   : > { %p3986_p7 = pneg %p3985_p5  ;;  %p3992_p2 = por %p3991_p1, %p3990_p9 }
 0x197   : > { %p3993_p6 = pnand %p3992_p2, %p3986_p7 }
 0x199   : > { %3996 = shalt.err (!%p3993_p6)
}
 0x19a   : > { %s5285_s7 = smov 12   ;;  %s5286_s0 = smov 192  }
 0x19b   : > { %s5287_s12 = scalar_lea.sflag [#allocation15], %s4396_s10  ;;  %s5288_s16 = sld [smem:[#allocation53_spill]] }
 0x19c   : > { %3401 = dma.hbm_to_vmem [thread:$0]  (!%p5282_p11), %s4710_s13, 2304, %s4734_s26, %s5287_s12, %s5286_s0, %s5286_s0, %s5285_s7  }
 0x19d   : > { %s730_s21 = scalar_lea.vmem [#allocation19], %s3309_s3 }
 0x19e   : > { %s737_s27 = sshll.u32 %s730_s21, 4  ;;  %s4772_s27 = int_to_ptr.vmem [resolvable:$true] %s737_s27 }
 0x1a1   : > { %s4768_s17 = scalar_lea.hbm %s5288_s16, %s3310_s11  ;;  %s4002_s30 = scalar_lea.hbm %s5288_s16, 6144 }
 0x1a2   : > { %s3997_s5 = scalar_lea.hbm %s4768_s17, 3072  ;;  %p4003_p3 = scmp.lt.u32.totalorder %s4768_s17, %s5288_s16 }
 0x1a3   : > { %p3998_p0 = scmp.ne.s32.totalorder %s4768_s17, %s3997_s5  ;;  %p4004_p4 = scmp.lt.u32.totalorder %s4002_s30, %s3997_s5 }
 0x1a4   : > { %p4006_p5 = scmp.lt.u32.totalorder %s3997_s5, %s4768_s17 }
 0x1a5   : > { %p4000_p10 = pnand %p3998_p0, %p5277_p13  ;;  %p4005_p12 = por %p4004_p4, %p4003_p3 }
 0x1a7   : > { %p4001_p8 = pneg %p4000_p10  ;;  %p4007_p7 = por %p4006_p5, %p4005_p12 }
 0x1a9   : > { %p4008_p9 = pnand %p4007_p7, %p4001_p8 }
 0x1ab   : > { %4011 = shalt.err (!%p4008_p9)
}
 0x1ac   : > { %s4012_s3 = scalar_lea.vmem %s4772_s27, 3072  ;;  %s4195_s0 = smov [#allocation19]  }
 0x1ad   : > { %p4013_p1 = scmp.ne.s32.totalorder %s4772_s27, %s4012_s3  ;;  %s4017_s12 = sshll.u32 %s4195_s0, 4  ;;  %s4018_s12 = int_to_ptr.vmem [resolvable:$false] %s4017_s12 }
 0x1ae   : > { %s4019_s22 = scalar_lea.vmem %s4018_s12, 6144  ;;  %p4020_p0 = scmp.lt.s32.totalorder %s4772_s27, %s4018_s12 }
 0x1af   : > { %p4015_p2 = pnand %p4013_p1, %p5277_p13  ;;  %p4021_p10 = scmp.lt.s32.totalorder %s4019_s22, %s4012_s3 }
 0x1b1   : > { %p4016_p6 = pneg %p4015_p2  ;;  %p4022_p3 = por %p4021_p10, %p4020_p0 }
 0x1b3   : > { %p4023_p4 = pnand %p4022_p3, %p4016_p6 }
 0x1b5   : > { %4026 = shalt.err (!%p4023_p4)
}
 0x1b6   : > { %s5289_s18 = scalar_lea.sflag [#allocation18], %s4396_s10  ;;  %s5290_s13 = sld [smem:[#allocation54_spill]] }
 0x1b7   : > { %3407 = dma.hbm_to_vmem [thread:$0]  (!%p5282_p11), %s4768_s17, 3072, %s4772_s27, %s5289_s18, %s4191_s24, %s4191_s24, %s4192_s1  }
 0x1b8   : > { %s750_s30 = scalar_lea.vmem [#allocation20], %s4399_s28  ;;  %s748_s7 = scalar_lea.sflag [#allocation21], %s4396_s10 }
 0x1b9   : > { %s757_s11 = sshll.u32 %s750_s30, 4  ;;  %s758_s11 = int_to_ptr.vmem [resolvable:$true] %s757_s11 }
 0x1bc   : > { %s4804_s26 = scalar_lea.hbm %s5290_s13, %s4404_s29  ;;  %s4032_s1 = scalar_lea.hbm %s5290_s13, 32 }
 0x1bd   : > { %s4027_s3 = scalar_lea.hbm %s4804_s26, 16  ;;  %p4033_p7 = scmp.lt.u32.totalorder %s4804_s26, %s5290_s13 }
 0x1be   : > { %p4028_p8 = scmp.ne.s32.totalorder %s4804_s26, %s4027_s3  ;;  %p4034_p9 = scmp.lt.u32.totalorder %s4032_s1, %s4027_s3 }
 0x1bf   : > { %p4036_p2 = scmp.lt.u32.totalorder %s4027_s3, %s4804_s26 }
 0x1c0   : > { %p4030_p12 = pnand %p4028_p8, %p5277_p13  ;;  %p4035_p1 = por %p4034_p9, %p4033_p7 }
 0x1c2   : > { %p4031_p5 = pneg %p4030_p12  ;;  %p4037_p6 = por %p4036_p2, %p4035_p1 }
 0x1c4   : > { %p4038_p0 = pnand %p4037_p6, %p4031_p5 }
 0x1c6   : > { %4041 = shalt.err (!%p4038_p0)
}
 0x1c7   : > { %s4042_s10 = scalar_lea.vmem %s758_s11, 16  ;;  %s4196_s28 = smov [#allocation20]  }
 0x1c8   : > { %p4043_p10 = scmp.ne.s32.totalorder %s758_s11, %s4042_s10  ;;  %s4047_s27 = sshll.u32 %s4196_s28, 4  ;;  %s4048_s27 = int_to_ptr.vmem [resolvable:$false] %s4047_s27 }
 0x1c9   : > { %s4049_s12 = scalar_lea.vmem %s4048_s27, 32  ;;  %p4050_p8 = scmp.lt.s32.totalorder %s758_s11, %s4048_s27 }
 0x1ca   : > { %p4045_p3 = pnand %p4043_p10, %p5277_p13  ;;  %p4051_p12 = scmp.lt.s32.totalorder %s4049_s12, %s4042_s10 }
 0x1cc   : > { %p4046_p4 = pneg %p4045_p3  ;;  %p4052_p11 = por %p4051_p12, %p4050_p8 }
 0x1ce   : > { %p4053_p7 = pnand %p4052_p11, %p4046_p4 }
 0x1d0   : > { %4056 = shalt.err (!%p4053_p7)
}
 0x1d1   : > { %p5291_p9 = scmp.ne.s32.totalorder %s5259_s19, 0  ;;  %s5292_s22 = sld [smem:[#allocation45_spill]] }
 0x1d3   : > { %3410 = dma.hbm_to_vmem [thread:$0]  (!%p5291_p9), %s4804_s26, 16, %s758_s11, %s748_s7  }
 0x1d7   : > { %p5293_p5 = scmp.ne.s32.totalorder %s5292_s22, 0 }
 0x1d8   : > { %s5294_s18 = sld [smem:[#allocation43_spill]] (!%p5293_p5) }
 0x1d9   : > { %766 = sbr.rel (%p5293_p5) target bundleno = 3969 (0xf81), region = 84 }
 0x1de   : > { %p5295_p1 = scmp.eq.s32.totalorder (!%p5293_p5), %s5294_s18, 0 }
 0x1e0   : > { %4108 = dma.done.wait (%p5295_p1), [#allocation3], 128   ;;  %p5296_p13 = pmov %p5295_p1 }
 0x1e1   : > { %s5297_s20 = sld [smem:[#allocation40_spill]]  ;;  %s5298_s21 = sld [smem:[#allocation44_spill]] }
 0x1e2   : > { %4110 = vsyncadd (%p5296_p13), [#allocation3], 4294967168  ;;  %s4832_s5 = sand.u32 1, %s5294_s18  }
 0x1e3   : > { %s773_s19 = scalar_lea.sflag [#allocation6], %s4832_s5 }
 0x1e7   : > { %s4835_s30 = sand.u32 1, %s5297_s20   ;;  %p5299_p11 = scmp.ne.s32.totalorder %s5298_s21, 0 }
 0x1e8   : > { %s775_s26 = scalar_lea.vmem [#allocation5], %s4835_s30 }
 0x1e9   : > { %4112 = dma.done.wait (%p5299_p11), %s773_s19, 32  }
 0x1ea   : > { %4114 = vsyncadd (%p5299_p11), %s773_s19, 4294967264  ;;  %s3311_s11 = smul.u32 144, %s4835_s30  ;;  %s783_s7 = scalar_lea.vmem [#allocation7], %s4835_s30 }
 0x1eb   : > { %s789_s3 = scalar_lea.sflag [#allocation9], %s4832_s5 }
 0x1ec   : > { %s4846_s0 = scalar_lea.vmem [#allocation8], %s3311_s11 }
 0x1ed   : > { %4116 = dma.done.wait (%p5299_p11), %s789_s3, 3072  }
 0x1ee   : > { %4118 = vsyncadd (%p5299_p11), %s789_s3, 4294964224  ;;  %s3312_s24 = smul.u32 48, %s4835_s30  ;;  %s807_s17 = scalar_lea.sflag [#allocation12], %s4832_s5 }
 0x1ef   : > { %s809_s29 = scalar_lea.vmem [#allocation11], %s4835_s30 }
 0x1f0   : > { %s4853_s1 = scalar_lea.vmem [#allocation10], %s3312_s24 }
 0x1f1   : > { %4120 = dma.done.wait (%p5299_p11), %s807_s17, 32  }
 0x1f2   : > { %4122 = vsyncadd (%p5299_p11), %s807_s17, 4294967264  ;;  %s817_s10 = scalar_lea.vmem [#allocation13], %s4835_s30  ;;  %s823_s28 = scalar_lea.sflag [#allocation15], %s4832_s5 }
 0x1f3   : > { %s825_s27 = scalar_lea.vmem [#allocation14], %s4835_s30 }
 0x1f4   : > { %4124 = dma.done.wait (%p5299_p11), %s823_s28, 2320  }
 0x1f5   : > { %4126 = vsyncadd (%p5299_p11), %s823_s28, 4294964976  ;;  %s3313_s12 = smul.u32 3, %s4835_s30  ;;  %s4869_s22 = scalar_lea.vmem [#allocation16], %s3311_s11 }
 0x1f6   : > { %s840_s20 = scalar_lea.sflag [#allocation18], %s4832_s5 }
 0x1f7   : > { %s4872_s19 = scalar_lea.vmem [#allocation17], %s3313_s12 }
 0x1f8   : > { %4128 = dma.done.wait (%p5299_p11), %s840_s20, 3120  }
 0x1f9   : > { %4130 = vsyncadd (%p5299_p11), %s840_s20, 4294964176  ;;  %s3314_s3 = smul.u32 192, %s4835_s30  ;;  %s858_s17 = scalar_lea.sflag [#allocation21], %s4832_s5 }
 0x1fa   : > { %s860_s28 = scalar_lea.vmem [#allocation20], %s4835_s30 }
 0x1fb   : > { %s4879_s24 = scalar_lea.vmem [#allocation19], %s3314_s3 }
 0x1fc   : > { %4132 = dma.done.wait (%p5299_p11), %s858_s17, 16  }
 0x1fd   : > { %4134 = vsyncadd (%p5299_p11), %s858_s17, 4294967280  ;;  %p5300_p2 = pmov %p5295_p1 }
 0x1fe   : > { %p5301_p6 = pmov %p5295_p1 }
 0x1ff   : > { %4136 = dma.done.wait (%p5300_p2), [#allocation21], 32  }
 0x200   : > { %4138 = vsyncadd (%p5301_p6), [#allocation21], 4294967264  ;;  %p5302_p0 = pmov %p5295_p1 }
 0x202   : > { %4140 = dma.done.wait (%p5302_p0), [#allocation24], 1568   ;;  %p5303_p10 = pmov %p5302_p0 }
 0x203   : > { %p5304_p3 = pmov %p5302_p0 }
 0x204   : > { %4142 = vsyncadd (%p5303_p10), [#allocation24], 4294965728 }
 0x205   : > { %4144 = dma.done.wait (%p5304_p3), [#allocation27], 128   ;;  %p5305_p4 = pmov %p5302_p0 }
 0x206   : > { %s5306_s21 = sld [smem:[#allocation41_spill]] }
 0x207   : > { %4146 = vsyncadd (%p5305_p4), [#allocation27], 4294967168 }
 0x20c   : > { %p2927_p8 = scmp.ne.s32.totalorder %s5306_s21, 0 }
 0x20d   : > { %v969_v0 = vld [vmem:[#allocation2] sm:$0x3f] (!%p2927_p8)  ;;  %vm970_vm0 = vcmask (!%p2927_p8), 783360  }
 0x20e   : > { %968 = sbr.rel (%p2927_p8) target bundleno = 533 (0x215), region = 152  ;;  %971 = vst.msk [vmem:[#allocation28] sm:$0x3f] (!%p2927_p8), %vm970_vm0, %v969_v0 }
 0x215 PF: > { %v4900_v1 = vld [vmem:[#allocation28] sm:$0x3f]  ;;  %vm975_vm1 = vcmask 783360   ;;  %v3491_v3 = vld [vmem:[%s4846_s0 + $0x4] ss:$12 sps:$4 sm:$0xff]   ;;  %v4197_v4 = vmov 0.0  }
 0x216   : > { %v976_v2 = vsel %vm975_vm1, %v4900_v1, 0.0  ;;  %3109 = vmatprep.subr.bf16.mxu1 %v4197_v4  ;;  %1129 = vmatprep.subr.bf16.mxu0 %v3491_v3  ;;  %v3493_v10 = vld [vmem:[%s4846_s0] ss:$12 sps:$4 sm:$0xff]   ;;  %v3494_v11 = vld [vmem:[%s4846_s0 + $0x8] ss:$12 sps:$4 sm:$0xff]   ;;  %v4198_v22 = vmov 0  }
 0x217   : > { %977 = vadd.xlane.f32.xlu0 %v976_v2  ;;  %1130 = vmatpush1.bf16.msra.mxu0 %v3493_v10  ;;  %v3495_v12 = vld [vmem:[%s4846_s0 + $0x1c] ss:$12 sps:$4 sm:$0xff]   ;;  %v3497_v13 = vld [vmem:[%s4846_s0 + $0x18] ss:$12 sps:$4 sm:$0xff]   ;;  %v3498_v14 = vld [vmem:[%s4846_s0 + $0x20] ss:$12 sps:$4 sm:$0xff]  }
 0x218   : > { %3110 = vmatpush3.bf16.msra.mxu1 %v3494_v11  ;;  %1131 = vmatprep.subr.bf16.mxu0 %v3495_v12  ;;  %v3499_v15 = vld [vmem:[%s4846_s0 + $0x34] ss:$12 sps:$4 sm:$0xff]   ;;  %v3501_v16 = vld [vmem:[%s4846_s0 + $0x30] ss:$12 sps:$4 sm:$0xff]   ;;  %v3502_v17 = vld [vmem:[%s4846_s0 + $0x38] ss:$12 sps:$4 sm:$0xff]  }
 0x219   : > { %3111 = vmatprep.subr.bf16.mxu1 %v4197_v4  ;;  %v3503_v18 = vld [vmem:[%s4846_s0 + $0x4c] ss:$12 sps:$4 sm:$0xff]   ;;  %v3505_v19 = vld [vmem:[%s4846_s0 + $0x48] ss:$12 sps:$4 sm:$0xff]   ;;  %v3506_v20 = vld [vmem:[%s4846_s0 + $0x50] ss:$12 sps:$4 sm:$0xff]   ;;  %1161 = vmatprep.mubr.bf16.mxu0 %v4198_v22 }
 0x21a   : > { %v3507_v21 = vld [vmem:[%s4846_s0 + $0x64] ss:$12 sps:$4 sm:$0xff]   ;;  %vm4199_vm2 = vmmov 0   ;;  %v3509_v23 = vld [vmem:[%s4846_s0 + $0x60] ss:$12 sps:$4 sm:$0xff]   ;;  %vm1125_vm3 = vcmask 785408  }
 0x21b   : > { %1132 = vmatpush1.bf16.msra.mxu0 %v3497_v13  ;;  %3121 = vmatprep.mubr.msk.bf16.mxu1 %vm4199_vm2, %v4197_v4  ;;  %v3510_v24 = vld [vmem:[%s4846_s0 + $0x68] ss:$12 sps:$4 sm:$0xff]   ;;  %v3513_v26 = vld [vmem:[%s4846_s0 + $0x78] ss:$12 sps:$4 sm:$0xff]   ;;  %v3514_v27 = vld [vmem:[%s4846_s0 + $0x80] ss:$12 sps:$4 sm:$0xff]  }
 0x21c   : > { %3112 = vmatpush3.bf16.msra.mxu1 %v3498_v14  ;;  %1133 = vmatprep.subr.bf16.mxu0 %v3499_v15  ;;  %v3511_v25 = vld [vmem:[%s4846_s0 + $0x7c] ss:$12 sps:$4 sm:$0xff]   ;;  %v2928_v32 = vld [vmem:[%s775_s26] ss:$0 sm:$0xff]  ;;  %vm1219_vm4 = vcmask 1040384   ;;  %vm1220_vm5 = vcmask 1041408  }
 0x21d   : > { %3113 = vmatprep.subr.bf16.mxu1 %v4197_v4  ;;  %v2929_v34 = vld [vmem:[%s783_s7] ss:$0 sm:$0xff]  ;;  %v4200_v38 = vmov 65535   ;;  %vm1215_vm6 = vcmask 23552   ;;  %v1328_v13 = vld [vmem:[#allocation25 + $0x8] sm:$0xff]  ;;  %v1329_v14 = vld [vmem:[#allocation25 + $0x10] sm:$0xff] }
 0x21e   : > { %v1221_v39 = vsel %vm1219_vm4, 4294967295, %v4200_v38  ;;  %v1327_v12 = vld [vmem:[#allocation25] sm:$0xff]  ;;  %v4201_v15 = vmov 0.0|0.0   ;;  %s4202_s18 = smov 32   ;;  %s4203_s5 = smov 64   ;;  %vm1319_vm7 = vcmask 261120  }
 0x21f   : > { %1134 = vmatpush1.bf16.msra.mxu0 %v3501_v16  ;;  %v1222_v46 = vsel %vm1220_vm5, %v1221_v39, 0  ;;  %v4960_v16 = vpack.c.bf16 %v1328_v13, %v1327_v12  ;;  %vm1413_vm8 = vcmask 58368   ;;  %vm1434_vm9 = vcmask 64512   ;;  %s5307_s26 = sld [smem:[#allocation43_spill]]  ;;  %s4204_s11 = smov [#allocation28]  }
 0x220   : > { %3114 = vmatpush3.bf16.msra.mxu1 %v3502_v17  ;;  %1135 = vmatprep.subr.bf16.mxu0 %v3503_v18  ;;  %v1330_v17 = vld [vmem:[#allocation25 + $0x18] sm:$0xff]  ;;  %vm1517_vm10 = vcmask 523264   ;;  %vm1522_vm11 = vcmask 31744   ;;  %vm1918_vm12 = vcmask 1042432   ;;  %s2592_s7 = sshll.u32 %s4204_s11, 4  ;;  %s2593_s7 = int_to_ptr.vmem [resolvable:$true] %s2592_s7 }
 0x221   : > { %3115 = vmatprep.subr.bf16.mxu1 %v4197_v4  ;;  %v4963_v18 = vpack.c.bf16 %v1330_v17, %v1329_v14  ;;  %s4057_s0 = scalar_lea.vmem %s2593_s7, 128  ;;  %p4064_p1 = scmp.lt.s32.totalorder %s2593_s7, %s2593_s7 }
 0x222   : > { %p4058_p7 = scmp.ne.s32.totalorder %s2593_s7, %s4057_s0  ;;  %p4065_p13 = scmp.lt.s32.totalorder %s4057_s0, %s4057_s0 }
 0x223   : > { %1136 = vmatpush1.bf16.msra.mxu0 %v3505_v19  ;;  %v1331_v19 = vld [vmem:[#allocation25 + $0x20] sm:$0xff] }
 0x224   : > { %3116 = vmatpush3.bf16.msra.mxu1 %v3506_v20  ;;  %1137 = vmatprep.subr.bf16.mxu0 %v3507_v21  ;;  %v1332_v20 = vld [vmem:[#allocation25 + $0x28] sm:$0xff]  ;;  %p4066_p11 = por %p4065_p13, %p4064_p1 }
 0x225   : > { %3117 = vmatprep.subr.bf16.mxu1 %v4197_v4  ;;  %v4967_v21 = vpack.c.bf16 %v1332_v20, %v1331_v19  ;;  %p3422_p12 = scmp.eq.s32.totalorder %s5307_s26, 1 }
 0x227   : > { %1138 = vmatpush1.bf16.msra.mxu0 %v3509_v23  ;;  %v1333_v23 = vld [vmem:[#allocation25 + $0x30] sm:$0xff]  ;;  %p4059_p9 = pnand %p4058_p7, %p3422_p12 }
 0x228   : > { %3118 = vmatpush3.bf16.msra.mxu1 %v3510_v24  ;;  %1139 = vmatprep.subr.bf16.mxu0 %v3511_v25  ;;  %v1334_v24 = vld [vmem:[#allocation25 + $0x38] sm:$0xff] }
 0x229   : > { %3119 = vmatprep.subr.bf16.mxu1 %v4197_v4  ;;  %v4971_v25 = vpack.c.bf16 %v1334_v24, %v1333_v23  ;;  %p4060_p5 = pneg %p4059_p9 }
 0x22b   : > { %1140 = vmatpush1.bf16.msra.mxu0 %v3513_v26  ;;  %v1335_v26 = vld [vmem:[#allocation25 + $0x40] sm:$0xff]  ;;  %p4067_p2 = pnand %p4066_p11, %p4060_p5 }
 0x22c   : > { %3120 = vmatpush3.bf16.msra.mxu1 %v3514_v27  ;;  %3265 = vmatprep.subr.bf16.mxu0 %v4201_v15  ;;  %v1336_v27 = vld [vmem:[#allocation25 + $0x48] sm:$0xff] }
 0x2a4   : > { %v978_v5 = vpop.xlane.xlu0 %977 }
 0x2a5   : > { %v980_v6 = vmul.f32 0.010416667, %v978_v5 }
 0x2a7   : > { %v981_v7 = vsub.f32 %v4900_v1, %v980_v6  ;;  %v4943_v6 = vld [vmem:[#allocation22] sm:$0x3] }
 0x2a9   : > { %v982_v8 = vmul.f32 %v981_v7, %v981_v7 }
 0x2ab   : > { %v983_v9 = vsel %vm975_vm1, %v982_v8, 0.0 }
 0x2ac   : > { %984 = vadd.xlane.f32.xlu0 %v983_v9 }
 0x339   : > { %v985_v28 = vpop.xlane.xlu0 %984 }
 0x33a   : > { %v986_v29 = vmul.f32 0.010416667, %v985_v28  ;;  %v4976_v28 = vpack.c.bf16 %v1336_v27, %v1335_v26  ;;  %v5007_v26 = vld [vmem:[#allocation23] sm:$0x3] }
 0x33c   : > { %v987_v30 = vadd.f32 1e-05, %v986_v29  ;;  %v1337_v29 = vld [vmem:[#allocation25 + $0x50] sm:$0xff] }
 0x33e   : > { %3569 = vrsqrt.f32 %v987_v30  ;;  %v1338_v30 = vld [vmem:[#allocation25 + $0x58] sm:$0xff] }
 0x348   : > { %v3570_v31 = vpop.eup %3569 }
 0x349   : > { %v989_v33 = vmul.f32 %v3570_v31, %v981_v7  ;;  %v4980_v31 = vpack.c.bf16 %v1338_v30, %v1337_v29 }
 0x34b   : > { %v996_v35 = vmul.f32 %v2928_v32, %v989_v33 }
 0x34d   : > { %v1003_v36 = vadd.f32 %v2929_v34, %v996_v35 }
 0x34f   : > { %v1004_v37 = vpack.c.bf16 %v1003_v36, %v1003_v36 }
 0x351   : > { %2948 = vmatmul.mubr.msk.bf16.vlgmr.msra.gmra.mrb[0].mxu0 %vm1125_vm3, %v1004_v37  ;;  %3122 = vmatmul.mubr.msk.bf16.vlgmr.msra.gmra.mrb[0].mxu1 %vm1125_vm3, %v1004_v37 }
 0x352   : > { %1264 = vmatprep.mubr.bf16.mxu1 %v4198_v22  ;;  %3155 = vmatprep.mubr.msk.f32.mxu0 %vm4199_vm2, %v4197_v4 }
 0x353   : > { %3267 = vmatpush3.bf16.msra.mxu0 %v4960_v16 }
 0x354   : > { %3268 = vmatprep.subr.bf16.mxu0 %v4201_v15 }
 0x357   : > { %3270 = vmatpush3.bf16.msra.mxu0 %v4963_v18 }
 0x358   : > { %3271 = vmatprep.subr.bf16.mxu0 %v4201_v15 }
 0x35b   : > { %3273 = vmatpush3.bf16.msra.mxu0 %v4967_v21 }
 0x35c   : > { %3274 = vmatprep.subr.bf16.mxu0 %v4201_v15 }
 0x35f   : > { %3276 = vmatpush3.bf16.msra.mxu0 %v4971_v25 }
 0x360   : > { %3277 = vmatprep.subr.bf16.mxu0 %v4201_v15 }
 0x363   : > { %3279 = vmatpush3.bf16.msra.mxu0 %v4976_v28 }
 0x364   : > { %3280 = vmatprep.subr.bf16.mxu0 %v4201_v15 }
 0x367   : > { %3282 = vmatpush3.bf16.msra.mxu0 %v4980_v31 }
 0x368   : > { %3169 = vmatprep.subr.bf16.mxu0 %v4197_v4 }
 0x424   : > { %v1163_v40 = vpop.f32.mrb[0].mxu0  ;;  %v1204_v41 = vpop.f32.mrb[0].mxu1 }
 0x425   : > { %v1212_v42 = vpack.c.bf16 %v1163_v40, %v1163_v40  ;;  %v1214_v43 = vpack.c.bf16 %v1204_v41, %v1204_v41  ;;  %v1165_v44 = vpop.f32.mrb[1].mxu0  ;;  %v3123_v45 = vpop.f32.mrb[1].mxu1 }
 0x426   : > { %v1213_v47 = vpack.c.bf16 %v1165_v44, %v1165_v44  ;;  %v1167_v48 = vpop.f32.mrb[2].mxu0  ;;  %v1207_v49 = vpop.f32.mrb[2].mxu1 }
 0x427   : > { %v1569_v50 = vshrl.u32 %v1212_v42, 16  ;;  %v1572_v51 = vshll.u32 %v1212_v42, 16  ;;  %v1168_v52 = vpop.f32.mrb[3].mxu0  ;;  %v3124_v53 = vpop.f32.mrb[3].mxu1  ;;  %v1583_v54 = vshrl.u32 %v1214_v43, 16  ;;  %v1586_v55 = vshll.u32 %v1214_v43, 16 }
 0x428   : > { %v1576_v56 = vshrl.u32 %v1213_v47, 16  ;;  %v1579_v57 = vshll.u32 %v1213_v47, 16  ;;  %v1224_v58 = vand.u32 %v1222_v46, %v1212_v42  ;;  %v1227_v61 = vand.u32 %v1222_v46, %v1213_v47 }
 0x429   : > { %v1571_v59 = vrot.slane %v1569_v50, 1  ;;  %v1574_v60 = vrot.slane %v1572_v51, 2  ;;  %v1585_v62 = vrot.slane %v1583_v54, 1  ;;  %v1588_v63 = vrot.slane %v1586_v55, 2 }
 0x42a   : > { %v1578_v0 = vrot.slane %v1576_v56, 1  ;;  %v1581_v2 = vrot.slane %v1579_v57, 2  ;;  %1232 = vmatprep.subr.bf16.mxu1 %v1227_v61  ;;  %v1230_v9 = vand.u32 %v1222_v46, %v1214_v43 }
 0x42b   : > { %v1575_v3 = vor.u32 %v1574_v60, %v1571_v59  ;;  %v1589_v5 = vor.u32 %v1588_v63, %v1585_v62  ;;  %1233 = vmatpush1.bf16.msra.mxu1 %v1224_v58 }
 0x42c   : > { %v1582_v7 = vor.u32 %v1581_v2, %v1578_v0  ;;  %3125 = vmatprep.subr.bf16.mxu1 %v4197_v4 }
 0x42d   : > { %v4946_v8 = vand.u32 %v1575_v3, %v1222_v46  ;;  %v1597_v10 = vand.u32 %v1589_v5, %v1222_v46 }
 0x42e   : > { %v4948_v11 = vand.u32 %v1582_v7, %v1222_v46  ;;  %2950 = vmatmul.mubr.msk.bf16.vlgmr.msra.gmra.mrb[4].mxu1 %vm1215_vm6, %v4943_v6  ;;  %v1433_v46 = vld [vmem:[#allocation26] sm:$0xff] }
 0x42f   : > { %3126 = vmatpush3.bf16.msra.mxu1 %v1230_v9  ;;  %3127 = vmatprep.mubr.msk.bf16.mxu1 %vm4199_vm2, %v4197_v4 }
 0x430   : > { %3158 = vmatprep.subr.mxu1 %v4197_v4 }
 0x436   : > { %3128 = vmatmul.mubr.msk.bf16.vlgmr.msra.gmra.mrb[8].mxu1 %vm1215_vm6, %v4943_v6 }
 0x437   : > { %3160 = vmatprep.mubr.msk.f32.mxu1 %vm4199_vm2, %v4197_v4  ;;  %3159 = vmatpush3.msra.mxu1 %v1433_v46 }
 0x438   : > { %3163 = vmatprep.subr.bf16.mxu1 %v4197_v4 }
 0x501   : > { %v1266_v32 = vpop.f32.mrb[4].mxu1 }
 0x502   : > { %1315 = vrot.lane.b32.xlu1 %v1266_v32, %s4202_s18  ;;  %v1268_v33 = vpop.f32.mrb[5].mxu1 }
 0x503   : > { %v1270_v34 = vpop.f32.mrb[6].mxu1  ;;  %1513 = vrot.lane.b32.xlu0 %v1268_v33, %s4203_s5 }
 0x504   : > { %v1271_v35 = vpop.f32.mrb[7].mxu1 }
 0x506   : > { %1317 = vrot.lane.b32.xlu1 %v1268_v33, %s4202_s18 }
 0x509   : > { %v1307_v36 = vpop.f32.mrb[8].mxu1 }
 0x50a   : > { %1515 = vrot.lane.b32.xlu1 %v1307_v36, %s4203_s5  ;;  %v3129_v37 = vpop.f32.mrb[9].mxu1 }
 0x50b   : > { %v1310_v38 = vpop.f32.mrb[10].mxu1 }
 0x50c   : > { %v3130_v39 = vpop.f32.mrb[11].mxu1 }
 0x574   : > { %v1316_v40 = vpop.permute.xlu1 %1315 }
 0x575   : > { %v1514_v14 = vpop.permute.xlu0 %1513 }
 0x578   : > { %v1318_v41 = vpop.permute.xlu1 %1317 }
 0x579   : > { %v1320_v42 = vsel %vm1319_vm7, %v1316_v40, %v1318_v41 }
 0x57a   : > { %v1322_v43 = vmul.f32 %v1320_v42, %v1266_v32 }
 0x57c   : > { %v1324_v44 = vrot.slane %v1322_v43, 2  ;;  %v1516_v9 = vpop.permute.xlu1 %1515 }
 0x57d   : > { %v1518_v17 = vsel %vm1517_vm10, %v1514_v14, %v1516_v9  ;;  %v3516_v9 = vld [vmem:[%s4853_s1 + $0x8] sm:$0xff]  }
 0x57e   : > { %v1326_v45 = vadd.f32 %v1324_v44, %v1322_v43  ;;  %v3520_v14 = vld [vmem:[%s4853_s1 + $0x28] sm:$0xff]  }
 0x580   : > { %3156 = vmatmul.mubr.msk.f32.vlgmr.msra.gmra.mrb[4].mxu0 %vm1125_vm3, %v1326_v45 }
 0x581   : > { %3170 = vmatpush3.bf16.msra.mxu0 %v1597_v10  ;;  %3171 = vmatprep.mubr.msk.bf16.mxu0 %vm4199_vm2, %v4197_v4 }
 0x582   : > { %3202 = vmatprep.subr.mxu0 %v4197_v4 }
 0x584   : > { %3172 = vmatmul.mubr.msk.bf16.vlgmr.msra.gmra.mrb[8].mxu0 %vm1215_vm6, %v4943_v6 }
 0x585   : > { %3204 = vmatprep.mubr.msk.f32.mxu0 %vm4199_vm2, %v4197_v4  ;;  %3203 = vmatpush3.msra.mxu0 %v1433_v46 }
 0x586   : > { %3207 = vmatprep.subr.bf16.mxu0 %v4197_v4 }
 0x653   : > { %v1408_v47 = vpop.f32.mrb[4].mxu0 }
 0x654   : > { %v1412_v48 = vmul.f32 0.28867513, %v1408_v47  ;;  %v3157_v49 = vpop.f32.mrb[5].mxu0 }
 0x656   : > { %v1414_v50 = vsel %vm1413_vm8, %v1412_v48, -inf }
 0x657   : > { %v1415_v51 = vrot.slane %v1414_v50, 4 }
 0x659   : > { %v1416_v52 = vmax.f32 %v1414_v50, %v1415_v51 }
 0x65b   : > { %v1417_v53 = vrot.slane %v1416_v52, 2 }
 0x65d   : > { %v1418_v54 = vmax.f32 %v1416_v52, %v1417_v53 }
 0x65f   : > { %v1419_v55 = vrot.slane %v1418_v54, 1 }
 0x661   : > { %v1420_v56 = vmax.f32 %v1418_v54, %v1419_v55 }
 0x663   : > { %v1421_v57 = vsub.f32 %v1412_v48, %v1420_v56 }
 0x665   : > { %v1422_v58 = vmul.f32 1.442695, %v1421_v57 }
 0x667   : > { %3571 = vpow2.f32 %v1422_v58 }
 0x671   : > { %v3572_v59 = vpop.eup %3571 }
 0x672   : > { %v1424_v60 = vsel %vm1413_vm8, %v3572_v59, 0.0 }
 0x673   : > { %v1425_v61 = vrot.slane %v1424_v60, 4 }
 0x675   : > { %v1426_v62 = vadd.f32 %v1425_v61, %v1424_v60 }
 0x677   : > { %v1427_v63 = vrot.slane %v1426_v62, 2 }
 0x679   : > { %v1428_v0 = vadd.f32 %v1427_v63, %v1426_v62 }
 0x67b   : > { %v1429_v2 = vrot.slane %v1428_v0, 1 }
 0x67d   : > { %v1430_v3 = vadd.f32 %v1429_v2, %v1428_v0 }
 0x67f   : > { %3573 = vrcp.f32 %v1430_v3 }
 0x689   : > { %v3574_v5 = vpop.eup %3573 }
 0x68a   : > { %v1432_v7 = vmul.f32 %v3574_v5, %v3572_v59 }
 0x68c   : > { %3161 = vmatmul.mubr.msk.f32.vlgmr.msra.gmra.mrb[12].mxu1 %vm1434_vm9, %v1432_v7  ;;  %v3515_v7 = vld [vmem:[%s4853_s1] sm:$0xff]  }
 0x68d   : > { %3165 = vmatprep.mubr.msk.bf16.mxu1 %vm4199_vm2, %v4197_v4 }
 0x75f   : > { %v1504_v10 = vpop.f32.mrb[12].mxu1 }
 0x760   : > { %v1509_v12 = vrot.slane %v1504_v10, 6  ;;  %v3162_v13 = vpop.f32.mrb[13].mxu1 }
 0x761   : > { %v3519_v13 = vld [vmem:[%s4853_s1 + $0x20] sm:$0xff]  }
 0x762   : > { %v1511_v19 = vsel %vm1220_vm5, %v1504_v10, %v1509_v12  ;;  %v3517_v10 = vld [vmem:[%s4853_s1 + $0x10] sm:$0xff]   ;;  %v3518_v12 = vld [vmem:[%s4853_s1 + $0x18] sm:$0xff]  }
 0x763   : > { %v1520_v20 = vmul.f32 %v1518_v17, %v1511_v19 }
 0x765   : > { %v1521_v23 = vpack.c.bf16 %v1520_v20, %v1520_v20 }
 0x767   : > { %v1527_v24 = vsel %vm1220_vm5, %v1521_v23, 0 }
 0x768   : > { %3164 = vmatpush3.bf16.msra.mxu1 %v1527_v24 }
 0x769   : > { %1599 = vmatprep.subr.bf16.mxu1 %v4948_v11 }
 0x76b   : > { %3166 = vmatmul.mubr.msk.bf16.vlgmr.msra.gmra.mrb[16].mxu1 %vm1522_vm11, %v5007_v26 }
 0x76c   : > { %1600 = vmatpush1.bf16.msra.mxu1 %v4946_v8  ;;  %1631 = vmatprep.mubr.bf16.mxu1 %v4198_v22 }
 0x76d   : > { %3283 = vmatprep.subr.bf16.mxu1 %v4201_v15 }
 0x773   : > { %2955 = vmatmul.mubr.msk.bf16.vlgmr.msra.gmra.mrb[20].mxu1 %vm1215_vm6, %v4943_v6  ;;  %v1674_v6 = vpop.f32.mrb[8].mxu0 }
 0x774   : > { %3285 = vmatpush3.bf16.msra.mxu1 %v4960_v16  ;;  %3199 = vmatprep.mubr.msk.f32.mxu1 %vm4199_vm2, %v4197_v4  ;;  %v3173_v8 = vpop.f32.mrb[9].mxu0 }
 0x775   : > { %3286 = vmatprep.subr.bf16.mxu1 %v4201_v15  ;;  %v1677_v11 = vpop.f32.mrb[10].mxu0 }
 0x776   : > { %v3174_v16 = vpop.f32.mrb[11].mxu0  ;;  %v2967_v11 = vld [vmem:[%s809_s29] ss:$0 sm:$0xff] }
 0x778   : > { %3288 = vmatpush3.bf16.msra.mxu1 %v4963_v18 }
 0x779   : > { %3289 = vmatprep.subr.bf16.mxu1 %v4201_v15 }
 0x77c   : > { %3291 = vmatpush3.bf16.msra.mxu1 %v4967_v21 }
 0x77d   : > { %3292 = vmatprep.subr.bf16.mxu1 %v4201_v15 }
 0x780   : > { %3294 = vmatpush3.bf16.msra.mxu1 %v4971_v25 }
 0x781   : > { %3295 = vmatprep.subr.bf16.mxu1 %v4201_v15 }
 0x784   : > { %3297 = vmatpush3.bf16.msra.mxu1 %v4976_v28 }
 0x785   : > { %3298 = vmatprep.subr.bf16.mxu1 %v4201_v15 }
 0x788   : > { %3300 = vmatpush3.bf16.msra.mxu1 %v4980_v31 }
 0x83e   : > { %v5030_v18 = vpop.f32.mrb[16].mxu1 }
 0x83f   : > { %v3167_v27 = vpop.f32.mrb[17].mxu1 }
 0x840   : > { %v1566_v21 = vpop.f32.mrb[18].mxu1 }
 0x841   : > { %v3168_v29 = vpop.f32.mrb[19].mxu1 }
 0x846   : > { %v1633_v30 = vpop.f32.mrb[20].mxu1 }
 0x847   : > { %1682 = vrot.lane.b32.xlu1 %v1633_v30, %s4202_s18  ;;  %v1635_v25 = vpop.f32.mrb[21].mxu1 }
 0x848   : > { %v1637_v32 = vpop.f32.mrb[22].mxu1 }
 0x849   : > { %v1638_v33 = vpop.f32.mrb[23].mxu1  ;;  %v3523_v32 = vld [vmem:[%s4869_s22 + $0x4] ss:$12 sps:$4 sm:$0xff]  }
 0x84a   : > { %2191 = vmatprep.subr.bf16.mxu1 %v3523_v32 }
 0x84b   : > { %1684 = vrot.lane.b32.xlu1 %v1635_v25, %s4202_s18 }
 0x84f   : > { %1864 = vrot.lane.b32.xlu1 %v1635_v25, %s4203_s5  ;;  %v3521_v25 = vld [vmem:[%s4869_s22] ss:$12 sps:$4 sm:$0xff]  }
 0x853   : > { %1866 = vrot.lane.b32.xlu1 %v1674_v6, %s4203_s5 }
 0x8b9   : > { %v1683_v15 = vpop.permute.xlu1 %1682 }
 0x8bd   : > { %v1685_v28 = vpop.permute.xlu1 %1684 }
 0x8be   : > { %v1686_v31 = vsel %vm1319_vm7, %v1683_v15, %v1685_v28 }
 0x8bf   : > { %v1688_v34 = vmul.f32 %v1686_v31, %v1633_v30 }
 0x8c1   : > { %v1690_v35 = vrot.slane %v1688_v34, 2  ;;  %v1865_v58 = vpop.permute.xlu1 %1864 }
 0x8c3   : > { %v1692_v36 = vadd.f32 %v1690_v35, %v1688_v34  ;;  %v3524_v34 = vld [vmem:[%s4869_s22 + $0x8] ss:$12 sps:$4 sm:$0xff]  }
 0x8c4   : > { %v3527_v35 = vld [vmem:[%s4869_s22 + $0x1c] ss:$12 sps:$4 sm:$0xff]  }
 0x8c5   : > { %3200 = vmatmul.mubr.msk.f32.vlgmr.msra.gmra.mrb[14].mxu1 %vm1125_vm3, %v1692_v36  ;;  %v1867_v59 = vpop.permute.xlu1 %1866  ;;  %v3525_v36 = vld [vmem:[%s4869_s22 + $0x18] ss:$12 sps:$4 sm:$0xff]  }
 0x8c6   : > { %2223 = vmatprep.mubr.bf16.mxu1 %v4198_v22  ;;  %v1868_v63 = vsel %vm1517_vm10, %v1865_v58, %v1867_v59  ;;  %2192 = vmatpush1.bf16.msra.mxu1 %v3521_v25  ;;  %v3545_v58 = vld [vmem:[%s4879_s24 + $0x80] sm:$0xff]  }
 0x8c7   : > { %2193 = vmatprep.subr.bf16.mxu1 %v3527_v35 }
 0x8ca   : > { %2194 = vmatpush1.bf16.msra.mxu1 %v3525_v36 }
 0x998   : > { %v1762_v37 = vpop.f32.mrb[14].mxu1 }
 0x999   : > { %v1766_v38 = vmul.f32 0.28867513, %v1762_v37  ;;  %v3201_v39 = vpop.f32.mrb[15].mxu1  ;;  %v3528_v37 = vld [vmem:[%s4869_s22 + $0x20] ss:$12 sps:$4 sm:$0xff]  }
 0x99a   : > { %v3529_v39 = vld [vmem:[%s4869_s22 + $0x30] ss:$12 sps:$4 sm:$0xff]  }
 0x99b   : > { %v1767_v40 = vsel %vm1413_vm8, %v1766_v38, -inf }
 0x99c   : > { %v1768_v41 = vrot.slane %v1767_v40, 4 }
 0x99e   : > { %v1769_v42 = vmax.f32 %v1767_v40, %v1768_v41  ;;  %v3532_v40 = vld [vmem:[%s4869_s22 + $0x38] ss:$12 sps:$4 sm:$0xff]  }
 0x99f   : > { %v3535_v41 = vld [vmem:[%s4869_s22 + $0x4c] ss:$12 sps:$4 sm:$0xff]  }
 0x9a0   : > { %v1770_v43 = vrot.slane %v1769_v42, 2 }
 0x9a2   : > { %v1771_v44 = vmax.f32 %v1769_v42, %v1770_v43  ;;  %v3533_v42 = vld [vmem:[%s4869_s22 + $0x48] ss:$12 sps:$4 sm:$0xff]   ;;  %v3536_v43 = vld [vmem:[%s4869_s22 + $0x50] ss:$12 sps:$4 sm:$0xff]  }
 0x9a4   : > { %v1772_v45 = vrot.slane %v1771_v44, 1 }
 0x9a6   : > { %v1773_v46 = vmax.f32 %v1771_v44, %v1772_v45  ;;  %v3539_v44 = vld [vmem:[%s4869_s22 + $0x64] ss:$12 sps:$4 sm:$0xff]   ;;  %v3537_v45 = vld [vmem:[%s4869_s22 + $0x60] ss:$12 sps:$4 sm:$0xff]  }
 0x9a8   : > { %v1774_v47 = vsub.f32 %v1766_v38, %v1773_v46  ;;  %v3531_v38 = vld [vmem:[%s4869_s22 + $0x34] ss:$12 sps:$4 sm:$0xff]  }
 0x9a9   : > { %2195 = vmatprep.subr.bf16.mxu1 %v3531_v38  ;;  %v3540_v46 = vld [vmem:[%s4869_s22 + $0x68] ss:$12 sps:$4 sm:$0xff]  }
 0x9aa   : > { %v1775_v48 = vmul.f32 1.442695, %v1774_v47  ;;  %2196 = vmatpush1.bf16.msra.mxu1 %v3529_v39  ;;  %v3541_v47 = vld [vmem:[%s4869_s22 + $0x78] ss:$12 sps:$4 sm:$0xff]  }
 0x9ab   : > { %2197 = vmatprep.subr.bf16.mxu1 %v3535_v41 }
 0x9ac   : > { %3575 = vpow2.f32 %v1775_v48  ;;  %v3543_v48 = vld [vmem:[%s4869_s22 + $0x7c] ss:$12 sps:$4 sm:$0xff]  }
 0x9ae   : > { %2198 = vmatpush1.bf16.msra.mxu1 %v3533_v42 }
 0x9af   : > { %2199 = vmatprep.subr.bf16.mxu1 %v3539_v44 }
 0x9b2   : > { %2200 = vmatpush1.bf16.msra.mxu1 %v3537_v45 }
 0x9b3   : > { %2201 = vmatprep.subr.bf16.mxu1 %v3543_v48 }
 0x9b6   : > { %v3576_v49 = vpop.eup %3575  ;;  %2202 = vmatpush1.bf16.msra.mxu1 %v3541_v47 }
 0x9b7   : > { %v1777_v50 = vsel %vm1413_vm8, %v3576_v49, 0.0 }
 0x9b8   : > { %v1778_v51 = vrot.slane %v1777_v50, 4 }
 0x9ba   : > { %v1779_v52 = vadd.f32 %v1778_v51, %v1777_v50 }
 0x9bc   : > { %v1780_v22 = vrot.slane %v1779_v52, 2 }
 0x9be   : > { %v1781_v53 = vadd.f32 %v1780_v22, %v1779_v52 }
 0x9c0   : > { %v1782_v54 = vrot.slane %v1781_v53, 1 }
 0x9c2   : > { %v1783_v55 = vadd.f32 %v1782_v54, %v1781_v53  ;;  %v2968_v53 = vld [vmem:[%s817_s10] ss:$0 sm:$0xff] }
 0x9c4   : > { %3577 = vrcp.f32 %v1783_v55  ;;  %v2969_v55 = vld [vmem:[%s825_s27] ss:$0 sm:$0xff] }
 0x9ce   : > { %v3578_v56 = vpop.eup %3577 }
 0x9cf   : > { %v1785_v57 = vmul.f32 %v3578_v56, %v3576_v49  ;;  %v3544_v49 = vld [vmem:[%s4869_s22 + $0x80] ss:$12 sps:$4 sm:$0xff]  }
 0x9d1   : > { %3205 = vmatmul.mubr.msk.f32.vlgmr.msra.gmra.mrb[6].mxu0 %vm1434_vm9, %v1785_v57 }
 0x9d2   : > { %3209 = vmatprep.mubr.msk.bf16.mxu0 %vm4199_vm2, %v4197_v4 }
 0xaa4   : > { %v1855_v60 = vpop.f32.mrb[6].mxu0 }
 0xaa5   : > { %v1860_v61 = vrot.slane %v1855_v60, 6  ;;  %v3206_v62 = vpop.f32.mrb[7].mxu0 }
 0xaa6   : > { %v3548_v62 = vld [vmem:[%s4879_s24 + $0x88] sm:$0xff]  }
 0xaa7   : > { %v1862_v0 = vsel %vm1220_vm5, %v1855_v60, %v1860_v61  ;;  %v3546_v60 = vld [vmem:[%s4879_s24 + $0x40] sm:$0xff]  }
 0xaa8   : > { %v1870_v2 = vmul.f32 %v1868_v63, %v1862_v0  ;;  %v3547_v61 = vld [vmem:[%s4879_s24] sm:$0xff]   ;;  %3078 = vmatprep.subr.bf16.mxu1 %v3546_v60  ;;  %v3549_v63 = vld [vmem:[%s4879_s24 + $0x48] sm:$0xff]  }
 0xaa9   : > { %v3550_v0 = vld [vmem:[%s4879_s24 + $0x8] sm:$0xff]  }
 0xaaa   : > { %v1871_v3 = vpack.c.bf16 %v1870_v2, %v1870_v2  ;;  %v3551_v2 = vld [vmem:[%s4879_s24 + $0x90] sm:$0xff]  }
 0xaac   : > { %v1873_v5 = vsel %vm1220_vm5, %v1871_v3, 0  ;;  %v3552_v3 = vld [vmem:[%s4879_s24 + $0x50] sm:$0xff]  }
 0xaad   : > { %3208 = vmatpush3.bf16.msra.mxu0 %v1873_v5  ;;  %v3553_v5 = vld [vmem:[%s4879_s24 + $0x10] sm:$0xff]  }
 0xaae   : > { %3213 = vmatprep.subr.bf16.mxu0 %v4197_v4 }
 0xab0   : > { %3210 = vmatmul.mubr.msk.bf16.vlgmr.msra.gmra.mrb[12].mxu0 %vm1522_vm11, %v5007_v26 }
 0xab1   : > { %3214 = vmatpush3.bf16.msra.mxu0 %v3515_v7  ;;  %3225 = vmatprep.mubr.msk.bf16.mxu0 %vm4199_vm2, %v4197_v4  ;;  %v3554_v7 = vld [vmem:[%s4879_s24 + $0x98] sm:$0xff]  }
 0xab2   : > { %3215 = vmatprep.subr.bf16.mxu0 %v4197_v4 }
 0xab5   : > { %3216 = vmatpush3.bf16.msra.mxu0 %v3516_v9  ;;  %v3555_v9 = vld [vmem:[%s4879_s24 + $0x58] sm:$0xff]  }
 0xab6   : > { %3217 = vmatprep.subr.bf16.mxu0 %v4197_v4 }
 0xab9   : > { %3218 = vmatpush3.bf16.msra.mxu0 %v3517_v10  ;;  %v3556_v10 = vld [vmem:[%s4879_s24 + $0x18] sm:$0xff]  }
 0xaba   : > { %3219 = vmatprep.subr.bf16.mxu0 %v4197_v4 }
 0xabd   : > { %3220 = vmatpush3.bf16.msra.mxu0 %v3518_v12  ;;  %v3558_v12 = vld [vmem:[%s4879_s24 + $0x60] sm:$0xff]  }
 0xabe   : > { %3221 = vmatprep.subr.bf16.mxu0 %v4197_v4 }
 0xac1   : > { %3222 = vmatpush3.bf16.msra.mxu0 %v3519_v13  ;;  %v3557_v13 = vld [vmem:[%s4879_s24 + $0xa0] sm:$0xff]  }
 0xac2   : > { %3223 = vmatprep.subr.bf16.mxu0 %v4197_v4 }
 0xac5   : > { %3224 = vmatpush3.bf16.msra.mxu0 %v3520_v14  ;;  %v3559_v14 = vld [vmem:[%s4879_s24 + $0x20] sm:$0xff]  }
 0xac6   : > { %3229 = vmatprep.subr.bf16.mxu0 %v4197_v4 }
 0xb83   : > { %v1909_v17 = vpop.f32.mrb[12].mxu0 }
 0xb84   : > { %v1916_v19 = vrot.slane %v1909_v17, 5  ;;  %v3211_v20 = vpop.f32.mrb[13].mxu0  ;;  %v3561_v17 = vld [vmem:[%s4879_s24 + $0x68] sm:$0xff]  }
 0xb85   : > { %v1912_v23 = vpop.f32.mrb[14].mxu0  ;;  %v3562_v20 = vld [vmem:[%s4879_s24 + $0x28] sm:$0xff]  }
 0xb86   : > { %v1919_v24 = vsel %vm1918_vm12, %v5030_v18, %v1916_v19  ;;  %v3212_v26 = vpop.f32.mrb[15].mxu0  ;;  %v3560_v19 = vld [vmem:[%s4879_s24 + $0xa8] sm:$0xff]   ;;  %v3564_v23 = vld [vmem:[%s4879_s24 + $0x70] sm:$0xff]  }
 0xb87   : > { %v1920_v6 = vpack.c.bf16 %v1919_v24, %v1919_v24  ;;  %v3563_v24 = vld [vmem:[%s4879_s24 + $0xb0] sm:$0xff]  }
 0xb88   : > { %v3565_v26 = vld [vmem:[%s4879_s24 + $0x30] sm:$0xff]  }
 0xb89   : > { %3226 = vmatmul.mubr.msk.bf16.vlgmr.msra.gmra.mrb[16].mxu0 %vm1125_vm3, %v1920_v6  ;;  %v3567_v6 = vld [vmem:[%s4879_s24 + $0x78] sm:$0xff]  }
 0xb8a   : > { %3241 = vmatprep.mubr.msk.bf16.mxu0 %vm4199_vm2, %v4197_v4  ;;  %3230 = vmatpush3.bf16.msra.mxu0 %v3524_v34 }
 0xb8b   : > { %3231 = vmatprep.subr.bf16.mxu0 %v4197_v4 }
 0xb8e   : > { %3232 = vmatpush3.bf16.msra.mxu0 %v3528_v37 }
 0xb8f   : > { %3233 = vmatprep.subr.bf16.mxu0 %v4197_v4 }
 0xb92   : > { %3234 = vmatpush3.bf16.msra.mxu0 %v3532_v40 }
 0xb93   : > { %3235 = vmatprep.subr.bf16.mxu0 %v4197_v4 }
 0xb96   : > { %3236 = vmatpush3.bf16.msra.mxu0 %v3536_v43 }
 0xb97   : > { %3237 = vmatprep.subr.bf16.mxu0 %v4197_v4 }
 0xb9a   : > { %3238 = vmatpush3.bf16.msra.mxu0 %v3540_v46 }
 0xb9b   : > { %3239 = vmatprep.subr.bf16.mxu0 %v4197_v4 }
 0xb9e   : > { %3240 = vmatpush3.bf16.msra.mxu0 %v3544_v49 }
 0xb9f   : > { %3245 = vmatprep.subr.bf16.mxu0 %v4197_v4 }
 0xc5c   : > { %v2006_v8 = vpop.f32.mrb[16].mxu0 }
 0xc5d   : > { %v2012_v16 = vadd.f32 %v2006_v8, %v4900_v1  ;;  %v3227_v27 = vpop.f32.mrb[17].mxu0  ;;  %v3566_v8 = vld [vmem:[%s4879_s24 + $0xb8] sm:$0xff]  }
 0xc5e   : > { %v2009_v21 = vpop.f32.mrb[18].mxu0 }
 0xc5f   : > { %v5071_v29 = vadd.f32 %v2967_v11, %v2012_v16  ;;  %v3228_v30 = vpop.f32.mrb[19].mxu0  ;;  %v3568_v11 = vld [vmem:[%s4879_s24 + $0x38] sm:$0xff]   ;;  %v2077_v16 = vlaneseq }
 0xc61   : > { %v2023_v18 = vsel %vm975_vm1, %v5071_v29, 0.0  ;;  %v2078_v27 = vshrl.u32 %v2077_v16, 7 }
 0xc62   : > { %2024 = vadd.xlane.f32.xlu1 %v2023_v18  ;;  %v2075_v18 = vld [vmem:[%s4872_s19] sm:$0x7] }
 0xc63   : > { %v2079_v21 = vsub.s32 0, %v2078_v27  ;;  %v2087_v30 = vsub.s32 2, %v2078_v27  ;;  %v2083_v25 = vsub.s32 1, %v2078_v27 }
 0xc65   : > { %v2080_v32 = vrot.slane %v2075_v18, %v2079_v21 }
 0xcef   : > { %v2025_v33 = vpop.xlane.xlu1 %2024 }
 0xcf0   : > { %v2026_v1 = vmul.f32 0.010416667, %v2025_v33  ;;  %v2088_v33 = vrot.slane %v2075_v18, %v2087_v30 }
 0xcf2   : > { %v2027_v15 = vsub.f32 %v5071_v29, %v2026_v1  ;;  %v2084_v1 = vrot.slane %v2075_v18, %v2083_v25 }
 0xcf4   : > { %v2028_v28 = vmul.f32 %v2027_v15, %v2027_v15 }
 0xcf6   : > { %v2029_v31 = vsel %vm975_vm1, %v2028_v28, 0.0 }
 0xcf7   : > { %2030 = vadd.xlane.f32.xlu0 %v2029_v31 }
 0xd84   : > { %v2031_v50 = vpop.xlane.xlu0 %2030 }
 0xd85   : > { %v2032_v51 = vmul.f32 0.010416667, %v2031_v50 }
 0xd87   : > { %v2033_v52 = vadd.f32 1e-05, %v2032_v51 }
 0xd89   : > { %3579 = vrsqrt.f32 %v2033_v52 }
 0xd93   : > { %v3580_v22 = vpop.eup %3579 }
 0xd94   : > { %v2035_v54 = vmul.f32 %v3580_v22, %v2027_v15 }
 0xd96   : > { %v2042_v56 = vmul.f32 %v2968_v53, %v2035_v54 }
 0xd98   : > { %v2049_v57 = vadd.f32 %v2969_v55, %v2042_v56 }
 0xd9a   : > { %v2050_v59 = vpack.c.bf16 %v2049_v57, %v2049_v57 }
 0xd9c   : > { %2988 = vmatmul.mubr.msk.bf16.vlgmr.msra.gmra.mrb[24].mxu1 %vm1125_vm3, %v2050_v59  ;;  %3242 = vmatmul.mubr.msk.bf16.vlgmr.msra.gmra.mrb[20].mxu0 %vm1125_vm3, %v2050_v59 }
 0xd9d   : > { %3246 = vmatpush3.bf16.msra.mxu0 %v3545_v58  ;;  %3261 = vmatprep.mubr.msk.bf16.mxu0 %vm4199_vm2, %v4197_v4 }
 0xd9e   : > { %3247 = vmatprep.subr.bf16.mxu0 %v4197_v4  ;;  %3079 = vmatpush3.bf16.msra.mxu1 %v3547_v61 }
 0xd9f   : > { %3080 = vmatprep.subr.bf16.mxu1 %v3549_v63 }
 0xda1   : > { %3248 = vmatpush3.bf16.msra.mxu0 %v3548_v62 }
 0xda2   : > { %3249 = vmatprep.subr.bf16.mxu0 %v4197_v4  ;;  %3081 = vmatpush3.bf16.msra.mxu1 %v3550_v0 }
 0xda3   : > { %3082 = vmatprep.subr.bf16.mxu1 %v3552_v3 }
 0xda5   : > { %3250 = vmatpush3.bf16.msra.mxu0 %v3551_v2 }
 0xda6   : > { %3251 = vmatprep.subr.bf16.mxu0 %v4197_v4  ;;  %3083 = vmatpush3.bf16.msra.mxu1 %v3553_v5 }
 0xda7   : > { %3084 = vmatprep.subr.bf16.mxu1 %v3555_v9 }
 0xda9   : > { %3252 = vmatpush3.bf16.msra.mxu0 %v3554_v7 }
 0xdaa   : > { %3253 = vmatprep.subr.bf16.mxu0 %v4197_v4  ;;  %3085 = vmatpush3.bf16.msra.mxu1 %v3556_v10 }
 0xdab   : > { %3086 = vmatprep.subr.bf16.mxu1 %v3558_v12 }
 0xdad   : > { %3254 = vmatpush3.bf16.msra.mxu0 %v3557_v13 }
 0xdae   : > { %3255 = vmatprep.subr.bf16.mxu0 %v4197_v4  ;;  %3087 = vmatpush3.bf16.msra.mxu1 %v3559_v14 }
 0xdaf   : > { %3088 = vmatprep.subr.bf16.mxu1 %v3561_v17  ;;  %v2990_v17 = vld [vmem:[%s860_s28] ss:$0 sm:$0xff] }
 0xdb1   : > { %3256 = vmatpush3.bf16.msra.mxu0 %v3560_v19 }
 0xdb2   : > { %3257 = vmatprep.subr.bf16.mxu0 %v4197_v4  ;;  %3089 = vmatpush3.bf16.msra.mxu1 %v3562_v20 }
 0xdb3   : > { %3090 = vmatprep.subr.bf16.mxu1 %v3564_v23 }
 0xdb5   : > { %3258 = vmatpush3.bf16.msra.mxu0 %v3563_v24 }
 0xdb6   : > { %3259 = vmatprep.subr.bf16.mxu0 %v4197_v4  ;;  %3091 = vmatpush3.bf16.msra.mxu1 %v3565_v26 }
 0xdb7   : > { %3092 = vmatprep.subr.bf16.mxu1 %v3567_v6 }
 0xdb9   : > { %3260 = vmatpush3.bf16.msra.mxu0 %v3566_v8 }
 0xdba   : > { %3093 = vmatpush3.bf16.msra.mxu1 %v3568_v11 }
 0xe6f   : > { %v2225_v15 = vpop.f32.mrb[24].mxu1  ;;  %v2266_v28 = vpop.f32.mrb[20].mxu0 }
 0xe70   : > { %v2226_v31 = vadd.f32 %v2225_v15, %v2080_v32  ;;  %v2267_v34 = vadd.f32 %v2266_v28, %v2088_v33  ;;  %v2227_v35 = vpop.f32.mrb[25].mxu1  ;;  %v3243_v4 = vpop.f32.mrb[21].mxu0 }
 0xe71   : > { %v2228_v36 = vadd.f32 %v2227_v35, %v2084_v1  ;;  %v2229_v37 = vpop.f32.mrb[26].mxu1  ;;  %v2269_v38 = vpop.f32.mrb[22].mxu0 }
 0xe72   : > { %v2275_v39 = vmul.f32 0.044715, %v2226_v31  ;;  %v2277_v40 = vmul.f32 0.044715, %v2267_v34  ;;  %v2230_v41 = vpop.f32.mrb[27].mxu1  ;;  %v3244_v42 = vpop.f32.mrb[23].mxu0 }
 0xe73   : > { %v2276_v43 = vmul.f32 0.044715, %v2228_v36  ;;  %v2274_v57 = vmul.f32 0.5, %v2267_v34  ;;  %v2273_v60 = vmul.f32 0.5, %v2228_v36  ;;  %v2272_v63 = vmul.f32 0.5, %v2226_v31 }
 0xe74   : > { %v2278_v44 = vmul.f32 %v2275_v39, %v2226_v31  ;;  %v2280_v45 = vmul.f32 %v2277_v40, %v2267_v34 }
 0xe75   : > { %v2279_v46 = vmul.f32 %v2276_v43, %v2228_v36 }
 0xe76   : > { %v2281_v47 = vmul.f32 %v2278_v44, %v2226_v31  ;;  %v2283_v48 = vmul.f32 %v2280_v45, %v2267_v34 }
 0xe77   : > { %v2282_v49 = vmul.f32 %v2279_v46, %v2228_v36 }
 0xe78   : > { %v2284_v50 = vadd.f32 %v2281_v47, %v2226_v31  ;;  %v2286_v51 = vadd.f32 %v2283_v48, %v2267_v34 }
 0xe79   : > { %v2285_v52 = vadd.f32 %v2282_v49, %v2228_v36 }
 0xe7a   : > { %v2289_v22 = vmul.f32 0.7978846, %v2286_v51  ;;  %v2287_v53 = vmul.f32 0.7978846, %v2284_v50 }
 0xe7b   : > { %v2288_v54 = vmul.f32 0.7978846, %v2285_v52 }
 0xe7c   : > { %3581 = vtanh.f32 %v2289_v22 }
 0xe7d   : > { %3583 = vtanh.f32 %v2288_v54 }
 0xe7e   : > { %3585 = vtanh.f32 %v2287_v53 }
 0xe86   : > { %v3582_v55 = vpop.eup %3581 }
 0xe87   : > { %v3584_v56 = vpop.eup %3583  ;;  %v2295_v58 = vadd.f32 1.0, %v3582_v55 }
 0xe88   : > { %v3586_v59 = vpop.eup %3585  ;;  %v2294_v61 = vadd.f32 1.0, %v3584_v56 }
 0xe89   : > { %v2298_v62 = vmul.f32 %v2295_v58, %v2274_v57  ;;  %v2293_v0 = vadd.f32 1.0, %v3586_v59 }
 0xe8a   : > { %v2297_v2 = vmul.f32 %v2294_v61, %v2273_v60 }
 0xe8b   : > { %v2301_v3 = vpack.c.bf16 %v2298_v62, %v2298_v62  ;;  %v2296_v5 = vmul.f32 %v2293_v0, %v2272_v63 }
 0xe8c   : > { %v2300_v7 = vpack.c.bf16 %v2297_v2, %v2297_v2 }
 0xe8d   : > { %3262 = vmatmul.mubr.bf16.vlgmr.msra.gmra.mrb[24].mxu0 %v2301_v3  ;;  %v2299_v9 = vpack.c.bf16 %v2296_v5, %v2296_v5 }
 0xe8e   : > { %2533 = vmatprep.mubr.bf16.mxu1 %v2300_v7 }
 0xe8f   : > { %2534 = vmatmul.mubr.bf16.vlgmr.msra.gmra.mrb[28].mxu1 %v2299_v9 }
 0xf60   : > { %v2575_v10 = vpop.f32.mrb[24].mxu0 }
 0xf61   : > { %v3263_v12 = vpop.f32.mrb[25].mxu0 }
 0xf62   : > { %v3094_v13 = vpop.f32.mrb[28].mxu1  ;;  %v2578_v14 = vpop.f32.mrb[26].mxu0 }
 0xf63   : > { %v3095_v19 = vpop.f32.mrb[29].mxu1  ;;  %v3264_v20 = vpop.f32.mrb[27].mxu0 }
 0xf64   : > { %v3096_v23 = vadd.f32 %v3095_v19, %v3094_v13  ;;  %v3097_v24 = vpop.f32.mrb[30].mxu1 }
 0xf65   : > { %v3098_v26 = vpop.f32.mrb[31].mxu1 }
 0xf66   : > { %v2536_v6 = vadd.f32 %v3096_v23, %v2990_v17 }
 0xf68   : > { %v2576_v8 = vadd.f32 %v2575_v10, %v2536_v6 }
 0xf6a   : > { %v2581_v11 = vadd.f32 %v2576_v8, %v5071_v29 }
 0xf6c   : > { %2582 = vst.msk [vmem:[#allocation28] sm:$0x3f] %vm975_vm1, %v2581_v11 }
 0xf6d   : > { %4070 = shalt.err (!%p4067_p2)
}
 0xf6e   : > { %s5308_s29 = sld [smem:[#allocation57_spill]] }
 0xf74   : > { %s4071_s10 = scalar_lea.hbm %s5308_s29, 128 }
 0xf75   : > { %p4072_p6 = scmp.ne.s32.totalorder %s5308_s29, %s4071_s10  ;;  %p4077_p3 = scmp.lt.u32.totalorder %s4071_s10, %s5308_s29 }
 0xf77   : > { %p4073_p0 = pnand %p4072_p6, %p3422_p12 }
 0xf79   : > { %p4074_p10 = pneg %p4073_p0 }
 0xf7b   : > { %p4079_p4 = pnand %p4077_p3, %p4074_p10 }
 0xf7d   : > { %4082 = shalt.err (!%p4079_p4)
}
 0xf7e   : > { %3358 = dma.vmem_to_hbm [thread:$0]  (%p3422_p12), %s2593_s7, 128, %s5308_s29, [#allocation4]  }
 0xf7f   : > { %4148 = dma.done.wait (%p3422_p12), [#allocation4], 128  }
 0xf80   : > { %4150 = vsyncadd (%p3422_p12), [#allocation4], 4294967168 }
 0xf81 PF: > { %s5309_s24 = sld [smem:[#allocation42_spill]]  ;;  %s5310_s21 = sld [smem:[#allocation40_spill]] }
 0xf82   : > { %s5311_s17 = sld [smem:[#allocation47_spill]]  ;;  %s5312_s28 = sld [smem:[#allocation46_spill]] }
 0xf83   : > { %s5313_s22 = smov %s4161_s23 }
 0xf87   : > { %s48_s26 = sadd.s32 1, %s5309_s24   ;;  %s5315_s24 = smov %s4169_s25 }
 0xf88   : > { %p45_p8 = scmp.ge.s32.totalorder %s48_s26, 4   ;;  %s5314_s23 = smov %s5311_s17 }
 0xf89   : > { %s5316_s25 = smov %s5312_s28 }
 0xf8a   :  { %47 = sbr.rel (!%p45_p8) target bundleno = 29 (0x1d), region = 268 }
 0xf91   :  { %2605 = vsyncpa [#allocation3], 1 }
 0xf92   :  { %2607 = vsyncpa [#allocation3 + $0x1], 1 }
 0xf93   :  { %2608 = vsyncpa [#allocation6], 1 }
 0xf94   :  { %2610 = vsyncpa [#allocation6 + $0x1], 1 }
 0xf95   :  { %2611 = vsyncpa [#allocation9], 1 }
 0xf96   :  { %2613 = vsyncpa [#allocation9 + $0x1], 1 }
 0xf97   :  { %2614 = vsyncpa [#allocation12], 1 }
 0xf98   :  { %2616 = vsyncpa [#allocation12 + $0x1], 1 }
 0xf99   :  { %2617 = vsyncpa [#allocation15], 1 }
 0xf9a   :  { %2619 = vsyncpa [#allocation15 + $0x1], 1 }
 0xf9b   :  { %2620 = vsyncpa [#allocation18], 1 }
 0xf9c   :  { %2622 = vsyncpa [#allocation18 + $0x1], 1 }
 0xf9d   :  { %2623 = vsyncpa [#allocation21], 1 }
 0xf9e   :  { %2625 = vsyncpa [#allocation21 + $0x1], 1 }
 0xf9f   :  { %2626 = vsyncpa [#allocation24], 1 }
 0xfa0   :  { %2627 = vsyncpa [#allocation27], 1 }
 0xfa1   :  { %2628 = vsyncpa [#allocation4], 1 }
 0xfa2   :  { %2630 = vsyncpa [#allocation4 + $0x1], 1 }

</bundles_post_ra>
